<compile_context>
chip_gen: v6e
topology: v6e:2x2x1
jax: 0.10.0
libtpu: 0.0.40
codegen_flags: <defaults>
</compile_context>

<pallas_src>
import functools
import math

import jax
import jax.numpy as jnp
from jax.experimental import pallas as pl
from jax.experimental.pallas import tpu as pltpu


# ----------------------------------------------------------------------------
# Fused model kernel: all LSTM layers + FC head in one invocation (no grid).
# ----------------------------------------------------------------------------
def _model_kernel(x_ref, wih0_ref, wihr_ref, whh_ref, b_ref, fcw_ref, fcb_ref,
                  out_ref, seq_a, seq_b, proj_ref, hfin_ref, cfin_ref):
    # Static shape info derived from refs.
    L, H, _ = whh_ref.shape          # L = 2 * num_layers; whh is bf16 (L, H, 4H)
    nl, Bp, _ = hfin_ref.shape       # layers per stack, padded batch
    T = proj_ref.shape[0] // Bp      # timesteps
    F_pad = fcw_ref.shape[-1]        # lane-padded FC output width
    unroll = T if T <= 16 else 8     # partial unroll keeps LLO overlap for big T

    def run_layer(l, inp_ref, out_seq_ref, h0, c0, fuse_fc):
        """One LSTM layer over the whole sequence held in VMEM."""
        w_in = wih0_ref[...] if l == 0 else wihr_ref[l - 1]   # (Din, 4H) f32
        b_l = b_ref[l]                                        # (1, 4H) f32
        w_hh = whh_ref[l]                                     # (H, 4H) bf16

        # Hoisted input projection: one big (T*Bp, Din) x (Din, 4H) matmul.
        proj_ref[...] = (jnp.dot(inp_ref[...], w_in,
                                 preferred_element_type=jnp.float32) + b_l)

        def cell(t, h, c):
            row = pl.multiple_of(t * Bp, Bp)
            # bf16 x bf16 MXU matmul, f32 accumulate (critical path).
            gates = (proj_ref[pl.ds(row, Bp), :]
                     + jnp.dot(h.astype(jnp.bfloat16), w_hh,
                               preferred_element_type=jnp.float32))
            # Gates packed as [i, f, o, g]: one wide sigmoid + one tanh.
            acts = jax.nn.sigmoid(gates[:, 0:3 * H])
            i_g = acts[:, 0:H]
            f_g = acts[:, H:2 * H]
            o_g = acts[:, 2 * H:3 * H]
            g_g = jnp.tanh(gates[:, 3 * H:4 * H])
            c_new = f_g * c + i_g * g_g
            h_new = o_g * jnp.tanh(c_new)
            return h_new, c_new, row

        if fuse_fc:
            # Last layer: fuse the FC head accumulation into the recurrence;
            # no output-sequence stores are needed.
            def step(t, carry):
                h, c, acc = carry
                h_new, c_new, _ = cell(t, h, c)
                acc = acc + jnp.dot(h_new, fcw_ref[t],
                                    preferred_element_type=jnp.float32)
                return h_new, c_new, acc

            init = (h0, c0, jnp.zeros((Bp, F_pad), jnp.float32))
            h_fin, c_fin, y = jax.lax.fori_loop(0, T, step, init,
                                                unroll=unroll)
            return h_fin, c_fin, y
        else:
            def step(t, carry):
                h, c = carry
                h_new, c_new, row = cell(t, h, c)
                out_seq_ref[pl.ds(row, Bp), :] = h_new
                return h_new, c_new

            h_fin, c_fin = jax.lax.fori_loop(0, T, step, (h0, c0),
                                             unroll=unroll)
            return h_fin, c_fin, None

    zero = jnp.zeros((Bp, H), jnp.float32)
    bufs = (seq_a, seq_b)
    cur = x_ref
    y = None
    for l in range(L):
        last = (l == L - 1)
        dst = None if last else bufs[l % 2]
        if l < nl:
            h0, c0 = zero, zero                         # first stack: zero init
        else:
            h0, c0 = hfin_ref[l - nl], cfin_ref[l - nl]  # second stack: (h1,c1)
        hT, cT, y_l = run_layer(l, cur, dst, h0, c0, fuse_fc=last)
        if l < nl:
            hfin_ref[l] = hT
            cfin_ref[l] = cT
        if last:
            y = y_l
        else:
            cur = dst

    # FC bias + lane-dense store (F_pad is a multiple of 128).
    out_ref[...] = y + fcb_ref[...]


# ----------------------------------------------------------------------------
# Parameter packing (done once, outside the hot path).
# ----------------------------------------------------------------------------
def _pad_fout(f_out):
    return max(128, ((f_out + 127) // 128) * 128)


def pack_params(params, *, hidden_dim, seq_len, pred_len, input_size):
    H = hidden_dim
    layers = list(params["lstm1"]) + list(params["lstm2"])
    L = len(layers)

    def reorder(w):
        # PyTorch gate order [i, f, g, o] -> kernel order [i, f, o, g] so the
        # activation tail is one wide sigmoid (0:3H) + one tanh (3H:4H).
        return jnp.concatenate(
            [w[0:H], w[H:2 * H], w[3 * H:4 * H], w[2 * H:3 * H]], axis=0)

    wih0 = reorder(layers[0][0]).T.astype(jnp.float32)                  # (D, 4H)
    wih_rest = jnp.stack([reorder(layers[l][0]).T for l in range(1, L)]
                         ).astype(jnp.float32)                          # (L-1, H, 4H)
    # Recurrent weights in bf16: native MXU operand width (f32 accumulate in-kernel).
    whh = jnp.stack([reorder(layers[l][1]).T for l in range(L)]
                    ).astype(jnp.bfloat16)                              # (L, H, 4H)
    bias = jnp.stack([reorder(layers[l][2] + layers[l][3])[None, :]
                      for l in range(L)]).astype(jnp.float32)           # (L, 1, 4H)

    F_out = input_size * pred_len
    F_pad = _pad_fout(F_out)
    fcw = params["fc_w"].T.reshape(seq_len, H, F_out).astype(jnp.float32)
    fcw = jnp.pad(fcw, ((0, 0), (0, 0), (0, F_pad - F_out)))            # (T, H, F_pad)
    fcb = jnp.pad(params["fc_b"].astype(jnp.float32),
                  (0, F_pad - F_out))[None, :]                          # (1, F_pad)
    return dict(wih0=wih0, wih_rest=wih_rest, whh=whh, bias=bias,
                fcw=fcw, fcb=fcb)


# ----------------------------------------------------------------------------
# Full model forward (wrapper).
# ----------------------------------------------------------------------------
def _vmem_budget_bytes(T, Bp, D, H, L, nl, F_pad):
    f32, bf16 = 4, 2
    n = T * Bp * D * f32                       # input slab
    n += D * 4 * H * f32                       # wih0
    n += (L - 1) * H * 4 * H * f32             # wih_rest
    n += L * H * 4 * H * bf16                  # whh (bf16)
    n += L * 4 * H * f32                       # bias
    n += T * H * F_pad * f32 + F_pad * f32     # fc weights / bias
    n += Bp * F_pad * f32                      # output
    n += 2 * T * Bp * H * f32                  # seq ping/pong
    n += T * Bp * 4 * H * f32                  # hoisted x-proj
    n += 2 * nl * Bp * H * f32                 # h1/c1 finals
    return n


def normal_lstm_2layer_forward(x, packed, *, num_layers, hidden_dim,
                               seq_len, pred_len, input_size):
    """x: (B, seq_len, input_size), batch_first (matches PyTorch)."""
    B = x.shape[0]
    T, H, D = seq_len, hidden_dim, input_size
    L = 2 * num_layers
    F_out = input_size * pred_len
    F_pad = _pad_fout(F_out)
    Bp = max(8, ((B + 7) // 8) * 8)                       # pad batch to sublanes

    x_tm = jnp.transpose(x, (1, 0, 2)).astype(jnp.float32)   # (T, B, D)
    if Bp != B:
        x_tm = jnp.pad(x_tm, ((0, 0), (0, Bp - B), (0, 0)))
    x2 = x_tm.reshape(T * Bp, D)                              # time-major slab

    budget = _vmem_budget_bytes(T, Bp, D, H, L, num_layers, F_pad)
    vmem_limit = int(min(64 * 1024 * 1024,
                         max(16 * 1024 * 1024, 2 * budget + (1 << 20))))

    out = pl.pallas_call(
        _model_kernel,
        out_shape=jax.ShapeDtypeStruct((Bp, F_pad), jnp.float32),
        scratch_shapes=[
            pltpu.VMEM((T * Bp, H), jnp.float32),             # seq ping
            pltpu.VMEM((T * Bp, H), jnp.float32),             # seq pong
            pltpu.VMEM((T * Bp, 4 * H), jnp.float32),         # hoisted x-proj
            pltpu.VMEM((num_layers, Bp, H), jnp.float32),     # h1 (stack-1 finals)
            pltpu.VMEM((num_layers, Bp, H), jnp.float32),     # c1 (stack-1 finals)
        ],
        compiler_params=pltpu.CompilerParams(vmem_limit_bytes=vmem_limit),
    )(x2, packed["wih0"], packed["wih_rest"], packed["whh"],
      packed["bias"], packed["fcw"], packed["fcb"])

    return out[:B, :F_out].reshape(B, pred_len, input_size)


# ----------------------------------------------------------------------------
# Deterministic parameter init (PyTorch-style uniform(-1/sqrt(H), 1/sqrt(H))).
# ----------------------------------------------------------------------------
def init_params(key, *, input_size, hidden_dim, num_layers, seq_len, pred_len):
    H = hidden_dim
    bound = 1.0 / math.sqrt(H)

    def u(k, shape, b):
        return jax.random.uniform(k, shape, jnp.float32, -b, b)

    params = {"lstm1": [], "lstm2": []}
    for stack in ("lstm1", "lstm2"):
        for l in range(num_layers):
            d_in = input_size if (stack == "lstm1" and l == 0) else H
            key, k1, k2, k3, k4 = jax.random.split(key, 5)
            params[stack].append((u(k1, (4 * H, d_in), bound),   # W_ih
                                  u(k2, (4 * H, H), bound),      # W_hh
                                  u(k3, (4 * H,), bound),        # b_ih
                                  u(k4, (4 * H,), bound)))       # b_hh
    f_in = H * seq_len
    f_out = input_size * pred_len
    fb = 1.0 / math.sqrt(f_in)
    key, k1, k2 = jax.random.split(key, 3)
    params["fc_w"] = u(k1, (f_out, f_in), fb)
    params["fc_b"] = u(k2, (f_out,), fb)
    return params


# ----------------------------------------------------------------------------
# Pure-JAX reference (lax.scan, f32, PyTorch gate order) for sanity checking.
# ----------------------------------------------------------------------------
def _ref_lstm_layer(x_tm, w_ih, w_hh, b_ih, b_hh, h0, c0):
    H = w_hh.shape[1]

    def step(carry, x_t):
        h, c = carry
        gates = x_t @ w_ih.T + h @ w_hh.T + b_ih + b_hh
        i = jax.nn.sigmoid(gates[:, 0:H])
        f = jax.nn.sigmoid(gates[:, H:2 * H])
        g = jnp.tanh(gates[:, 2 * H:3 * H])
        o = jax.nn.sigmoid(gates[:, 3 * H:4 * H])
        c_new = f * c + i * g
        h_new = o * jnp.tanh(c_new)
        return (h_new, c_new), h_new

    (hT, cT), out = jax.lax.scan(step, (h0, c0), x_tm)
    return out, hT, cT


def reference_forward(x, params, *, num_layers, hidden_dim, seq_len,
                      pred_len, input_size):
    B = x.shape[0]
    x_tm = jnp.transpose(x, (1, 0, 2)).astype(jnp.float32)
    h0 = jnp.zeros((B, hidden_dim), jnp.float32)
    c0 = jnp.zeros((B, hidden_dim), jnp.float32)
    h_finals, c_finals, cur = [], [], x_tm
    for l in range(num_layers):
        cur, hT, cT = _ref_lstm_layer(cur, *params["lstm1"][l], h0, c0)
        h_finals.append(hT)
        c_finals.append(cT)
    for l in range(num_layers):
        cur, _, _ = _ref_lstm_layer(cur, *params["lstm2"][l],
                                    h_finals[l], c_finals[l])
    out2 = jnp.transpose(cur, (1, 0, 2)).reshape(B, seq_len * hidden_dim)
    y = out2 @ params["fc_w"].T + params["fc_b"]
    return y.reshape(B, pred_len, input_size)


if __name__ == "__main__":
    # Small shapes consistent with the module.
    B, input_size, hidden_dim, num_layers = 2, 16, 32, 2
    seq_len, pred_len = 8, 4

    key = jax.random.PRNGKey(0)
    key, xkey = jax.random.split(key)
    x = jax.random.normal(xkey, (B, seq_len, input_size), jnp.float32)

    params = init_params(key, input_size=input_size, hidden_dim=hidden_dim,
                         num_layers=num_layers, seq_len=seq_len,
                         pred_len=pred_len)
    packed = pack_params(params, hidden_dim=hidden_dim, seq_len=seq_len,
                         pred_len=pred_len, input_size=input_size)

    fwd = jax.jit(functools.partial(
        normal_lstm_2layer_forward,
        num_layers=num_layers, hidden_dim=hidden_dim,
        seq_len=seq_len, pred_len=pred_len, input_size=input_size))
    out = fwd(x, packed)
    out = jax.block_until_ready(out)

    assert out.shape == (B, pred_len, input_size), out.shape

    ref = reference_forward(x, params, num_layers=num_layers,
                            hidden_dim=hidden_dim, seq_len=seq_len,
                            pred_len=pred_len, input_size=input_size)
    # bf16 recurrent-matmul operands => tolerance loosened from 1e-4 (f32).
    assert jnp.allclose(out, ref, atol=5e-2, rtol=5e-2), (
        float(jnp.max(jnp.abs(out - ref))))

    print("KERNEL_OK")
</pallas_src>

<mosaic_0001>
module attributes {stable_mosaic.version = 11 : i64} {
  func.func @_model_kernel(%arg0: memref<64x16xf32, #tpu.memory_space<vmem>>, %arg1: memref<16x128xf32, #tpu.memory_space<vmem>>, %arg2: memref<3x32x128xf32, #tpu.memory_space<vmem>>, %arg3: memref<4x32x128xbf16, #tpu.memory_space<vmem>>, %arg4: memref<4x1x128xf32, #tpu.memory_space<vmem>>, %arg5: memref<8x32x128xf32, #tpu.memory_space<vmem>>, %arg6: memref<1x128xf32, #tpu.memory_space<vmem>>, %arg7: memref<8x128xf32, #tpu.memory_space<vmem>>, %arg8: memref<64x32xf32, #tpu.memory_space<vmem>>, %arg9: memref<64x32xf32, #tpu.memory_space<vmem>>, %arg10: memref<64x128xf32, #tpu.memory_space<vmem>>, %arg11: memref<2x8x32xf32, #tpu.memory_space<vmem>>, %arg12: memref<2x8x32xf32, #tpu.memory_space<vmem>>) attributes {dimension_semantics = [], scalar_prefetch = 0 : i64, scratch_operands = 5 : i64, tpu.core_type = #tpu.core_type<tc>} {
    %cst = arith.constant 0.000000e+00 : f32
    %0 = vector.broadcast %cst : f32 to vector<8x32xf32>
    %c0 = arith.constant 0 : index
    %c0_0 = arith.constant 0 : index
    %1 = vector.load %arg1[%c0, %c0_0] : memref<16x128xf32, #tpu.memory_space<vmem>>, vector<16x128xf32>
    %c0_1 = arith.constant 0 : index
    %c0_2 = arith.constant 0 : index
    %c0_3 = arith.constant 0 : index
    %2 = vector.load %arg4[%c0_1, %c0_2, %c0_3] : memref<4x1x128xf32, #tpu.memory_space<vmem>>, vector<1x1x128xf32>
    %3 = vector.shape_cast %2 : vector<1x1x128xf32> to vector<1x128xf32>
    %c0_4 = arith.constant 0 : index
    %c0_5 = arith.constant 0 : index
    %c0_6 = arith.constant 0 : index
    %4 = vector.load %arg3[%c0_4, %c0_5, %c0_6] : memref<4x32x128xbf16, #tpu.memory_space<vmem>>, vector<1x32x128xbf16>
    %5 = vector.shape_cast %4 : vector<1x32x128xbf16> to vector<32x128xbf16>
    %c0_7 = arith.constant 0 : index
    %c0_8 = arith.constant 0 : index
    %6 = vector.load %arg0[%c0_7, %c0_8] : memref<64x16xf32, #tpu.memory_space<vmem>>, vector<64x16xf32>
    %cst_9 = arith.constant dense<0.000000e+00> : vector<64x128xf32>
    %7 = tpu.matmul %6, %1, %cst_9 {dimension_numbers = #tpu.dot_dimension_numbers<[1], [0], [0], [1], [0, 0, 1, 1], [], []>} : vector<64x16xf32>, vector<16x128xf32>, vector<64x128xf32> -> vector<64x128xf32>
    %8 = vector.broadcast %3 : vector<1x128xf32> to vector<64x128xf32>
    %9 = arith.addf %7, %8 : vector<64x128xf32>
    %c0_10 = arith.constant 0 : index
    %c0_11 = arith.constant 0 : index
    %10 = vector.load %arg10[%c0_10, %c0_11] : memref<64x128xf32, #tpu.memory_space<vmem>>, vector<64x128xf32>
    tpu.vector_store %arg10[%c0_10, %c0_11], %9 {strides = array<i32>} : memref<64x128xf32, #tpu.memory_space<vmem>>, vector<64x128xf32>,
    %c0_i32 = arith.constant 0 : i32
    %c8_i32 = arith.constant 8 : i32
    %11 = arith.muli %c0_i32, %c8_i32 : i32
    %12 = tpu.assume_multiple %11, 8 : i32
    %13 = arith.index_cast %12 : i32 to index
    %c0_12 = arith.constant 0 : index
    %14 = vector.load %arg10[%13, %c0_12] : memref<64x128xf32, #tpu.memory_space<vmem>>, vector<8x128xf32>
    %15 = arith.truncf %0 : vector<8x32xf32> to vector<8x32xbf16>
    %cst_13 = arith.constant dense<0.000000e+00> : vector<8x128xf32>
    %16 = tpu.matmul %15, %5, %cst_13 {dimension_numbers = #tpu.dot_dimension_numbers<[1], [0], [0], [1], [0, 0, 1, 1], [], []>} : vector<8x32xbf16>, vector<32x128xbf16>, vector<8x128xf32> -> vector<8x128xf32>
    %17 = arith.addf %14, %16 : vector<8x128xf32>
    %18 = vector.extract_strided_slice %17 {offsets = [0, 0], sizes = [8, 96], strides = [1, 1]} : vector<8x128xf32> to vector<8x96xf32>
    %19 = arith.negf %18 : vector<8x96xf32>
    %20 = math.exp %19 : vector<8x96xf32>
    %cst_14 = arith.constant 1.000000e+00 : f32
    %21 = vector.broadcast %cst_14 : f32 to vector<8x96xf32>
    %22 = arith.addf %21, %20 : vector<8x96xf32>
    %23 = arith.divf %21, %22 : vector<8x96xf32>
    %24 = vector.extract_strided_slice %23 {offsets = [0, 0], sizes = [8, 32], strides = [1, 1]} : vector<8x96xf32> to vector<8x32xf32>
    %25 = vector.extract_strided_slice %23 {offsets = [0, 32], sizes = [8, 32], strides = [1, 1]} : vector<8x96xf32> to vector<8x32xf32>
    %26 = vector.extract_strided_slice %23 {offsets = [0, 64], sizes = [8, 32], strides = [1, 1]} : vector<8x96xf32> to vector<8x32xf32>
    %27 = vector.extract_strided_slice %17 {offsets = [0, 96], sizes = [8, 32], strides = [1, 1]} : vector<8x128xf32> to vector<8x32xf32>
    %28 = math.tanh %27 : vector<8x32xf32>
    %29 = arith.mulf %25, %0 : vector<8x32xf32>
    %30 = arith.mulf %24, %28 : vector<8x32xf32>
    %31 = arith.addf %29, %30 : vector<8x32xf32>
    %32 = math.tanh %31 : vector<8x32xf32>
    %33 = arith.mulf %26, %32 : vector<8x32xf32>
    %34 = arith.index_cast %12 : i32 to index
    %c0_15 = arith.constant 0 : index
    %35 = vector.load %arg8[%34, %c0_15] : memref<64x32xf32, #tpu.memory_space<vmem>>, vector<8x32xf32>
    tpu.vector_store %arg8[%34, %c0_15], %33 {strides = array<i32>} : memref<64x32xf32, #tpu.memory_space<vmem>>, vector<8x32xf32>,
    %c1_i32 = arith.constant 1 : i32
    %c8_i32_16 = arith.constant 8 : i32
    %36 = arith.muli %c1_i32, %c8_i32_16 : i32
    %37 = tpu.assume_multiple %36, 8 : i32
    %38 = arith.index_cast %37 : i32 to index
    %c0_17 = arith.constant 0 : index
    %39 = vector.load %arg10[%38, %c0_17] : memref<64x128xf32, #tpu.memory_space<vmem>>, vector<8x128xf32>
    %40 = arith.truncf %33 : vector<8x32xf32> to vector<8x32xbf16>
    %cst_18 = arith.constant dense<0.000000e+00> : vector<8x128xf32>
    %41 = tpu.matmul %40, %5, %cst_18 {dimension_numbers = #tpu.dot_dimension_numbers<[1], [0], [0], [1], [0, 0, 1, 1], [], []>} : vector<8x32xbf16>, vector<32x128xbf16>, vector<8x128xf32> -> vector<8x128xf32>
    %42 = arith.addf %39, %41 : vector<8x128xf32>
    %43 = vector.extract_strided_slice %42 {offsets = [0, 0], sizes = [8, 96], strides = [1, 1]} : vector<8x128xf32> to vector<8x96xf32>
    %44 = arith.negf %43 : vector<8x96xf32>
    %45 = math.exp %44 : vector<8x96xf32>
    %cst_19 = arith.constant 1.000000e+00 : f32
    %46 = vector.broadcast %cst_19 : f32 to vector<8x96xf32>
    %47 = arith.addf %46, %45 : vector<8x96xf32>
    %48 = arith.divf %46, %47 : vector<8x96xf32>
    %49 = vector.extract_strided_slice %48 {offsets = [0, 0], sizes = [8, 32], strides = [1, 1]} : vector<8x96xf32> to vector<8x32xf32>
    %50 = vector.extract_strided_slice %48 {offsets = [0, 32], sizes = [8, 32], strides = [1, 1]} : vector<8x96xf32> to vector<8x32xf32>
    %51 = vector.extract_strided_slice %48 {offsets = [0, 64], sizes = [8, 32], strides = [1, 1]} : vector<8x96xf32> to vector<8x32xf32>
    %52 = vector.extract_strided_slice %42 {offsets = [0, 96], sizes = [8, 32], strides = [1, 1]} : vector<8x128xf32> to vector<8x32xf32>
    %53 = math.tanh %52 : vector<8x32xf32>
    %54 = arith.mulf %50, %31 : vector<8x32xf32>
    %55 = arith.mulf %49, %53 : vector<8x32xf32>
    %56 = arith.addf %54, %55 : vector<8x32xf32>
    %57 = math.tanh %56 : vector<8x32xf32>
    %58 = arith.mulf %51, %57 : vector<8x32xf32>
    %59 = arith.index_cast %37 : i32 to index
    %c0_20 = arith.constant 0 : index
    %60 = vector.load %arg8[%59, %c0_20] : memref<64x32xf32, #tpu.memory_space<vmem>>, vector<8x32xf32>
    tpu.vector_store %arg8[%59, %c0_20], %58 {strides = array<i32>} : memref<64x32xf32, #tpu.memory_space<vmem>>, vector<8x32xf32>,
    %c2_i32 = arith.constant 2 : i32
    %c8_i32_21 = arith.constant 8 : i32
    %61 = arith.muli %c2_i32, %c8_i32_21 : i32
    %62 = tpu.assume_multiple %61, 8 : i32
    %63 = arith.index_cast %62 : i32 to index
    %c0_22 = arith.constant 0 : index
    %64 = vector.load %arg10[%63, %c0_22] : memref<64x128xf32, #tpu.memory_space<vmem>>, vector<8x128xf32>
    %65 = arith.truncf %58 : vector<8x32xf32> to vector<8x32xbf16>
    %cst_23 = arith.constant dense<0.000000e+00> : vector<8x128xf32>
    %66 = tpu.matmul %65, %5, %cst_23 {dimension_numbers = #tpu.dot_dimension_numbers<[1], [0], [0], [1], [0, 0, 1, 1], [], []>} : vector<8x32xbf16>, vector<32x128xbf16>, vector<8x128xf32> -> vector<8x128xf32>
    %67 = arith.addf %64, %66 : vector<8x128xf32>
    %68 = vector.extract_strided_slice %67 {offsets = [0, 0], sizes = [8, 96], strides = [1, 1]} : vector<8x128xf32> to vector<8x96xf32>
    %69 = arith.negf %68 : vector<8x96xf32>
    %70 = math.exp %69 : vector<8x96xf32>
    %cst_24 = arith.constant 1.000000e+00 : f32
    %71 = vector.broadcast %cst_24 : f32 to vector<8x96xf32>
    %72 = arith.addf %71, %70 : vector<8x96xf32>
    %73 = arith.divf %71, %72 : vector<8x96xf32>
    %74 = vector.extract_strided_slice %73 {offsets = [0, 0], sizes = [8, 32], strides = [1, 1]} : vector<8x96xf32> to vector<8x32xf32>
    %75 = vector.extract_strided_slice %73 {offsets = [0, 32], sizes = [8, 32], strides = [1, 1]} : vector<8x96xf32> to vector<8x32xf32>
    %76 = vector.extract_strided_slice %73 {offsets = [0, 64], sizes = [8, 32], strides = [1, 1]} : vector<8x96xf32> to vector<8x32xf32>
    %77 = vector.extract_strided_slice %67 {offsets = [0, 96], sizes = [8, 32], strides = [1, 1]} : vector<8x128xf32> to vector<8x32xf32>
    %78 = math.tanh %77 : vector<8x32xf32>
    %79 = arith.mulf %75, %56 : vector<8x32xf32>
    %80 = arith.mulf %74, %78 : vector<8x32xf32>
    %81 = arith.addf %79, %80 : vector<8x32xf32>
    %82 = math.tanh %81 : vector<8x32xf32>
    %83 = arith.mulf %76, %82 : vector<8x32xf32>
    %84 = arith.index_cast %62 : i32 to index
    %c0_25 = arith.constant 0 : index
    %85 = vector.load %arg8[%84, %c0_25] : memref<64x32xf32, #tpu.memory_space<vmem>>, vector<8x32xf32>
    tpu.vector_store %arg8[%84, %c0_25], %83 {strides = array<i32>} : memref<64x32xf32, #tpu.memory_space<vmem>>, vector<8x32xf32>,
    %c3_i32 = arith.constant 3 : i32
    %c8_i32_26 = arith.constant 8 : i32
    %86 = arith.muli %c3_i32, %c8_i32_26 : i32
    %87 = tpu.assume_multiple %86, 8 : i32
    %88 = arith.index_cast %87 : i32 to index
    %c0_27 = arith.constant 0 : index
    %89 = vector.load %arg10[%88, %c0_27] : memref<64x128xf32, #tpu.memory_space<vmem>>, vector<8x128xf32>
    %90 = arith.truncf %83 : vector<8x32xf32> to vector<8x32xbf16>
    %cst_28 = arith.constant dense<0.000000e+00> : vector<8x128xf32>
    %91 = tpu.matmul %90, %5, %cst_28 {dimension_numbers = #tpu.dot_dimension_numbers<[1], [0], [0], [1], [0, 0, 1, 1], [], []>} : vector<8x32xbf16>, vector<32x128xbf16>, vector<8x128xf32> -> vector<8x128xf32>
    %92 = arith.addf %89, %91 : vector<8x128xf32>
    %93 = vector.extract_strided_slice %92 {offsets = [0, 0], sizes = [8, 96], strides = [1, 1]} : vector<8x128xf32> to vector<8x96xf32>
    %94 = arith.negf %93 : vector<8x96xf32>
    %95 = math.exp %94 : vector<8x96xf32>
    %cst_29 = arith.constant 1.000000e+00 : f32
    %96 = vector.broadcast %cst_29 : f32 to vector<8x96xf32>
    %97 = arith.addf %96, %95 : vector<8x96xf32>
    %98 = arith.divf %96, %97 : vector<8x96xf32>
    %99 = vector.extract_strided_slice %98 {offsets = [0, 0], sizes = [8, 32], strides = [1, 1]} : vector<8x96xf32> to vector<8x32xf32>
    %100 = vector.extract_strided_slice %98 {offsets = [0, 32], sizes = [8, 32], strides = [1, 1]} : vector<8x96xf32> to vector<8x32xf32>
    %101 = vector.extract_strided_slice %98 {offsets = [0, 64], sizes = [8, 32], strides = [1, 1]} : vector<8x96xf32> to vector<8x32xf32>
    %102 = vector.extract_strided_slice %92 {offsets = [0, 96], sizes = [8, 32], strides = [1, 1]} : vector<8x128xf32> to vector<8x32xf32>
    %103 = math.tanh %102 : vector<8x32xf32>
    %104 = arith.mulf %100, %81 : vector<8x32xf32>
    %105 = arith.mulf %99, %103 : vector<8x32xf32>
    %106 = arith.addf %104, %105 : vector<8x32xf32>
    %107 = math.tanh %106 : vector<8x32xf32>
    %108 = arith.mulf %101, %107 : vector<8x32xf32>
    %109 = arith.index_cast %87 : i32 to index
    %c0_30 = arith.constant 0 : index
    %110 = vector.load %arg8[%109, %c0_30] : memref<64x32xf32, #tpu.memory_space<vmem>>, vector<8x32xf32>
    tpu.vector_store %arg8[%109, %c0_30], %108 {strides = array<i32>} : memref<64x32xf32, #tpu.memory_space<vmem>>, vector<8x32xf32>,
    %c4_i32 = arith.constant 4 : i32
    %c8_i32_31 = arith.constant 8 : i32
    %111 = arith.muli %c4_i32, %c8_i32_31 : i32
    %112 = tpu.assume_multiple %111, 8 : i32
    %113 = arith.index_cast %112 : i32 to index
    %c0_32 = arith.constant 0 : index
    %114 = vector.load %arg10[%113, %c0_32] : memref<64x128xf32, #tpu.memory_space<vmem>>, vector<8x128xf32>
    %115 = arith.truncf %108 : vector<8x32xf32> to vector<8x32xbf16>
    %cst_33 = arith.constant dense<0.000000e+00> : vector<8x128xf32>
    %116 = tpu.matmul %115, %5, %cst_33 {dimension_numbers = #tpu.dot_dimension_numbers<[1], [0], [0], [1], [0, 0, 1, 1], [], []>} : vector<8x32xbf16>, vector<32x128xbf16>, vector<8x128xf32> -> vector<8x128xf32>
    %117 = arith.addf %114, %116 : vector<8x128xf32>
    %118 = vector.extract_strided_slice %117 {offsets = [0, 0], sizes = [8, 96], strides = [1, 1]} : vector<8x128xf32> to vector<8x96xf32>
    %119 = arith.negf %118 : vector<8x96xf32>
    %120 = math.exp %119 : vector<8x96xf32>
    %cst_34 = arith.constant 1.000000e+00 : f32
    %121 = vector.broadcast %cst_34 : f32 to vector<8x96xf32>
    %122 = arith.addf %121, %120 : vector<8x96xf32>
    %123 = arith.divf %121, %122 : vector<8x96xf32>
    %124 = vector.extract_strided_slice %123 {offsets = [0, 0], sizes = [8, 32], strides = [1, 1]} : vector<8x96xf32> to vector<8x32xf32>
    %125 = vector.extract_strided_slice %123 {offsets = [0, 32], sizes = [8, 32], strides = [1, 1]} : vector<8x96xf32> to vector<8x32xf32>
    %126 = vector.extract_strided_slice %123 {offsets = [0, 64], sizes = [8, 32], strides = [1, 1]} : vector<8x96xf32> to vector<8x32xf32>
    %127 = vector.extract_strided_slice %117 {offsets = [0, 96], sizes = [8, 32], strides = [1, 1]} : vector<8x128xf32> to vector<8x32xf32>
    %128 = math.tanh %127 : vector<8x32xf32>
    %129 = arith.mulf %125, %106 : vector<8x32xf32>
    %130 = arith.mulf %124, %128 : vector<8x32xf32>
    %131 = arith.addf %129, %130 : vector<8x32xf32>
    %132 = math.tanh %131 : vector<8x32xf32>
    %133 = arith.mulf %126, %132 : vector<8x32xf32>
    %134 = arith.index_cast %112 : i32 to index
    %c0_35 = arith.constant 0 : index
    %135 = vector.load %arg8[%134, %c0_35] : memref<64x32xf32, #tpu.memory_space<vmem>>, vector<8x32xf32>
    tpu.vector_store %arg8[%134, %c0_35], %133 {strides = array<i32>} : memref<64x32xf32, #tpu.memory_space<vmem>>, vector<8x32xf32>,
    %c5_i32 = arith.constant 5 : i32
    %c8_i32_36 = arith.constant 8 : i32
    %136 = arith.muli %c5_i32, %c8_i32_36 : i32
    %137 = tpu.assume_multiple %136, 8 : i32
    %138 = arith.index_cast %137 : i32 to index
    %c0_37 = arith.constant 0 : index
    %139 = vector.load %arg10[%138, %c0_37] : memref<64x128xf32, #tpu.memory_space<vmem>>, vector<8x128xf32>
    %140 = arith.truncf %133 : vector<8x32xf32> to vector<8x32xbf16>
    %cst_38 = arith.constant dense<0.000000e+00> : vector<8x128xf32>
    %141 = tpu.matmul %140, %5, %cst_38 {dimension_numbers = #tpu.dot_dimension_numbers<[1], [0], [0], [1], [0, 0, 1, 1], [], []>} : vector<8x32xbf16>, vector<32x128xbf16>, vector<8x128xf32> -> vector<8x128xf32>
    %142 = arith.addf %139, %141 : vector<8x128xf32>
    %143 = vector.extract_strided_slice %142 {offsets = [0, 0], sizes = [8, 96], strides = [1, 1]} : vector<8x128xf32> to vector<8x96xf32>
    %144 = arith.negf %143 : vector<8x96xf32>
    %145 = math.exp %144 : vector<8x96xf32>
    %cst_39 = arith.constant 1.000000e+00 : f32
    %146 = vector.broadcast %cst_39 : f32 to vector<8x96xf32>
    %147 = arith.addf %146, %145 : vector<8x96xf32>
    %148 = arith.divf %146, %147 : vector<8x96xf32>
    %149 = vector.extract_strided_slice %148 {offsets = [0, 0], sizes = [8, 32], strides = [1, 1]} : vector<8x96xf32> to vector<8x32xf32>
    %150 = vector.extract_strided_slice %148 {offsets = [0, 32], sizes = [8, 32], strides = [1, 1]} : vector<8x96xf32> to vector<8x32xf32>
    %151 = vector.extract_strided_slice %148 {offsets = [0, 64], sizes = [8, 32], strides = [1, 1]} : vector<8x96xf32> to vector<8x32xf32>
    %152 = vector.extract_strided_slice %142 {offsets = [0, 96], sizes = [8, 32], strides = [1, 1]} : vector<8x128xf32> to vector<8x32xf32>
    %153 = math.tanh %152 : vector<8x32xf32>
    %154 = arith.mulf %150, %131 : vector<8x32xf32>
    %155 = arith.mulf %149, %153 : vector<8x32xf32>
    %156 = arith.addf %154, %155 : vector<8x32xf32>
    %157 = math.tanh %156 : vector<8x32xf32>
    %158 = arith.mulf %151, %157 : vector<8x32xf32>
    %159 = arith.index_cast %137 : i32 to index
    %c0_40 = arith.constant 0 : index
    %160 = vector.load %arg8[%159, %c0_40] : memref<64x32xf32, #tpu.memory_space<vmem>>, vector<8x32xf32>
    tpu.vector_store %arg8[%159, %c0_40], %158 {strides = array<i32>} : memref<64x32xf32, #tpu.memory_space<vmem>>, vector<8x32xf32>,
    %c6_i32 = arith.constant 6 : i32
    %c8_i32_41 = arith.constant 8 : i32
    %161 = arith.muli %c6_i32, %c8_i32_41 : i32
    %162 = tpu.assume_multiple %161, 8 : i32
    %163 = arith.index_cast %162 : i32 to index
    %c0_42 = arith.constant 0 : index
    %164 = vector.load %arg10[%163, %c0_42] : memref<64x128xf32, #tpu.memory_space<vmem>>, vector<8x128xf32>
    %165 = arith.truncf %158 : vector<8x32xf32> to vector<8x32xbf16>
    %cst_43 = arith.constant dense<0.000000e+00> : vector<8x128xf32>
    %166 = tpu.matmul %165, %5, %cst_43 {dimension_numbers = #tpu.dot_dimension_numbers<[1], [0], [0], [1], [0, 0, 1, 1], [], []>} : vector<8x32xbf16>, vector<32x128xbf16>, vector<8x128xf32> -> vector<8x128xf32>
    %167 = arith.addf %164, %166 : vector<8x128xf32>
    %168 = vector.extract_strided_slice %167 {offsets = [0, 0], sizes = [8, 96], strides = [1, 1]} : vector<8x128xf32> to vector<8x96xf32>
    %169 = arith.negf %168 : vector<8x96xf32>
    %170 = math.exp %169 : vector<8x96xf32>
    %cst_44 = arith.constant 1.000000e+00 : f32
    %171 = vector.broadcast %cst_44 : f32 to vector<8x96xf32>
    %172 = arith.addf %171, %170 : vector<8x96xf32>
    %173 = arith.divf %171, %172 : vector<8x96xf32>
    %174 = vector.extract_strided_slice %173 {offsets = [0, 0], sizes = [8, 32], strides = [1, 1]} : vector<8x96xf32> to vector<8x32xf32>
    %175 = vector.extract_strided_slice %173 {offsets = [0, 32], sizes = [8, 32], strides = [1, 1]} : vector<8x96xf32> to vector<8x32xf32>
    %176 = vector.extract_strided_slice %173 {offsets = [0, 64], sizes = [8, 32], strides = [1, 1]} : vector<8x96xf32> to vector<8x32xf32>
    %177 = vector.extract_strided_slice %167 {offsets = [0, 96], sizes = [8, 32], strides = [1, 1]} : vector<8x128xf32> to vector<8x32xf32>
    %178 = math.tanh %177 : vector<8x32xf32>
    %179 = arith.mulf %175, %156 : vector<8x32xf32>
    %180 = arith.mulf %174, %178 : vector<8x32xf32>
    %181 = arith.addf %179, %180 : vector<8x32xf32>
    %182 = math.tanh %181 : vector<8x32xf32>
    %183 = arith.mulf %176, %182 : vector<8x32xf32>
    %184 = arith.index_cast %162 : i32 to index
    %c0_45 = arith.constant 0 : index
    %185 = vector.load %arg8[%184, %c0_45] : memref<64x32xf32, #tpu.memory_space<vmem>>, vector<8x32xf32>
    tpu.vector_store %arg8[%184, %c0_45], %183 {strides = array<i32>} : memref<64x32xf32, #tpu.memory_space<vmem>>, vector<8x32xf32>,
    %c7_i32 = arith.constant 7 : i32
    %c8_i32_46 = arith.constant 8 : i32
    %186 = arith.muli %c7_i32, %c8_i32_46 : i32
    %187 = tpu.assume_multiple %186, 8 : i32
    %188 = arith.index_cast %187 : i32 to index
    %c0_47 = arith.constant 0 : index
    %189 = vector.load %arg10[%188, %c0_47] : memref<64x128xf32, #tpu.memory_space<vmem>>, vector<8x128xf32>
    %190 = arith.truncf %183 : vector<8x32xf32> to vector<8x32xbf16>
    %cst_48 = arith.constant dense<0.000000e+00> : vector<8x128xf32>
    %191 = tpu.matmul %190, %5, %cst_48 {dimension_numbers = #tpu.dot_dimension_numbers<[1], [0], [0], [1], [0, 0, 1, 1], [], []>} : vector<8x32xbf16>, vector<32x128xbf16>, vector<8x128xf32> -> vector<8x128xf32>
    %192 = arith.addf %189, %191 : vector<8x128xf32>
    %193 = vector.extract_strided_slice %192 {offsets = [0, 0], sizes = [8, 96], strides = [1, 1]} : vector<8x128xf32> to vector<8x96xf32>
    %194 = arith.negf %193 : vector<8x96xf32>
    %195 = math.exp %194 : vector<8x96xf32>
    %cst_49 = arith.constant 1.000000e+00 : f32
    %196 = vector.broadcast %cst_49 : f32 to vector<8x96xf32>
    %197 = arith.addf %196, %195 : vector<8x96xf32>
    %198 = arith.divf %196, %197 : vector<8x96xf32>
    %199 = vector.extract_strided_slice %198 {offsets = [0, 0], sizes = [8, 32], strides = [1, 1]} : vector<8x96xf32> to vector<8x32xf32>
    %200 = vector.extract_strided_slice %198 {offsets = [0, 32], sizes = [8, 32], strides = [1, 1]} : vector<8x96xf32> to vector<8x32xf32>
    %201 = vector.extract_strided_slice %198 {offsets = [0, 64], sizes = [8, 32], strides = [1, 1]} : vector<8x96xf32> to vector<8x32xf32>
    %202 = vector.extract_strided_slice %192 {offsets = [0, 96], sizes = [8, 32], strides = [1, 1]} : vector<8x128xf32> to vector<8x32xf32>
    %203 = math.tanh %202 : vector<8x32xf32>
    %204 = arith.mulf %200, %181 : vector<8x32xf32>
    %205 = arith.mulf %199, %203 : vector<8x32xf32>
    %206 = arith.addf %204, %205 : vector<8x32xf32>
    %207 = math.tanh %206 : vector<8x32xf32>
    %208 = arith.mulf %201, %207 : vector<8x32xf32>
    %209 = arith.index_cast %187 : i32 to index
    %c0_50 = arith.constant 0 : index
    %210 = vector.load %arg8[%209, %c0_50] : memref<64x32xf32, #tpu.memory_space<vmem>>, vector<8x32xf32>
    tpu.vector_store %arg8[%209, %c0_50], %208 {strides = array<i32>} : memref<64x32xf32, #tpu.memory_space<vmem>>, vector<8x32xf32>,
    %c8_i32_51 = arith.constant 8 : i32
    %c0_52 = arith.constant 0 : index
    %c0_53 = arith.constant 0 : index
    %c0_54 = arith.constant 0 : index
    %211 = vector.load %arg11[%c0_52, %c0_53, %c0_54] : memref<2x8x32xf32, #tpu.memory_space<vmem>>, vector<1x8x32xf32>
    %212 = vector.shape_cast %211 : vector<1x8x32xf32> to vector<8x32xf32>
    %213 = vector.shape_cast %208 : vector<8x32xf32> to vector<1x8x32xf32>
    tpu.vector_store %arg11[%c0_52, %c0_53, %c0_54], %213 {strides = array<i32>} : memref<2x8x32xf32, #tpu.memory_space<vmem>>, vector<1x8x32xf32>,
    %c0_55 = arith.constant 0 : index
    %c0_56 = arith.constant 0 : index
    %c0_57 = arith.constant 0 : index
    %214 = vector.load %arg12[%c0_55, %c0_56, %c0_57] : memref<2x8x32xf32, #tpu.memory_space<vmem>>, vector<1x8x32xf32>
    %215 = vector.shape_cast %214 : vector<1x8x32xf32> to vector<8x32xf32>
    %216 = vector.shape_cast %206 : vector<8x32xf32> to vector<1x8x32xf32>
    tpu.vector_store %arg12[%c0_55, %c0_56, %c0_57], %216 {strides = array<i32>} : memref<2x8x32xf32, #tpu.memory_space<vmem>>, vector<1x8x32xf32>,
    %c0_58 = arith.constant 0 : index
    %c0_59 = arith.constant 0 : index
    %c0_60 = arith.constant 0 : index
    %217 = vector.load %arg2[%c0_58, %c0_59, %c0_60] : memref<3x32x128xf32, #tpu.memory_space<vmem>>, vector<1x32x128xf32>
    %218 = vector.shape_cast %217 : vector<1x32x128xf32> to vector<32x128xf32>
    %c1 = arith.constant 1 : index
    %c0_61 = arith.constant 0 : index
    %c0_62 = arith.constant 0 : index
    %219 = vector.load %arg4[%c1, %c0_61, %c0_62] : memref<4x1x128xf32, #tpu.memory_space<vmem>>, vector<1x1x128xf32>
    %220 = vector.shape_cast %219 : vector<1x1x128xf32> to vector<1x128xf32>
    %c1_63 = arith.constant 1 : index
    %c0_64 = arith.constant 0 : index
    %c0_65 = arith.constant 0 : index
    %221 = vector.load %arg3[%c1_63, %c0_64, %c0_65] : memref<4x32x128xbf16, #tpu.memory_space<vmem>>, vector<1x32x128xbf16>
    %222 = vector.shape_cast %221 : vector<1x32x128xbf16> to vector<32x128xbf16>
    %c0_66 = arith.constant 0 : index
    %c0_67 = arith.constant 0 : index
    %223 = vector.load %arg8[%c0_66, %c0_67] : memref<64x32xf32, #tpu.memory_space<vmem>>, vector<64x32xf32>
    %cst_68 = arith.constant dense<0.000000e+00> : vector<64x128xf32>
    %224 = tpu.matmul %223, %218, %cst_68 {dimension_numbers = #tpu.dot_dimension_numbers<[1], [0], [0], [1], [0, 0, 1, 1], [], []>} : vector<64x32xf32>, vector<32x128xf32>, vector<64x128xf32> -> vector<64x128xf32>
    %225 = vector.broadcast %220 : vector<1x128xf32> to vector<64x128xf32>
    %226 = arith.addf %224, %225 : vector<64x128xf32>
    %c0_69 = arith.constant 0 : index
    %c0_70 = arith.constant 0 : index
    %227 = vector.load %arg10[%c0_69, %c0_70] : memref<64x128xf32, #tpu.memory_space<vmem>>, vector<64x128xf32>
    tpu.vector_store %arg10[%c0_69, %c0_70], %226 {strides = array<i32>} : memref<64x128xf32, #tpu.memory_space<vmem>>, vector<64x128xf32>,
    %c0_i32_71 = arith.constant 0 : i32
    %c8_i32_72 = arith.constant 8 : i32
    %228 = arith.muli %c0_i32_71, %c8_i32_72 : i32
    %229 = tpu.assume_multiple %228, 8 : i32
    %230 = arith.index_cast %229 : i32 to index
    %c0_73 = arith.constant 0 : index
    %231 = vector.load %arg10[%230, %c0_73] : memref<64x128xf32, #tpu.memory_space<vmem>>, vector<8x128xf32>
    %232 = arith.truncf %0 : vector<8x32xf32> to vector<8x32xbf16>
    %cst_74 = arith.constant dense<0.000000e+00> : vector<8x128xf32>
    %233 = tpu.matmul %232, %222, %cst_74 {dimension_numbers = #tpu.dot_dimension_numbers<[1], [0], [0], [1], [0, 0, 1, 1], [], []>} : vector<8x32xbf16>, vector<32x128xbf16>, vector<8x128xf32> -> vector<8x128xf32>
    %234 = arith.addf %231, %233 : vector<8x128xf32>
    %235 = vector.extract_strided_slice %234 {offsets = [0, 0], sizes = [8, 96], strides = [1, 1]} : vector<8x128xf32> to vector<8x96xf32>
    %236 = arith.negf %235 : vector<8x96xf32>
    %237 = math.exp %236 : vector<8x96xf32>
    %cst_75 = arith.constant 1.000000e+00 : f32
    %238 = vector.broadcast %cst_75 : f32 to vector<8x96xf32>
    %239 = arith.addf %238, %237 : vector<8x96xf32>
    %240 = arith.divf %238, %239 : vector<8x96xf32>
    %241 = vector.extract_strided_slice %240 {offsets = [0, 0], sizes = [8, 32], strides = [1, 1]} : vector<8x96xf32> to vector<8x32xf32>
    %242 = vector.extract_strided_slice %240 {offsets = [0, 32], sizes = [8, 32], strides = [1, 1]} : vector<8x96xf32> to vector<8x32xf32>
    %243 = vector.extract_strided_slice %240 {offsets = [0, 64], sizes = [8, 32], strides = [1, 1]} : vector<8x96xf32> to vector<8x32xf32>
    %244 = vector.extract_strided_slice %234 {offsets = [0, 96], sizes = [8, 32], strides = [1, 1]} : vector<8x128xf32> to vector<8x32xf32>
    %245 = math.tanh %244 : vector<8x32xf32>
    %246 = arith.mulf %242, %0 : vector<8x32xf32>
    %247 = arith.mulf %241, %245 : vector<8x32xf32>
    %248 = arith.addf %246, %247 : vector<8x32xf32>
    %249 = math.tanh %248 : vector<8x32xf32>
    %250 = arith.mulf %243, %249 : vector<8x32xf32>
    %251 = arith.index_cast %229 : i32 to index
    %c0_76 = arith.constant 0 : index
    %252 = vector.load %arg9[%251, %c0_76] : memref<64x32xf32, #tpu.memory_space<vmem>>, vector<8x32xf32>
    tpu.vector_store %arg9[%251, %c0_76], %250 {strides = array<i32>} : memref<64x32xf32, #tpu.memory_space<vmem>>, vector<8x32xf32>,
    %c1_i32_77 = arith.constant 1 : i32
    %c8_i32_78 = arith.constant 8 : i32
    %253 = arith.muli %c1_i32_77, %c8_i32_78 : i32
    %254 = tpu.assume_multiple %253, 8 : i32
    %255 = arith.index_cast %254 : i32 to index
    %c0_79 = arith.constant 0 : index
    %256 = vector.load %arg10[%255, %c0_79] : memref<64x128xf32, #tpu.memory_space<vmem>>, vector<8x128xf32>
    %257 = arith.truncf %250 : vector<8x32xf32> to vector<8x32xbf16>
    %cst_80 = arith.constant dense<0.000000e+00> : vector<8x128xf32>
    %258 = tpu.matmul %257, %222, %cst_80 {dimension_numbers = #tpu.dot_dimension_numbers<[1], [0], [0], [1], [0, 0, 1, 1], [], []>} : vector<8x32xbf16>, vector<32x128xbf16>, vector<8x128xf32> -> vector<8x128xf32>
    %259 = arith.addf %256, %258 : vector<8x128xf32>
    %260 = vector.extract_strided_slice %259 {offsets = [0, 0], sizes = [8, 96], strides = [1, 1]} : vector<8x128xf32> to vector<8x96xf32>
    %261 = arith.negf %260 : vector<8x96xf32>
    %262 = math.exp %261 : vector<8x96xf32>
    %cst_81 = arith.constant 1.000000e+00 : f32
    %263 = vector.broadcast %cst_81 : f32 to vector<8x96xf32>
    %264 = arith.addf %263, %262 : vector<8x96xf32>
    %265 = arith.divf %263, %264 : vector<8x96xf32>
    %266 = vector.extract_strided_slice %265 {offsets = [0, 0], sizes = [8, 32], strides = [1, 1]} : vector<8x96xf32> to vector<8x32xf32>
    %267 = vector.extract_strided_slice %265 {offsets = [0, 32], sizes = [8, 32], strides = [1, 1]} : vector<8x96xf32> to vector<8x32xf32>
    %268 = vector.extract_strided_slice %265 {offsets = [0, 64], sizes = [8, 32], strides = [1, 1]} : vector<8x96xf32> to vector<8x32xf32>
    %269 = vector.extract_strided_slice %259 {offsets = [0, 96], sizes = [8, 32], strides = [1, 1]} : vector<8x128xf32> to vector<8x32xf32>
    %270 = math.tanh %269 : vector<8x32xf32>
    %271 = arith.mulf %267, %248 : vector<8x32xf32>
    %272 = arith.mulf %266, %270 : vector<8x32xf32>
    %273 = arith.addf %271, %272 : vector<8x32xf32>
    %274 = math.tanh %273 : vector<8x32xf32>
    %275 = arith.mulf %268, %274 : vector<8x32xf32>
    %276 = arith.index_cast %254 : i32 to index
    %c0_82 = arith.constant 0 : index
    %277 = vector.load %arg9[%276, %c0_82] : memref<64x32xf32, #tpu.memory_space<vmem>>, vector<8x32xf32>
    tpu.vector_store %arg9[%276, %c0_82], %275 {strides = array<i32>} : memref<64x32xf32, #tpu.memory_space<vmem>>, vector<8x32xf32>,
    %c2_i32_83 = arith.constant 2 : i32
    %c8_i32_84 = arith.constant 8 : i32
    %278 = arith.muli %c2_i32_83, %c8_i32_84 : i32
    %279 = tpu.assume_multiple %278, 8 : i32
    %280 = arith.index_cast %279 : i32 to index
    %c0_85 = arith.constant 0 : index
    %281 = vector.load %arg10[%280, %c0_85] : memref<64x128xf32, #tpu.memory_space<vmem>>, vector<8x128xf32>
    %282 = arith.truncf %275 : vector<8x32xf32> to vector<8x32xbf16>
    %cst_86 = arith.constant dense<0.000000e+00> : vector<8x128xf32>
    %283 = tpu.matmul %282, %222, %cst_86 {dimension_numbers = #tpu.dot_dimension_numbers<[1], [0], [0], [1], [0, 0, 1, 1], [], []>} : vector<8x32xbf16>, vector<32x128xbf16>, vector<8x128xf32> -> vector<8x128xf32>
    %284 = arith.addf %281, %283 : vector<8x128xf32>
    %285 = vector.extract_strided_slice %284 {offsets = [0, 0], sizes = [8, 96], strides = [1, 1]} : vector<8x128xf32> to vector<8x96xf32>
    %286 = arith.negf %285 : vector<8x96xf32>
    %287 = math.exp %286 : vector<8x96xf32>
    %cst_87 = arith.constant 1.000000e+00 : f32
    %288 = vector.broadcast %cst_87 : f32 to vector<8x96xf32>
    %289 = arith.addf %288, %287 : vector<8x96xf32>
    %290 = arith.divf %288, %289 : vector<8x96xf32>
    %291 = vector.extract_strided_slice %290 {offsets = [0, 0], sizes = [8, 32], strides = [1, 1]} : vector<8x96xf32> to vector<8x32xf32>
    %292 = vector.extract_strided_slice %290 {offsets = [0, 32], sizes = [8, 32], strides = [1, 1]} : vector<8x96xf32> to vector<8x32xf32>
    %293 = vector.extract_strided_slice %290 {offsets = [0, 64], sizes = [8, 32], strides = [1, 1]} : vector<8x96xf32> to vector<8x32xf32>
    %294 = vector.extract_strided_slice %284 {offsets = [0, 96], sizes = [8, 32], strides = [1, 1]} : vector<8x128xf32> to vector<8x32xf32>
    %295 = math.tanh %294 : vector<8x32xf32>
    %296 = arith.mulf %292, %273 : vector<8x32xf32>
    %297 = arith.mulf %291, %295 : vector<8x32xf32>
    %298 = arith.addf %296, %297 : vector<8x32xf32>
    %299 = math.tanh %298 : vector<8x32xf32>
    %300 = arith.mulf %293, %299 : vector<8x32xf32>
    %301 = arith.index_cast %279 : i32 to index
    %c0_88 = arith.constant 0 : index
    %302 = vector.load %arg9[%301, %c0_88] : memref<64x32xf32, #tpu.memory_space<vmem>>, vector<8x32xf32>
    tpu.vector_store %arg9[%301, %c0_88], %300 {strides = array<i32>} : memref<64x32xf32, #tpu.memory_space<vmem>>, vector<8x32xf32>,
    %c3_i32_89 = arith.constant 3 : i32
    %c8_i32_90 = arith.constant 8 : i32
    %303 = arith.muli %c3_i32_89, %c8_i32_90 : i32
    %304 = tpu.assume_multiple %303, 8 : i32
    %305 = arith.index_cast %304 : i32 to index
    %c0_91 = arith.constant 0 : index
    %306 = vector.load %arg10[%305, %c0_91] : memref<64x128xf32, #tpu.memory_space<vmem>>, vector<8x128xf32>
    %307 = arith.truncf %300 : vector<8x32xf32> to vector<8x32xbf16>
    %cst_92 = arith.constant dense<0.000000e+00> : vector<8x128xf32>
    %308 = tpu.matmul %307, %222, %cst_92 {dimension_numbers = #tpu.dot_dimension_numbers<[1], [0], [0], [1], [0, 0, 1, 1], [], []>} : vector<8x32xbf16>, vector<32x128xbf16>, vector<8x128xf32> -> vector<8x128xf32>
    %309 = arith.addf %306, %308 : vector<8x128xf32>
    %310 = vector.extract_strided_slice %309 {offsets = [0, 0], sizes = [8, 96], strides = [1, 1]} : vector<8x128xf32> to vector<8x96xf32>
    %311 = arith.negf %310 : vector<8x96xf32>
    %312 = math.exp %311 : vector<8x96xf32>
    %cst_93 = arith.constant 1.000000e+00 : f32
    %313 = vector.broadcast %cst_93 : f32 to vector<8x96xf32>
    %314 = arith.addf %313, %312 : vector<8x96xf32>
    %315 = arith.divf %313, %314 : vector<8x96xf32>
    %316 = vector.extract_strided_slice %315 {offsets = [0, 0], sizes = [8, 32], strides = [1, 1]} : vector<8x96xf32> to vector<8x32xf32>
    %317 = vector.extract_strided_slice %315 {offsets = [0, 32], sizes = [8, 32], strides = [1, 1]} : vector<8x96xf32> to vector<8x32xf32>
    %318 = vector.extract_strided_slice %315 {offsets = [0, 64], sizes = [8, 32], strides = [1, 1]} : vector<8x96xf32> to vector<8x32xf32>
    %319 = vector.extract_strided_slice %309 {offsets = [0, 96], sizes = [8, 32], strides = [1, 1]} : vector<8x128xf32> to vector<8x32xf32>
    %320 = math.tanh %319 : vector<8x32xf32>
    %321 = arith.mulf %317, %298 : vector<8x32xf32>
    %322 = arith.mulf %316, %320 : vector<8x32xf32>
    %323 = arith.addf %321, %322 : vector<8x32xf32>
    %324 = math.tanh %323 : vector<8x32xf32>
    %325 = arith.mulf %318, %324 : vector<8x32xf32>
    %326 = arith.index_cast %304 : i32 to index
    %c0_94 = arith.constant 0 : index
    %327 = vector.load %arg9[%326, %c0_94] : memref<64x32xf32, #tpu.memory_space<vmem>>, vector<8x32xf32>
    tpu.vector_store %arg9[%326, %c0_94], %325 {strides = array<i32>} : memref<64x32xf32, #tpu.memory_space<vmem>>, vector<8x32xf32>,
    %c4_i32_95 = arith.constant 4 : i32
    %c8_i32_96 = arith.constant 8 : i32
    %328 = arith.muli %c4_i32_95, %c8_i32_96 : i32
    %329 = tpu.assume_multiple %328, 8 : i32
    %330 = arith.index_cast %329 : i32 to index
    %c0_97 = arith.constant 0 : index
    %331 = vector.load %arg10[%330, %c0_97] : memref<64x128xf32, #tpu.memory_space<vmem>>, vector<8x128xf32>
    %332 = arith.truncf %325 : vector<8x32xf32> to vector<8x32xbf16>
    %cst_98 = arith.constant dense<0.000000e+00> : vector<8x128xf32>
    %333 = tpu.matmul %332, %222, %cst_98 {dimension_numbers = #tpu.dot_dimension_numbers<[1], [0], [0], [1], [0, 0, 1, 1], [], []>} : vector<8x32xbf16>, vector<32x128xbf16>, vector<8x128xf32> -> vector<8x128xf32>
    %334 = arith.addf %331, %333 : vector<8x128xf32>
    %335 = vector.extract_strided_slice %334 {offsets = [0, 0], sizes = [8, 96], strides = [1, 1]} : vector<8x128xf32> to vector<8x96xf32>
    %336 = arith.negf %335 : vector<8x96xf32>
    %337 = math.exp %336 : vector<8x96xf32>
    %cst_99 = arith.constant 1.000000e+00 : f32
    %338 = vector.broadcast %cst_99 : f32 to vector<8x96xf32>
    %339 = arith.addf %338, %337 : vector<8x96xf32>
    %340 = arith.divf %338, %339 : vector<8x96xf32>
    %341 = vector.extract_strided_slice %340 {offsets = [0, 0], sizes = [8, 32], strides = [1, 1]} : vector<8x96xf32> to vector<8x32xf32>
    %342 = vector.extract_strided_slice %340 {offsets = [0, 32], sizes = [8, 32], strides = [1, 1]} : vector<8x96xf32> to vector<8x32xf32>
    %343 = vector.extract_strided_slice %340 {offsets = [0, 64], sizes = [8, 32], strides = [1, 1]} : vector<8x96xf32> to vector<8x32xf32>
    %344 = vector.extract_strided_slice %334 {offsets = [0, 96], sizes = [8, 32], strides = [1, 1]} : vector<8x128xf32> to vector<8x32xf32>
    %345 = math.tanh %344 : vector<8x32xf32>
    %346 = arith.mulf %342, %323 : vector<8x32xf32>
    %347 = arith.mulf %341, %345 : vector<8x32xf32>
    %348 = arith.addf %346, %347 : vector<8x32xf32>
    %349 = math.tanh %348 : vector<8x32xf32>
    %350 = arith.mulf %343, %349 : vector<8x32xf32>
    %351 = arith.index_cast %329 : i32 to index
    %c0_100 = arith.constant 0 : index
    %352 = vector.load %arg9[%351, %c0_100] : memref<64x32xf32, #tpu.memory_space<vmem>>, vector<8x32xf32>
    tpu.vector_store %arg9[%351, %c0_100], %350 {strides = array<i32>} : memref<64x32xf32, #tpu.memory_space<vmem>>, vector<8x32xf32>,
    %c5_i32_101 = arith.constant 5 : i32
    %c8_i32_102 = arith.constant 8 : i32
    %353 = arith.muli %c5_i32_101, %c8_i32_102 : i32
    %354 = tpu.assume_multiple %353, 8 : i32
    %355 = arith.index_cast %354 : i32 to index
    %c0_103 = arith.constant 0 : index
    %356 = vector.load %arg10[%355, %c0_103] : memref<64x128xf32, #tpu.memory_space<vmem>>, vector<8x128xf32>
    %357 = arith.truncf %350 : vector<8x32xf32> to vector<8x32xbf16>
    %cst_104 = arith.constant dense<0.000000e+00> : vector<8x128xf32>
    %358 = tpu.matmul %357, %222, %cst_104 {dimension_numbers = #tpu.dot_dimension_numbers<[1], [0], [0], [1], [0, 0, 1, 1], [], []>} : vector<8x32xbf16>, vector<32x128xbf16>, vector<8x128xf32> -> vector<8x128xf32>
    %359 = arith.addf %356, %358 : vector<8x128xf32>
    %360 = vector.extract_strided_slice %359 {offsets = [0, 0], sizes = [8, 96], strides = [1, 1]} : vector<8x128xf32> to vector<8x96xf32>
    %361 = arith.negf %360 : vector<8x96xf32>
    %362 = math.exp %361 : vector<8x96xf32>
    %cst_105 = arith.constant 1.000000e+00 : f32
    %363 = vector.broadcast %cst_105 : f32 to vector<8x96xf32>
    %364 = arith.addf %363, %362 : vector<8x96xf32>
    %365 = arith.divf %363, %364 : vector<8x96xf32>
    %366 = vector.extract_strided_slice %365 {offsets = [0, 0], sizes = [8, 32], strides = [1, 1]} : vector<8x96xf32> to vector<8x32xf32>
    %367 = vector.extract_strided_slice %365 {offsets = [0, 32], sizes = [8, 32], strides = [1, 1]} : vector<8x96xf32> to vector<8x32xf32>
    %368 = vector.extract_strided_slice %365 {offsets = [0, 64], sizes = [8, 32], strides = [1, 1]} : vector<8x96xf32> to vector<8x32xf32>
    %369 = vector.extract_strided_slice %359 {offsets = [0, 96], sizes = [8, 32], strides = [1, 1]} : vector<8x128xf32> to vector<8x32xf32>
    %370 = math.tanh %369 : vector<8x32xf32>
    %371 = arith.mulf %367, %348 : vector<8x32xf32>
    %372 = arith.mulf %366, %370 : vector<8x32xf32>
    %373 = arith.addf %371, %372 : vector<8x32xf32>
    %374 = math.tanh %373 : vector<8x32xf32>
    %375 = arith.mulf %368, %374 : vector<8x32xf32>
    %376 = arith.index_cast %354 : i32 to index
    %c0_106 = arith.constant 0 : index
    %377 = vector.load %arg9[%376, %c0_106] : memref<64x32xf32, #tpu.memory_space<vmem>>, vector<8x32xf32>
    tpu.vector_store %arg9[%376, %c0_106], %375 {strides = array<i32>} : memref<64x32xf32, #tpu.memory_space<vmem>>, vector<8x32xf32>,
    %c6_i32_107 = arith.constant 6 : i32
    %c8_i32_108 = arith.constant 8 : i32
    %378 = arith.muli %c6_i32_107, %c8_i32_108 : i32
    %379 = tpu.assume_multiple %378, 8 : i32
    %380 = arith.index_cast %379 : i32 to index
    %c0_109 = arith.constant 0 : index
    %381 = vector.load %arg10[%380, %c0_109] : memref<64x128xf32, #tpu.memory_space<vmem>>, vector<8x128xf32>
    %382 = arith.truncf %375 : vector<8x32xf32> to vector<8x32xbf16>
    %cst_110 = arith.constant dense<0.000000e+00> : vector<8x128xf32>
    %383 = tpu.matmul %382, %222, %cst_110 {dimension_numbers = #tpu.dot_dimension_numbers<[1], [0], [0], [1], [0, 0, 1, 1], [], []>} : vector<8x32xbf16>, vector<32x128xbf16>, vector<8x128xf32> -> vector<8x128xf32>
    %384 = arith.addf %381, %383 : vector<8x128xf32>
    %385 = vector.extract_strided_slice %384 {offsets = [0, 0], sizes = [8, 96], strides = [1, 1]} : vector<8x128xf32> to vector<8x96xf32>
    %386 = arith.negf %385 : vector<8x96xf32>
    %387 = math.exp %386 : vector<8x96xf32>
    %cst_111 = arith.constant 1.000000e+00 : f32
    %388 = vector.broadcast %cst_111 : f32 to vector<8x96xf32>
    %389 = arith.addf %388, %387 : vector<8x96xf32>
    %390 = arith.divf %388, %389 : vector<8x96xf32>
    %391 = vector.extract_strided_slice %390 {offsets = [0, 0], sizes = [8, 32], strides = [1, 1]} : vector<8x96xf32> to vector<8x32xf32>
    %392 = vector.extract_strided_slice %390 {offsets = [0, 32], sizes = [8, 32], strides = [1, 1]} : vector<8x96xf32> to vector<8x32xf32>
    %393 = vector.extract_strided_slice %390 {offsets = [0, 64], sizes = [8, 32], strides = [1, 1]} : vector<8x96xf32> to vector<8x32xf32>
    %394 = vector.extract_strided_slice %384 {offsets = [0, 96], sizes = [8, 32], strides = [1, 1]} : vector<8x128xf32> to vector<8x32xf32>
    %395 = math.tanh %394 : vector<8x32xf32>
    %396 = arith.mulf %392, %373 : vector<8x32xf32>
    %397 = arith.mulf %391, %395 : vector<8x32xf32>
    %398 = arith.addf %396, %397 : vector<8x32xf32>
    %399 = math.tanh %398 : vector<8x32xf32>
    %400 = arith.mulf %393, %399 : vector<8x32xf32>
    %401 = arith.index_cast %379 : i32 to index
    %c0_112 = arith.constant 0 : index
    %402 = vector.load %arg9[%401, %c0_112] : memref<64x32xf32, #tpu.memory_space<vmem>>, vector<8x32xf32>
    tpu.vector_store %arg9[%401, %c0_112], %400 {strides = array<i32>} : memref<64x32xf32, #tpu.memory_space<vmem>>, vector<8x32xf32>,
    %c7_i32_113 = arith.constant 7 : i32
    %c8_i32_114 = arith.constant 8 : i32
    %403 = arith.muli %c7_i32_113, %c8_i32_114 : i32
    %404 = tpu.assume_multiple %403, 8 : i32
    %405 = arith.index_cast %404 : i32 to index
    %c0_115 = arith.constant 0 : index
    %406 = vector.load %arg10[%405, %c0_115] : memref<64x128xf32, #tpu.memory_space<vmem>>, vector<8x128xf32>
    %407 = arith.truncf %400 : vector<8x32xf32> to vector<8x32xbf16>
    %cst_116 = arith.constant dense<0.000000e+00> : vector<8x128xf32>
    %408 = tpu.matmul %407, %222, %cst_116 {dimension_numbers = #tpu.dot_dimension_numbers<[1], [0], [0], [1], [0, 0, 1, 1], [], []>} : vector<8x32xbf16>, vector<32x128xbf16>, vector<8x128xf32> -> vector<8x128xf32>
    %409 = arith.addf %406, %408 : vector<8x128xf32>
    %410 = vector.extract_strided_slice %409 {offsets = [0, 0], sizes = [8, 96], strides = [1, 1]} : vector<8x128xf32> to vector<8x96xf32>
    %411 = arith.negf %410 : vector<8x96xf32>
    %412 = math.exp %411 : vector<8x96xf32>
    %cst_117 = arith.constant 1.000000e+00 : f32
    %413 = vector.broadcast %cst_117 : f32 to vector<8x96xf32>
    %414 = arith.addf %413, %412 : vector<8x96xf32>
    %415 = arith.divf %413, %414 : vector<8x96xf32>
    %416 = vector.extract_strided_slice %415 {offsets = [0, 0], sizes = [8, 32], strides = [1, 1]} : vector<8x96xf32> to vector<8x32xf32>
    %417 = vector.extract_strided_slice %415 {offsets = [0, 32], sizes = [8, 32], strides = [1, 1]} : vector<8x96xf32> to vector<8x32xf32>
    %418 = vector.extract_strided_slice %415 {offsets = [0, 64], sizes = [8, 32], strides = [1, 1]} : vector<8x96xf32> to vector<8x32xf32>
    %419 = vector.extract_strided_slice %409 {offsets = [0, 96], sizes = [8, 32], strides = [1, 1]} : vector<8x128xf32> to vector<8x32xf32>
    %420 = math.tanh %419 : vector<8x32xf32>
    %421 = arith.mulf %417, %398 : vector<8x32xf32>
    %422 = arith.mulf %416, %420 : vector<8x32xf32>
    %423 = arith.addf %421, %422 : vector<8x32xf32>
    %424 = math.tanh %423 : vector<8x32xf32>
    %425 = arith.mulf %418, %424 : vector<8x32xf32>
    %426 = arith.index_cast %404 : i32 to index
    %c0_118 = arith.constant 0 : index
    %427 = vector.load %arg9[%426, %c0_118] : memref<64x32xf32, #tpu.memory_space<vmem>>, vector<8x32xf32>
    tpu.vector_store %arg9[%426, %c0_118], %425 {strides = array<i32>} : memref<64x32xf32, #tpu.memory_space<vmem>>, vector<8x32xf32>,
    %c8_i32_119 = arith.constant 8 : i32
    %c1_120 = arith.constant 1 : index
    %c0_121 = arith.constant 0 : index
    %c0_122 = arith.constant 0 : index
    %428 = vector.load %arg11[%c1_120, %c0_121, %c0_122] : memref<2x8x32xf32, #tpu.memory_space<vmem>>, vector<1x8x32xf32>
    %429 = vector.shape_cast %428 : vector<1x8x32xf32> to vector<8x32xf32>
    %430 = vector.shape_cast %425 : vector<8x32xf32> to vector<1x8x32xf32>
    tpu.vector_store %arg11[%c1_120, %c0_121, %c0_122], %430 {strides = array<i32>} : memref<2x8x32xf32, #tpu.memory_space<vmem>>, vector<1x8x32xf32>,
    %c1_123 = arith.constant 1 : index
    %c0_124 = arith.constant 0 : index
    %c0_125 = arith.constant 0 : index
    %431 = vector.load %arg12[%c1_123, %c0_124, %c0_125] : memref<2x8x32xf32, #tpu.memory_space<vmem>>, vector<1x8x32xf32>
    %432 = vector.shape_cast %431 : vector<1x8x32xf32> to vector<8x32xf32>
    %433 = vector.shape_cast %423 : vector<8x32xf32> to vector<1x8x32xf32>
    tpu.vector_store %arg12[%c1_123, %c0_124, %c0_125], %433 {strides = array<i32>} : memref<2x8x32xf32, #tpu.memory_space<vmem>>, vector<1x8x32xf32>,
    %c0_126 = arith.constant 0 : index
    %c0_127 = arith.constant 0 : index
    %c0_128 = arith.constant 0 : index
    %434 = vector.load %arg11[%c0_126, %c0_127, %c0_128] : memref<2x8x32xf32, #tpu.memory_space<vmem>>, vector<1x8x32xf32>
    %435 = vector.shape_cast %434 : vector<1x8x32xf32> to vector<8x32xf32>
    %c0_129 = arith.constant 0 : index
    %c0_130 = arith.constant 0 : index
    %c0_131 = arith.constant 0 : index
    %436 = vector.load %arg12[%c0_129, %c0_130, %c0_131] : memref<2x8x32xf32, #tpu.memory_space<vmem>>, vector<1x8x32xf32>
    %437 = vector.shape_cast %436 : vector<1x8x32xf32> to vector<8x32xf32>
    %c1_132 = arith.constant 1 : index
    %c0_133 = arith.constant 0 : index
    %c0_134 = arith.constant 0 : index
    %438 = vector.load %arg2[%c1_132, %c0_133, %c0_134] : memref<3x32x128xf32, #tpu.memory_space<vmem>>, vector<1x32x128xf32>
    %439 = vector.shape_cast %438 : vector<1x32x128xf32> to vector<32x128xf32>
    %c2 = arith.constant 2 : index
    %c0_135 = arith.constant 0 : index
    %c0_136 = arith.constant 0 : index
    %440 = vector.load %arg4[%c2, %c0_135, %c0_136] : memref<4x1x128xf32, #tpu.memory_space<vmem>>, vector<1x1x128xf32>
    %441 = vector.shape_cast %440 : vector<1x1x128xf32> to vector<1x128xf32>
    %c2_137 = arith.constant 2 : index
    %c0_138 = arith.constant 0 : index
    %c0_139 = arith.constant 0 : index
    %442 = vector.load %arg3[%c2_137, %c0_138, %c0_139] : memref<4x32x128xbf16, #tpu.memory_space<vmem>>, vector<1x32x128xbf16>
    %443 = vector.shape_cast %442 : vector<1x32x128xbf16> to vector<32x128xbf16>
    %c0_140 = arith.constant 0 : index
    %c0_141 = arith.constant 0 : index
    %444 = vector.load %arg9[%c0_140, %c0_141] : memref<64x32xf32, #tpu.memory_space<vmem>>, vector<64x32xf32>
    %cst_142 = arith.constant dense<0.000000e+00> : vector<64x128xf32>
    %445 = tpu.matmul %444, %439, %cst_142 {dimension_numbers = #tpu.dot_dimension_numbers<[1], [0], [0], [1], [0, 0, 1, 1], [], []>} : vector<64x32xf32>, vector<32x128xf32>, vector<64x128xf32> -> vector<64x128xf32>
    %446 = vector.broadcast %441 : vector<1x128xf32> to vector<64x128xf32>
    %447 = arith.addf %445, %446 : vector<64x128xf32>
    %c0_143 = arith.constant 0 : index
    %c0_144 = arith.constant 0 : index
    %448 = vector.load %arg10[%c0_143, %c0_144] : memref<64x128xf32, #tpu.memory_space<vmem>>, vector<64x128xf32>
    tpu.vector_store %arg10[%c0_143, %c0_144], %447 {strides = array<i32>} : memref<64x128xf32, #tpu.memory_space<vmem>>, vector<64x128xf32>,
    %c0_i32_145 = arith.constant 0 : i32
    %c8_i32_146 = arith.constant 8 : i32
    %449 = arith.muli %c0_i32_145, %c8_i32_146 : i32
    %450 = tpu.assume_multiple %449, 8 : i32
    %451 = arith.index_cast %450 : i32 to index
    %c0_147 = arith.constant 0 : index
    %452 = vector.load %arg10[%451, %c0_147] : memref<64x128xf32, #tpu.memory_space<vmem>>, vector<8x128xf32>
    %453 = arith.truncf %435 : vector<8x32xf32> to vector<8x32xbf16>
    %cst_148 = arith.constant dense<0.000000e+00> : vector<8x128xf32>
    %454 = tpu.matmul %453, %443, %cst_148 {dimension_numbers = #tpu.dot_dimension_numbers<[1], [0], [0], [1], [0, 0, 1, 1], [], []>} : vector<8x32xbf16>, vector<32x128xbf16>, vector<8x128xf32> -> vector<8x128xf32>
    %455 = arith.addf %452, %454 : vector<8x128xf32>
    %456 = vector.extract_strided_slice %455 {offsets = [0, 0], sizes = [8, 96], strides = [1, 1]} : vector<8x128xf32> to vector<8x96xf32>
    %457 = arith.negf %456 : vector<8x96xf32>
    %458 = math.exp %457 : vector<8x96xf32>
    %cst_149 = arith.constant 1.000000e+00 : f32
    %459 = vector.broadcast %cst_149 : f32 to vector<8x96xf32>
    %460 = arith.addf %459, %458 : vector<8x96xf32>
    %461 = arith.divf %459, %460 : vector<8x96xf32>
    %462 = vector.extract_strided_slice %461 {offsets = [0, 0], sizes = [8, 32], strides = [1, 1]} : vector<8x96xf32> to vector<8x32xf32>
    %463 = vector.extract_strided_slice %461 {offsets = [0, 32], sizes = [8, 32], strides = [1, 1]} : vector<8x96xf32> to vector<8x32xf32>
    %464 = vector.extract_strided_slice %461 {offsets = [0, 64], sizes = [8, 32], strides = [1, 1]} : vector<8x96xf32> to vector<8x32xf32>
    %465 = vector.extract_strided_slice %455 {offsets = [0, 96], sizes = [8, 32], strides = [1, 1]} : vector<8x128xf32> to vector<8x32xf32>
    %466 = math.tanh %465 : vector<8x32xf32>
    %467 = arith.mulf %463, %437 : vector<8x32xf32>
    %468 = arith.mulf %462, %466 : vector<8x32xf32>
    %469 = arith.addf %467, %468 : vector<8x32xf32>
    %470 = math.tanh %469 : vector<8x32xf32>
    %471 = arith.mulf %464, %470 : vector<8x32xf32>
    %472 = arith.index_cast %450 : i32 to index
    %c0_150 = arith.constant 0 : index
    %473 = vector.load %arg8[%472, %c0_150] : memref<64x32xf32, #tpu.memory_space<vmem>>, vector<8x32xf32>
    tpu.vector_store %arg8[%472, %c0_150], %471 {strides = array<i32>} : memref<64x32xf32, #tpu.memory_space<vmem>>, vector<8x32xf32>,
    %c1_i32_151 = arith.constant 1 : i32
    %c8_i32_152 = arith.constant 8 : i32
    %474 = arith.muli %c1_i32_151, %c8_i32_152 : i32
    %475 = tpu.assume_multiple %474, 8 : i32
    %476 = arith.index_cast %475 : i32 to index
    %c0_153 = arith.constant 0 : index
    %477 = vector.load %arg10[%476, %c0_153] : memref<64x128xf32, #tpu.memory_space<vmem>>, vector<8x128xf32>
    %478 = arith.truncf %471 : vector<8x32xf32> to vector<8x32xbf16>
    %cst_154 = arith.constant dense<0.000000e+00> : vector<8x128xf32>
    %479 = tpu.matmul %478, %443, %cst_154 {dimension_numbers = #tpu.dot_dimension_numbers<[1], [0], [0], [1], [0, 0, 1, 1], [], []>} : vector<8x32xbf16>, vector<32x128xbf16>, vector<8x128xf32> -> vector<8x128xf32>
    %480 = arith.addf %477, %479 : vector<8x128xf32>
    %481 = vector.extract_strided_slice %480 {offsets = [0, 0], sizes = [8, 96], strides = [1, 1]} : vector<8x128xf32> to vector<8x96xf32>
    %482 = arith.negf %481 : vector<8x96xf32>
    %483 = math.exp %482 : vector<8x96xf32>
    %cst_155 = arith.constant 1.000000e+00 : f32
    %484 = vector.broadcast %cst_155 : f32 to vector<8x96xf32>
    %485 = arith.addf %484, %483 : vector<8x96xf32>
    %486 = arith.divf %484, %485 : vector<8x96xf32>
    %487 = vector.extract_strided_slice %486 {offsets = [0, 0], sizes = [8, 32], strides = [1, 1]} : vector<8x96xf32> to vector<8x32xf32>
    %488 = vector.extract_strided_slice %486 {offsets = [0, 32], sizes = [8, 32], strides = [1, 1]} : vector<8x96xf32> to vector<8x32xf32>
    %489 = vector.extract_strided_slice %486 {offsets = [0, 64], sizes = [8, 32], strides = [1, 1]} : vector<8x96xf32> to vector<8x32xf32>
    %490 = vector.extract_strided_slice %480 {offsets = [0, 96], sizes = [8, 32], strides = [1, 1]} : vector<8x128xf32> to vector<8x32xf32>
    %491 = math.tanh %490 : vector<8x32xf32>
    %492 = arith.mulf %488, %469 : vector<8x32xf32>
    %493 = arith.mulf %487, %491 : vector<8x32xf32>
    %494 = arith.addf %492, %493 : vector<8x32xf32>
    %495 = math.tanh %494 : vector<8x32xf32>
    %496 = arith.mulf %489, %495 : vector<8x32xf32>
    %497 = arith.index_cast %475 : i32 to index
    %c0_156 = arith.constant 0 : index
    %498 = vector.load %arg8[%497, %c0_156] : memref<64x32xf32, #tpu.memory_space<vmem>>, vector<8x32xf32>
    tpu.vector_store %arg8[%497, %c0_156], %496 {strides = array<i32>} : memref<64x32xf32, #tpu.memory_space<vmem>>, vector<8x32xf32>,
    %c2_i32_157 = arith.constant 2 : i32
    %c8_i32_158 = arith.constant 8 : i32
    %499 = arith.muli %c2_i32_157, %c8_i32_158 : i32
    %500 = tpu.assume_multiple %499, 8 : i32
    %501 = arith.index_cast %500 : i32 to index
    %c0_159 = arith.constant 0 : index
    %502 = vector.load %arg10[%501, %c0_159] : memref<64x128xf32, #tpu.memory_space<vmem>>, vector<8x128xf32>
    %503 = arith.truncf %496 : vector<8x32xf32> to vector<8x32xbf16>
    %cst_160 = arith.constant dense<0.000000e+00> : vector<8x128xf32>
    %504 = tpu.matmul %503, %443, %cst_160 {dimension_numbers = #tpu.dot_dimension_numbers<[1], [0], [0], [1], [0, 0, 1, 1], [], []>} : vector<8x32xbf16>, vector<32x128xbf16>, vector<8x128xf32> -> vector<8x128xf32>
    %505 = arith.addf %502, %504 : vector<8x128xf32>
    %506 = vector.extract_strided_slice %505 {offsets = [0, 0], sizes = [8, 96], strides = [1, 1]} : vector<8x128xf32> to vector<8x96xf32>
    %507 = arith.negf %506 : vector<8x96xf32>
    %508 = math.exp %507 : vector<8x96xf32>
    %cst_161 = arith.constant 1.000000e+00 : f32
    %509 = vector.broadcast %cst_161 : f32 to vector<8x96xf32>
    %510 = arith.addf %509, %508 : vector<8x96xf32>
    %511 = arith.divf %509, %510 : vector<8x96xf32>
    %512 = vector.extract_strided_slice %511 {offsets = [0, 0], sizes = [8, 32], strides = [1, 1]} : vector<8x96xf32> to vector<8x32xf32>
    %513 = vector.extract_strided_slice %511 {offsets = [0, 32], sizes = [8, 32], strides = [1, 1]} : vector<8x96xf32> to vector<8x32xf32>
    %514 = vector.extract_strided_slice %511 {offsets = [0, 64], sizes = [8, 32], strides = [1, 1]} : vector<8x96xf32> to vector<8x32xf32>
    %515 = vector.extract_strided_slice %505 {offsets = [0, 96], sizes = [8, 32], strides = [1, 1]} : vector<8x128xf32> to vector<8x32xf32>
    %516 = math.tanh %515 : vector<8x32xf32>
    %517 = arith.mulf %513, %494 : vector<8x32xf32>
    %518 = arith.mulf %512, %516 : vector<8x32xf32>
    %519 = arith.addf %517, %518 : vector<8x32xf32>
    %520 = math.tanh %519 : vector<8x32xf32>
    %521 = arith.mulf %514, %520 : vector<8x32xf32>
    %522 = arith.index_cast %500 : i32 to index
    %c0_162 = arith.constant 0 : index
    %523 = vector.load %arg8[%522, %c0_162] : memref<64x32xf32, #tpu.memory_space<vmem>>, vector<8x32xf32>
    tpu.vector_store %arg8[%522, %c0_162], %521 {strides = array<i32>} : memref<64x32xf32, #tpu.memory_space<vmem>>, vector<8x32xf32>,
    %c3_i32_163 = arith.constant 3 : i32
    %c8_i32_164 = arith.constant 8 : i32
    %524 = arith.muli %c3_i32_163, %c8_i32_164 : i32
    %525 = tpu.assume_multiple %524, 8 : i32
    %526 = arith.index_cast %525 : i32 to index
    %c0_165 = arith.constant 0 : index
    %527 = vector.load %arg10[%526, %c0_165] : memref<64x128xf32, #tpu.memory_space<vmem>>, vector<8x128xf32>
    %528 = arith.truncf %521 : vector<8x32xf32> to vector<8x32xbf16>
    %cst_166 = arith.constant dense<0.000000e+00> : vector<8x128xf32>
    %529 = tpu.matmul %528, %443, %cst_166 {dimension_numbers = #tpu.dot_dimension_numbers<[1], [0], [0], [1], [0, 0, 1, 1], [], []>} : vector<8x32xbf16>, vector<32x128xbf16>, vector<8x128xf32> -> vector<8x128xf32>
    %530 = arith.addf %527, %529 : vector<8x128xf32>
    %531 = vector.extract_strided_slice %530 {offsets = [0, 0], sizes = [8, 96], strides = [1, 1]} : vector<8x128xf32> to vector<8x96xf32>
    %532 = arith.negf %531 : vector<8x96xf32>
    %533 = math.exp %532 : vector<8x96xf32>
    %cst_167 = arith.constant 1.000000e+00 : f32
    %534 = vector.broadcast %cst_167 : f32 to vector<8x96xf32>
    %535 = arith.addf %534, %533 : vector<8x96xf32>
    %536 = arith.divf %534, %535 : vector<8x96xf32>
    %537 = vector.extract_strided_slice %536 {offsets = [0, 0], sizes = [8, 32], strides = [1, 1]} : vector<8x96xf32> to vector<8x32xf32>
    %538 = vector.extract_strided_slice %536 {offsets = [0, 32], sizes = [8, 32], strides = [1, 1]} : vector<8x96xf32> to vector<8x32xf32>
    %539 = vector.extract_strided_slice %536 {offsets = [0, 64], sizes = [8, 32], strides = [1, 1]} : vector<8x96xf32> to vector<8x32xf32>
    %540 = vector.extract_strided_slice %530 {offsets = [0, 96], sizes = [8, 32], strides = [1, 1]} : vector<8x128xf32> to vector<8x32xf32>
    %541 = math.tanh %540 : vector<8x32xf32>
    %542 = arith.mulf %538, %519 : vector<8x32xf32>
    %543 = arith.mulf %537, %541 : vector<8x32xf32>
    %544 = arith.addf %542, %543 : vector<8x32xf32>
    %545 = math.tanh %544 : vector<8x32xf32>
    %546 = arith.mulf %539, %545 : vector<8x32xf32>
    %547 = arith.index_cast %525 : i32 to index
    %c0_168 = arith.constant 0 : index
    %548 = vector.load %arg8[%547, %c0_168] : memref<64x32xf32, #tpu.memory_space<vmem>>, vector<8x32xf32>
    tpu.vector_store %arg8[%547, %c0_168], %546 {strides = array<i32>} : memref<64x32xf32, #tpu.memory_space<vmem>>, vector<8x32xf32>,
    %c4_i32_169 = arith.constant 4 : i32
    %c8_i32_170 = arith.constant 8 : i32
    %549 = arith.muli %c4_i32_169, %c8_i32_170 : i32
    %550 = tpu.assume_multiple %549, 8 : i32
    %551 = arith.index_cast %550 : i32 to index
    %c0_171 = arith.constant 0 : index
    %552 = vector.load %arg10[%551, %c0_171] : memref<64x128xf32, #tpu.memory_space<vmem>>, vector<8x128xf32>
    %553 = arith.truncf %546 : vector<8x32xf32> to vector<8x32xbf16>
    %cst_172 = arith.constant dense<0.000000e+00> : vector<8x128xf32>
    %554 = tpu.matmul %553, %443, %cst_172 {dimension_numbers = #tpu.dot_dimension_numbers<[1], [0], [0], [1], [0, 0, 1, 1], [], []>} : vector<8x32xbf16>, vector<32x128xbf16>, vector<8x128xf32> -> vector<8x128xf32>
    %555 = arith.addf %552, %554 : vector<8x128xf32>
    %556 = vector.extract_strided_slice %555 {offsets = [0, 0], sizes = [8, 96], strides = [1, 1]} : vector<8x128xf32> to vector<8x96xf32>
    %557 = arith.negf %556 : vector<8x96xf32>
    %558 = math.exp %557 : vector<8x96xf32>
    %cst_173 = arith.constant 1.000000e+00 : f32
    %559 = vector.broadcast %cst_173 : f32 to vector<8x96xf32>
    %560 = arith.addf %559, %558 : vector<8x96xf32>
    %561 = arith.divf %559, %560 : vector<8x96xf32>
    %562 = vector.extract_strided_slice %561 {offsets = [0, 0], sizes = [8, 32], strides = [1, 1]} : vector<8x96xf32> to vector<8x32xf32>
    %563 = vector.extract_strided_slice %561 {offsets = [0, 32], sizes = [8, 32], strides = [1, 1]} : vector<8x96xf32> to vector<8x32xf32>
    %564 = vector.extract_strided_slice %561 {offsets = [0, 64], sizes = [8, 32], strides = [1, 1]} : vector<8x96xf32> to vector<8x32xf32>
    %565 = vector.extract_strided_slice %555 {offsets = [0, 96], sizes = [8, 32], strides = [1, 1]} : vector<8x128xf32> to vector<8x32xf32>
    %566 = math.tanh %565 : vector<8x32xf32>
    %567 = arith.mulf %563, %544 : vector<8x32xf32>
    %568 = arith.mulf %562, %566 : vector<8x32xf32>
    %569 = arith.addf %567, %568 : vector<8x32xf32>
    %570 = math.tanh %569 : vector<8x32xf32>
    %571 = arith.mulf %564, %570 : vector<8x32xf32>
    %572 = arith.index_cast %550 : i32 to index
    %c0_174 = arith.constant 0 : index
    %573 = vector.load %arg8[%572, %c0_174] : memref<64x32xf32, #tpu.memory_space<vmem>>, vector<8x32xf32>
    tpu.vector_store %arg8[%572, %c0_174], %571 {strides = array<i32>} : memref<64x32xf32, #tpu.memory_space<vmem>>, vector<8x32xf32>,
    %c5_i32_175 = arith.constant 5 : i32
    %c8_i32_176 = arith.constant 8 : i32
    %574 = arith.muli %c5_i32_175, %c8_i32_176 : i32
    %575 = tpu.assume_multiple %574, 8 : i32
    %576 = arith.index_cast %575 : i32 to index
    %c0_177 = arith.constant 0 : index
    %577 = vector.load %arg10[%576, %c0_177] : memref<64x128xf32, #tpu.memory_space<vmem>>, vector<8x128xf32>
    %578 = arith.truncf %571 : vector<8x32xf32> to vector<8x32xbf16>
    %cst_178 = arith.constant dense<0.000000e+00> : vector<8x128xf32>
    %579 = tpu.matmul %578, %443, %cst_178 {dimension_numbers = #tpu.dot_dimension_numbers<[1], [0], [0], [1], [0, 0, 1, 1], [], []>} : vector<8x32xbf16>, vector<32x128xbf16>, vector<8x128xf32> -> vector<8x128xf32>
    %580 = arith.addf %577, %579 : vector<8x128xf32>
    %581 = vector.extract_strided_slice %580 {offsets = [0, 0], sizes = [8, 96], strides = [1, 1]} : vector<8x128xf32> to vector<8x96xf32>
    %582 = arith.negf %581 : vector<8x96xf32>
    %583 = math.exp %582 : vector<8x96xf32>
    %cst_179 = arith.constant 1.000000e+00 : f32
    %584 = vector.broadcast %cst_179 : f32 to vector<8x96xf32>
    %585 = arith.addf %584, %583 : vector<8x96xf32>
    %586 = arith.divf %584, %585 : vector<8x96xf32>
    %587 = vector.extract_strided_slice %586 {offsets = [0, 0], sizes = [8, 32], strides = [1, 1]} : vector<8x96xf32> to vector<8x32xf32>
    %588 = vector.extract_strided_slice %586 {offsets = [0, 32], sizes = [8, 32], strides = [1, 1]} : vector<8x96xf32> to vector<8x32xf32>
    %589 = vector.extract_strided_slice %586 {offsets = [0, 64], sizes = [8, 32], strides = [1, 1]} : vector<8x96xf32> to vector<8x32xf32>
    %590 = vector.extract_strided_slice %580 {offsets = [0, 96], sizes = [8, 32], strides = [1, 1]} : vector<8x128xf32> to vector<8x32xf32>
    %591 = math.tanh %590 : vector<8x32xf32>
    %592 = arith.mulf %588, %569 : vector<8x32xf32>
    %593 = arith.mulf %587, %591 : vector<8x32xf32>
    %594 = arith.addf %592, %593 : vector<8x32xf32>
    %595 = math.tanh %594 : vector<8x32xf32>
    %596 = arith.mulf %589, %595 : vector<8x32xf32>
    %597 = arith.index_cast %575 : i32 to index
    %c0_180 = arith.constant 0 : index
    %598 = vector.load %arg8[%597, %c0_180] : memref<64x32xf32, #tpu.memory_space<vmem>>, vector<8x32xf32>
    tpu.vector_store %arg8[%597, %c0_180], %596 {strides = array<i32>} : memref<64x32xf32, #tpu.memory_space<vmem>>, vector<8x32xf32>,
    %c6_i32_181 = arith.constant 6 : i32
    %c8_i32_182 = arith.constant 8 : i32
    %599 = arith.muli %c6_i32_181, %c8_i32_182 : i32
    %600 = tpu.assume_multiple %599, 8 : i32
    %601 = arith.index_cast %600 : i32 to index
    %c0_183 = arith.constant 0 : index
    %602 = vector.load %arg10[%601, %c0_183] : memref<64x128xf32, #tpu.memory_space<vmem>>, vector<8x128xf32>
    %603 = arith.truncf %596 : vector<8x32xf32> to vector<8x32xbf16>
    %cst_184 = arith.constant dense<0.000000e+00> : vector<8x128xf32>
    %604 = tpu.matmul %603, %443, %cst_184 {dimension_numbers = #tpu.dot_dimension_numbers<[1], [0], [0], [1], [0, 0, 1, 1], [], []>} : vector<8x32xbf16>, vector<32x128xbf16>, vector<8x128xf32> -> vector<8x128xf32>
    %605 = arith.addf %602, %604 : vector<8x128xf32>
    %606 = vector.extract_strided_slice %605 {offsets = [0, 0], sizes = [8, 96], strides = [1, 1]} : vector<8x128xf32> to vector<8x96xf32>
    %607 = arith.negf %606 : vector<8x96xf32>
    %608 = math.exp %607 : vector<8x96xf32>
    %cst_185 = arith.constant 1.000000e+00 : f32
    %609 = vector.broadcast %cst_185 : f32 to vector<8x96xf32>
    %610 = arith.addf %609, %608 : vector<8x96xf32>
    %611 = arith.divf %609, %610 : vector<8x96xf32>
    %612 = vector.extract_strided_slice %611 {offsets = [0, 0], sizes = [8, 32], strides = [1, 1]} : vector<8x96xf32> to vector<8x32xf32>
    %613 = vector.extract_strided_slice %611 {offsets = [0, 32], sizes = [8, 32], strides = [1, 1]} : vector<8x96xf32> to vector<8x32xf32>
    %614 = vector.extract_strided_slice %611 {offsets = [0, 64], sizes = [8, 32], strides = [1, 1]} : vector<8x96xf32> to vector<8x32xf32>
    %615 = vector.extract_strided_slice %605 {offsets = [0, 96], sizes = [8, 32], strides = [1, 1]} : vector<8x128xf32> to vector<8x32xf32>
    %616 = math.tanh %615 : vector<8x32xf32>
    %617 = arith.mulf %613, %594 : vector<8x32xf32>
    %618 = arith.mulf %612, %616 : vector<8x32xf32>
    %619 = arith.addf %617, %618 : vector<8x32xf32>
    %620 = math.tanh %619 : vector<8x32xf32>
    %621 = arith.mulf %614, %620 : vector<8x32xf32>
    %622 = arith.index_cast %600 : i32 to index
    %c0_186 = arith.constant 0 : index
    %623 = vector.load %arg8[%622, %c0_186] : memref<64x32xf32, #tpu.memory_space<vmem>>, vector<8x32xf32>
    tpu.vector_store %arg8[%622, %c0_186], %621 {strides = array<i32>} : memref<64x32xf32, #tpu.memory_space<vmem>>, vector<8x32xf32>,
    %c7_i32_187 = arith.constant 7 : i32
    %c8_i32_188 = arith.constant 8 : i32
    %624 = arith.muli %c7_i32_187, %c8_i32_188 : i32
    %625 = tpu.assume_multiple %624, 8 : i32
    %626 = arith.index_cast %625 : i32 to index
    %c0_189 = arith.constant 0 : index
    %627 = vector.load %arg10[%626, %c0_189] : memref<64x128xf32, #tpu.memory_space<vmem>>, vector<8x128xf32>
    %628 = arith.truncf %621 : vector<8x32xf32> to vector<8x32xbf16>
    %cst_190 = arith.constant dense<0.000000e+00> : vector<8x128xf32>
    %629 = tpu.matmul %628, %443, %cst_190 {dimension_numbers = #tpu.dot_dimension_numbers<[1], [0], [0], [1], [0, 0, 1, 1], [], []>} : vector<8x32xbf16>, vector<32x128xbf16>, vector<8x128xf32> -> vector<8x128xf32>
    %630 = arith.addf %627, %629 : vector<8x128xf32>
    %631 = vector.extract_strided_slice %630 {offsets = [0, 0], sizes = [8, 96], strides = [1, 1]} : vector<8x128xf32> to vector<8x96xf32>
    %632 = arith.negf %631 : vector<8x96xf32>
    %633 = math.exp %632 : vector<8x96xf32>
    %cst_191 = arith.constant 1.000000e+00 : f32
    %634 = vector.broadcast %cst_191 : f32 to vector<8x96xf32>
    %635 = arith.addf %634, %633 : vector<8x96xf32>
    %636 = arith.divf %634, %635 : vector<8x96xf32>
    %637 = vector.extract_strided_slice %636 {offsets = [0, 0], sizes = [8, 32], strides = [1, 1]} : vector<8x96xf32> to vector<8x32xf32>
    %638 = vector.extract_strided_slice %636 {offsets = [0, 32], sizes = [8, 32], strides = [1, 1]} : vector<8x96xf32> to vector<8x32xf32>
    %639 = vector.extract_strided_slice %636 {offsets = [0, 64], sizes = [8, 32], strides = [1, 1]} : vector<8x96xf32> to vector<8x32xf32>
    %640 = vector.extract_strided_slice %630 {offsets = [0, 96], sizes = [8, 32], strides = [1, 1]} : vector<8x128xf32> to vector<8x32xf32>
    %641 = math.tanh %640 : vector<8x32xf32>
    %642 = arith.mulf %638, %619 : vector<8x32xf32>
    %643 = arith.mulf %637, %641 : vector<8x32xf32>
    %644 = arith.addf %642, %643 : vector<8x32xf32>
    %645 = math.tanh %644 : vector<8x32xf32>
    %646 = arith.mulf %639, %645 : vector<8x32xf32>
    %647 = arith.index_cast %625 : i32 to index
    %c0_192 = arith.constant 0 : index
    %648 = vector.load %arg8[%647, %c0_192] : memref<64x32xf32, #tpu.memory_space<vmem>>, vector<8x32xf32>
    tpu.vector_store %arg8[%647, %c0_192], %646 {strides = array<i32>} : memref<64x32xf32, #tpu.memory_space<vmem>>, vector<8x32xf32>,
    %c8_i32_193 = arith.constant 8 : i32
    %c1_194 = arith.constant 1 : index
    %c0_195 = arith.constant 0 : index
    %c0_196 = arith.constant 0 : index
    %649 = vector.load %arg11[%c1_194, %c0_195, %c0_196] : memref<2x8x32xf32, #tpu.memory_space<vmem>>, vector<1x8x32xf32>
    %650 = vector.shape_cast %649 : vector<1x8x32xf32> to vector<8x32xf32>
    %c1_197 = arith.constant 1 : index
    %c0_198 = arith.constant 0 : index
    %c0_199 = arith.constant 0 : index
    %651 = vector.load %arg12[%c1_197, %c0_198, %c0_199] : memref<2x8x32xf32, #tpu.memory_space<vmem>>, vector<1x8x32xf32>
    %652 = vector.shape_cast %651 : vector<1x8x32xf32> to vector<8x32xf32>
    %c2_200 = arith.constant 2 : index
    %c0_201 = arith.constant 0 : index
    %c0_202 = arith.constant 0 : index
    %653 = vector.load %arg2[%c2_200, %c0_201, %c0_202] : memref<3x32x128xf32, #tpu.memory_space<vmem>>, vector<1x32x128xf32>
    %654 = vector.shape_cast %653 : vector<1x32x128xf32> to vector<32x128xf32>
    %c3 = arith.constant 3 : index
    %c0_203 = arith.constant 0 : index
    %c0_204 = arith.constant 0 : index
    %655 = vector.load %arg4[%c3, %c0_203, %c0_204] : memref<4x1x128xf32, #tpu.memory_space<vmem>>, vector<1x1x128xf32>
    %656 = vector.shape_cast %655 : vector<1x1x128xf32> to vector<1x128xf32>
    %c3_205 = arith.constant 3 : index
    %c0_206 = arith.constant 0 : index
    %c0_207 = arith.constant 0 : index
    %657 = vector.load %arg3[%c3_205, %c0_206, %c0_207] : memref<4x32x128xbf16, #tpu.memory_space<vmem>>, vector<1x32x128xbf16>
    %658 = vector.shape_cast %657 : vector<1x32x128xbf16> to vector<32x128xbf16>
    %c0_208 = arith.constant 0 : index
    %c0_209 = arith.constant 0 : index
    %659 = vector.load %arg8[%c0_208, %c0_209] : memref<64x32xf32, #tpu.memory_space<vmem>>, vector<64x32xf32>
    %cst_210 = arith.constant dense<0.000000e+00> : vector<64x128xf32>
    %660 = tpu.matmul %659, %654, %cst_210 {dimension_numbers = #tpu.dot_dimension_numbers<[1], [0], [0], [1], [0, 0, 1, 1], [], []>} : vector<64x32xf32>, vector<32x128xf32>, vector<64x128xf32> -> vector<64x128xf32>
    %661 = vector.broadcast %656 : vector<1x128xf32> to vector<64x128xf32>
    %662 = arith.addf %660, %661 : vector<64x128xf32>
    %c0_211 = arith.constant 0 : index
    %c0_212 = arith.constant 0 : index
    %663 = vector.load %arg10[%c0_211, %c0_212] : memref<64x128xf32, #tpu.memory_space<vmem>>, vector<64x128xf32>
    tpu.vector_store %arg10[%c0_211, %c0_212], %662 {strides = array<i32>} : memref<64x128xf32, #tpu.memory_space<vmem>>, vector<64x128xf32>,
    %cst_213 = arith.constant 0.000000e+00 : f32
    %664 = vector.broadcast %cst_213 : f32 to vector<8x128xf32>
    %c0_i32_214 = arith.constant 0 : i32
    %c8_i32_215 = arith.constant 8 : i32
    %665 = arith.muli %c0_i32_214, %c8_i32_215 : i32
    %666 = tpu.assume_multiple %665, 8 : i32
    %667 = arith.index_cast %666 : i32 to index
    %c0_216 = arith.constant 0 : index
    %668 = vector.load %arg10[%667, %c0_216] : memref<64x128xf32, #tpu.memory_space<vmem>>, vector<8x128xf32>
    %669 = arith.truncf %650 : vector<8x32xf32> to vector<8x32xbf16>
    %cst_217 = arith.constant dense<0.000000e+00> : vector<8x128xf32>
    %670 = tpu.matmul %669, %658, %cst_217 {dimension_numbers = #tpu.dot_dimension_numbers<[1], [0], [0], [1], [0, 0, 1, 1], [], []>} : vector<8x32xbf16>, vector<32x128xbf16>, vector<8x128xf32> -> vector<8x128xf32>
    %671 = arith.addf %668, %670 : vector<8x128xf32>
    %672 = vector.extract_strided_slice %671 {offsets = [0, 0], sizes = [8, 96], strides = [1, 1]} : vector<8x128xf32> to vector<8x96xf32>
    %673 = arith.negf %672 : vector<8x96xf32>
    %674 = math.exp %673 : vector<8x96xf32>
    %cst_218 = arith.constant 1.000000e+00 : f32
    %675 = vector.broadcast %cst_218 : f32 to vector<8x96xf32>
    %676 = arith.addf %675, %674 : vector<8x96xf32>
    %677 = arith.divf %675, %676 : vector<8x96xf32>
    %678 = vector.extract_strided_slice %677 {offsets = [0, 0], sizes = [8, 32], strides = [1, 1]} : vector<8x96xf32> to vector<8x32xf32>
    %679 = vector.extract_strided_slice %677 {offsets = [0, 32], sizes = [8, 32], strides = [1, 1]} : vector<8x96xf32> to vector<8x32xf32>
    %680 = vector.extract_strided_slice %677 {offsets = [0, 64], sizes = [8, 32], strides = [1, 1]} : vector<8x96xf32> to vector<8x32xf32>
    %681 = vector.extract_strided_slice %671 {offsets = [0, 96], sizes = [8, 32], strides = [1, 1]} : vector<8x128xf32> to vector<8x32xf32>
    %682 = math.tanh %681 : vector<8x32xf32>
    %683 = arith.mulf %679, %652 : vector<8x32xf32>
    %684 = arith.mulf %678, %682 : vector<8x32xf32>
    %685 = arith.addf %683, %684 : vector<8x32xf32>
    %686 = math.tanh %685 : vector<8x32xf32>
    %687 = arith.mulf %680, %686 : vector<8x32xf32>
    %688 = arith.index_cast %c0_i32_214 : i32 to index
    %c0_219 = arith.constant 0 : index
    %c0_220 = arith.constant 0 : index
    %689 = vector.load %arg5[%688, %c0_219, %c0_220] : memref<8x32x128xf32, #tpu.memory_space<vmem>>, vector<1x32x128xf32>
    %690 = vector.shape_cast %689 : vector<1x32x128xf32> to vector<32x128xf32>
    %cst_221 = arith.constant dense<0.000000e+00> : vector<8x128xf32>
    %691 = tpu.matmul %687, %690, %cst_221 {dimension_numbers = #tpu.dot_dimension_numbers<[1], [0], [0], [1], [0, 0, 1, 1], [], []>} : vector<8x32xf32>, vector<32x128xf32>, vector<8x128xf32> -> vector<8x128xf32>
    %692 = arith.addf %664, %691 : vector<8x128xf32>
    %c1_i32_222 = arith.constant 1 : i32
    %c8_i32_223 = arith.constant 8 : i32
    %693 = arith.muli %c1_i32_222, %c8_i32_223 : i32
    %694 = tpu.assume_multiple %693, 8 : i32
    %695 = arith.index_cast %694 : i32 to index
    %c0_224 = arith.constant 0 : index
    %696 = vector.load %arg10[%695, %c0_224] : memref<64x128xf32, #tpu.memory_space<vmem>>, vector<8x128xf32>
    %697 = arith.truncf %687 : vector<8x32xf32> to vector<8x32xbf16>
    %cst_225 = arith.constant dense<0.000000e+00> : vector<8x128xf32>
    %698 = tpu.matmul %697, %658, %cst_225 {dimension_numbers = #tpu.dot_dimension_numbers<[1], [0], [0], [1], [0, 0, 1, 1], [], []>} : vector<8x32xbf16>, vector<32x128xbf16>, vector<8x128xf32> -> vector<8x128xf32>
    %699 = arith.addf %696, %698 : vector<8x128xf32>
    %700 = vector.extract_strided_slice %699 {offsets = [0, 0], sizes = [8, 96], strides = [1, 1]} : vector<8x128xf32> to vector<8x96xf32>
    %701 = arith.negf %700 : vector<8x96xf32>
    %702 = math.exp %701 : vector<8x96xf32>
    %cst_226 = arith.constant 1.000000e+00 : f32
    %703 = vector.broadcast %cst_226 : f32 to vector<8x96xf32>
    %704 = arith.addf %703, %702 : vector<8x96xf32>
    %705 = arith.divf %703, %704 : vector<8x96xf32>
    %706 = vector.extract_strided_slice %705 {offsets = [0, 0], sizes = [8, 32], strides = [1, 1]} : vector<8x96xf32> to vector<8x32xf32>
    %707 = vector.extract_strided_slice %705 {offsets = [0, 32], sizes = [8, 32], strides = [1, 1]} : vector<8x96xf32> to vector<8x32xf32>
    %708 = vector.extract_strided_slice %705 {offsets = [0, 64], sizes = [8, 32], strides = [1, 1]} : vector<8x96xf32> to vector<8x32xf32>
    %709 = vector.extract_strided_slice %699 {offsets = [0, 96], sizes = [8, 32], strides = [1, 1]} : vector<8x128xf32> to vector<8x32xf32>
    %710 = math.tanh %709 : vector<8x32xf32>
    %711 = arith.mulf %707, %685 : vector<8x32xf32>
    %712 = arith.mulf %706, %710 : vector<8x32xf32>
    %713 = arith.addf %711, %712 : vector<8x32xf32>
    %714 = math.tanh %713 : vector<8x32xf32>
    %715 = arith.mulf %708, %714 : vector<8x32xf32>
    %716 = arith.index_cast %c1_i32_222 : i32 to index
    %c0_227 = arith.constant 0 : index
    %c0_228 = arith.constant 0 : index
    %717 = vector.load %arg5[%716, %c0_227, %c0_228] : memref<8x32x128xf32, #tpu.memory_space<vmem>>, vector<1x32x128xf32>
    %718 = vector.shape_cast %717 : vector<1x32x128xf32> to vector<32x128xf32>
    %cst_229 = arith.constant dense<0.000000e+00> : vector<8x128xf32>
    %719 = tpu.matmul %715, %718, %cst_229 {dimension_numbers = #tpu.dot_dimension_numbers<[1], [0], [0], [1], [0, 0, 1, 1], [], []>} : vector<8x32xf32>, vector<32x128xf32>, vector<8x128xf32> -> vector<8x128xf32>
    %720 = arith.addf %692, %719 : vector<8x128xf32>
    %c2_i32_230 = arith.constant 2 : i32
    %c8_i32_231 = arith.constant 8 : i32
    %721 = arith.muli %c2_i32_230, %c8_i32_231 : i32
    %722 = tpu.assume_multiple %721, 8 : i32
    %723 = arith.index_cast %722 : i32 to index
    %c0_232 = arith.constant 0 : index
    %724 = vector.load %arg10[%723, %c0_232] : memref<64x128xf32, #tpu.memory_space<vmem>>, vector<8x128xf32>
    %725 = arith.truncf %715 : vector<8x32xf32> to vector<8x32xbf16>
    %cst_233 = arith.constant dense<0.000000e+00> : vector<8x128xf32>
    %726 = tpu.matmul %725, %658, %cst_233 {dimension_numbers = #tpu.dot_dimension_numbers<[1], [0], [0], [1], [0, 0, 1, 1], [], []>} : vector<8x32xbf16>, vector<32x128xbf16>, vector<8x128xf32> -> vector<8x128xf32>
    %727 = arith.addf %724, %726 : vector<8x128xf32>
    %728 = vector.extract_strided_slice %727 {offsets = [0, 0], sizes = [8, 96], strides = [1, 1]} : vector<8x128xf32> to vector<8x96xf32>
    %729 = arith.negf %728 : vector<8x96xf32>
    %730 = math.exp %729 : vector<8x96xf32>
    %cst_234 = arith.constant 1.000000e+00 : f32
    %731 = vector.broadcast %cst_234 : f32 to vector<8x96xf32>
    %732 = arith.addf %731, %730 : vector<8x96xf32>
    %733 = arith.divf %731, %732 : vector<8x96xf32>
    %734 = vector.extract_strided_slice %733 {offsets = [0, 0], sizes = [8, 32], strides = [1, 1]} : vector<8x96xf32> to vector<8x32xf32>
    %735 = vector.extract_strided_slice %733 {offsets = [0, 32], sizes = [8, 32], strides = [1, 1]} : vector<8x96xf32> to vector<8x32xf32>
    %736 = vector.extract_strided_slice %733 {offsets = [0, 64], sizes = [8, 32], strides = [1, 1]} : vector<8x96xf32> to vector<8x32xf32>
    %737 = vector.extract_strided_slice %727 {offsets = [0, 96], sizes = [8, 32], strides = [1, 1]} : vector<8x128xf32> to vector<8x32xf32>
    %738 = math.tanh %737 : vector<8x32xf32>
    %739 = arith.mulf %735, %713 : vector<8x32xf32>
    %740 = arith.mulf %734, %738 : vector<8x32xf32>
    %741 = arith.addf %739, %740 : vector<8x32xf32>
    %742 = math.tanh %741 : vector<8x32xf32>
    %743 = arith.mulf %736, %742 : vector<8x32xf32>
    %744 = arith.index_cast %c2_i32_230 : i32 to index
    %c0_235 = arith.constant 0 : index
    %c0_236 = arith.constant 0 : index
    %745 = vector.load %arg5[%744, %c0_235, %c0_236] : memref<8x32x128xf32, #tpu.memory_space<vmem>>, vector<1x32x128xf32>
    %746 = vector.shape_cast %745 : vector<1x32x128xf32> to vector<32x128xf32>
    %cst_237 = arith.constant dense<0.000000e+00> : vector<8x128xf32>
    %747 = tpu.matmul %743, %746, %cst_237 {dimension_numbers = #tpu.dot_dimension_numbers<[1], [0], [0], [1], [0, 0, 1, 1], [], []>} : vector<8x32xf32>, vector<32x128xf32>, vector<8x128xf32> -> vector<8x128xf32>
    %748 = arith.addf %720, %747 : vector<8x128xf32>
    %c3_i32_238 = arith.constant 3 : i32
    %c8_i32_239 = arith.constant 8 : i32
    %749 = arith.muli %c3_i32_238, %c8_i32_239 : i32
    %750 = tpu.assume_multiple %749, 8 : i32
    %751 = arith.index_cast %750 : i32 to index
    %c0_240 = arith.constant 0 : index
    %752 = vector.load %arg10[%751, %c0_240] : memref<64x128xf32, #tpu.memory_space<vmem>>, vector<8x128xf32>
    %753 = arith.truncf %743 : vector<8x32xf32> to vector<8x32xbf16>
    %cst_241 = arith.constant dense<0.000000e+00> : vector<8x128xf32>
    %754 = tpu.matmul %753, %658, %cst_241 {dimension_numbers = #tpu.dot_dimension_numbers<[1], [0], [0], [1], [0, 0, 1, 1], [], []>} : vector<8x32xbf16>, vector<32x128xbf16>, vector<8x128xf32> -> vector<8x128xf32>
    %755 = arith.addf %752, %754 : vector<8x128xf32>
    %756 = vector.extract_strided_slice %755 {offsets = [0, 0], sizes = [8, 96], strides = [1, 1]} : vector<8x128xf32> to vector<8x96xf32>
    %757 = arith.negf %756 : vector<8x96xf32>
    %758 = math.exp %757 : vector<8x96xf32>
    %cst_242 = arith.constant 1.000000e+00 : f32
    %759 = vector.broadcast %cst_242 : f32 to vector<8x96xf32>
    %760 = arith.addf %759, %758 : vector<8x96xf32>
    %761 = arith.divf %759, %760 : vector<8x96xf32>
    %762 = vector.extract_strided_slice %761 {offsets = [0, 0], sizes = [8, 32], strides = [1, 1]} : vector<8x96xf32> to vector<8x32xf32>
    %763 = vector.extract_strided_slice %761 {offsets = [0, 32], sizes = [8, 32], strides = [1, 1]} : vector<8x96xf32> to vector<8x32xf32>
    %764 = vector.extract_strided_slice %761 {offsets = [0, 64], sizes = [8, 32], strides = [1, 1]} : vector<8x96xf32> to vector<8x32xf32>
    %765 = vector.extract_strided_slice %755 {offsets = [0, 96], sizes = [8, 32], strides = [1, 1]} : vector<8x128xf32> to vector<8x32xf32>
    %766 = math.tanh %765 : vector<8x32xf32>
    %767 = arith.mulf %763, %741 : vector<8x32xf32>
    %768 = arith.mulf %762, %766 : vector<8x32xf32>
    %769 = arith.addf %767, %768 : vector<8x32xf32>
    %770 = math.tanh %769 : vector<8x32xf32>
    %771 = arith.mulf %764, %770 : vector<8x32xf32>
    %772 = arith.index_cast %c3_i32_238 : i32 to index
    %c0_243 = arith.constant 0 : index
    %c0_244 = arith.constant 0 : index
    %773 = vector.load %arg5[%772, %c0_243, %c0_244] : memref<8x32x128xf32, #tpu.memory_space<vmem>>, vector<1x32x128xf32>
    %774 = vector.shape_cast %773 : vector<1x32x128xf32> to vector<32x128xf32>
    %cst_245 = arith.constant dense<0.000000e+00> : vector<8x128xf32>
    %775 = tpu.matmul %771, %774, %cst_245 {dimension_numbers = #tpu.dot_dimension_numbers<[1], [0], [0], [1], [0, 0, 1, 1], [], []>} : vector<8x32xf32>, vector<32x128xf32>, vector<8x128xf32> -> vector<8x128xf32>
    %776 = arith.addf %748, %775 : vector<8x128xf32>
    %c4_i32_246 = arith.constant 4 : i32
    %c8_i32_247 = arith.constant 8 : i32
    %777 = arith.muli %c4_i32_246, %c8_i32_247 : i32
    %778 = tpu.assume_multiple %777, 8 : i32
    %779 = arith.index_cast %778 : i32 to index
    %c0_248 = arith.constant 0 : index
    %780 = vector.load %arg10[%779, %c0_248] : memref<64x128xf32, #tpu.memory_space<vmem>>, vector<8x128xf32>
    %781 = arith.truncf %771 : vector<8x32xf32> to vector<8x32xbf16>
    %cst_249 = arith.constant dense<0.000000e+00> : vector<8x128xf32>
    %782 = tpu.matmul %781, %658, %cst_249 {dimension_numbers = #tpu.dot_dimension_numbers<[1], [0], [0], [1], [0, 0, 1, 1], [], []>} : vector<8x32xbf16>, vector<32x128xbf16>, vector<8x128xf32> -> vector<8x128xf32>
    %783 = arith.addf %780, %782 : vector<8x128xf32>
    %784 = vector.extract_strided_slice %783 {offsets = [0, 0], sizes = [8, 96], strides = [1, 1]} : vector<8x128xf32> to vector<8x96xf32>
    %785 = arith.negf %784 : vector<8x96xf32>
    %786 = math.exp %785 : vector<8x96xf32>
    %cst_250 = arith.constant 1.000000e+00 : f32
    %787 = vector.broadcast %cst_250 : f32 to vector<8x96xf32>
    %788 = arith.addf %787, %786 : vector<8x96xf32>
    %789 = arith.divf %787, %788 : vector<8x96xf32>
    %790 = vector.extract_strided_slice %789 {offsets = [0, 0], sizes = [8, 32], strides = [1, 1]} : vector<8x96xf32> to vector<8x32xf32>
    %791 = vector.extract_strided_slice %789 {offsets = [0, 32], sizes = [8, 32], strides = [1, 1]} : vector<8x96xf32> to vector<8x32xf32>
    %792 = vector.extract_strided_slice %789 {offsets = [0, 64], sizes = [8, 32], strides = [1, 1]} : vector<8x96xf32> to vector<8x32xf32>
    %793 = vector.extract_strided_slice %783 {offsets = [0, 96], sizes = [8, 32], strides = [1, 1]} : vector<8x128xf32> to vector<8x32xf32>
    %794 = math.tanh %793 : vector<8x32xf32>
    %795 = arith.mulf %791, %769 : vector<8x32xf32>
    %796 = arith.mulf %790, %794 : vector<8x32xf32>
    %797 = arith.addf %795, %796 : vector<8x32xf32>
    %798 = math.tanh %797 : vector<8x32xf32>
    %799 = arith.mulf %792, %798 : vector<8x32xf32>
    %800 = arith.index_cast %c4_i32_246 : i32 to index
    %c0_251 = arith.constant 0 : index
    %c0_252 = arith.constant 0 : index
    %801 = vector.load %arg5[%800, %c0_251, %c0_252] : memref<8x32x128xf32, #tpu.memory_space<vmem>>, vector<1x32x128xf32>
    %802 = vector.shape_cast %801 : vector<1x32x128xf32> to vector<32x128xf32>
    %cst_253 = arith.constant dense<0.000000e+00> : vector<8x128xf32>
    %803 = tpu.matmul %799, %802, %cst_253 {dimension_numbers = #tpu.dot_dimension_numbers<[1], [0], [0], [1], [0, 0, 1, 1], [], []>} : vector<8x32xf32>, vector<32x128xf32>, vector<8x128xf32> -> vector<8x128xf32>
    %804 = arith.addf %776, %803 : vector<8x128xf32>
    %c5_i32_254 = arith.constant 5 : i32
    %c8_i32_255 = arith.constant 8 : i32
    %805 = arith.muli %c5_i32_254, %c8_i32_255 : i32
    %806 = tpu.assume_multiple %805, 8 : i32
    %807 = arith.index_cast %806 : i32 to index
    %c0_256 = arith.constant 0 : index
    %808 = vector.load %arg10[%807, %c0_256] : memref<64x128xf32, #tpu.memory_space<vmem>>, vector<8x128xf32>
    %809 = arith.truncf %799 : vector<8x32xf32> to vector<8x32xbf16>
    %cst_257 = arith.constant dense<0.000000e+00> : vector<8x128xf32>
    %810 = tpu.matmul %809, %658, %cst_257 {dimension_numbers = #tpu.dot_dimension_numbers<[1], [0], [0], [1], [0, 0, 1, 1], [], []>} : vector<8x32xbf16>, vector<32x128xbf16>, vector<8x128xf32> -> vector<8x128xf32>
    %811 = arith.addf %808, %810 : vector<8x128xf32>
    %812 = vector.extract_strided_slice %811 {offsets = [0, 0], sizes = [8, 96], strides = [1, 1]} : vector<8x128xf32> to vector<8x96xf32>
    %813 = arith.negf %812 : vector<8x96xf32>
    %814 = math.exp %813 : vector<8x96xf32>
    %cst_258 = arith.constant 1.000000e+00 : f32
    %815 = vector.broadcast %cst_258 : f32 to vector<8x96xf32>
    %816 = arith.addf %815, %814 : vector<8x96xf32>
    %817 = arith.divf %815, %816 : vector<8x96xf32>
    %818 = vector.extract_strided_slice %817 {offsets = [0, 0], sizes = [8, 32], strides = [1, 1]} : vector<8x96xf32> to vector<8x32xf32>
    %819 = vector.extract_strided_slice %817 {offsets = [0, 32], sizes = [8, 32], strides = [1, 1]} : vector<8x96xf32> to vector<8x32xf32>
    %820 = vector.extract_strided_slice %817 {offsets = [0, 64], sizes = [8, 32], strides = [1, 1]} : vector<8x96xf32> to vector<8x32xf32>
    %821 = vector.extract_strided_slice %811 {offsets = [0, 96], sizes = [8, 32], strides = [1, 1]} : vector<8x128xf32> to vector<8x32xf32>
    %822 = math.tanh %821 : vector<8x32xf32>
    %823 = arith.mulf %819, %797 : vector<8x32xf32>
    %824 = arith.mulf %818, %822 : vector<8x32xf32>
    %825 = arith.addf %823, %824 : vector<8x32xf32>
    %826 = math.tanh %825 : vector<8x32xf32>
    %827 = arith.mulf %820, %826 : vector<8x32xf32>
    %828 = arith.index_cast %c5_i32_254 : i32 to index
    %c0_259 = arith.constant 0 : index
    %c0_260 = arith.constant 0 : index
    %829 = vector.load %arg5[%828, %c0_259, %c0_260] : memref<8x32x128xf32, #tpu.memory_space<vmem>>, vector<1x32x128xf32>
    %830 = vector.shape_cast %829 : vector<1x32x128xf32> to vector<32x128xf32>
    %cst_261 = arith.constant dense<0.000000e+00> : vector<8x128xf32>
    %831 = tpu.matmul %827, %830, %cst_261 {dimension_numbers = #tpu.dot_dimension_numbers<[1], [0], [0], [1], [0, 0, 1, 1], [], []>} : vector<8x32xf32>, vector<32x128xf32>, vector<8x128xf32> -> vector<8x128xf32>
    %832 = arith.addf %804, %831 : vector<8x128xf32>
    %c6_i32_262 = arith.constant 6 : i32
    %c8_i32_263 = arith.constant 8 : i32
    %833 = arith.muli %c6_i32_262, %c8_i32_263 : i32
    %834 = tpu.assume_multiple %833, 8 : i32
    %835 = arith.index_cast %834 : i32 to index
    %c0_264 = arith.constant 0 : index
    %836 = vector.load %arg10[%835, %c0_264] : memref<64x128xf32, #tpu.memory_space<vmem>>, vector<8x128xf32>
    %837 = arith.truncf %827 : vector<8x32xf32> to vector<8x32xbf16>
    %cst_265 = arith.constant dense<0.000000e+00> : vector<8x128xf32>
    %838 = tpu.matmul %837, %658, %cst_265 {dimension_numbers = #tpu.dot_dimension_numbers<[1], [0], [0], [1], [0, 0, 1, 1], [], []>} : vector<8x32xbf16>, vector<32x128xbf16>, vector<8x128xf32> -> vector<8x128xf32>
    %839 = arith.addf %836, %838 : vector<8x128xf32>
    %840 = vector.extract_strided_slice %839 {offsets = [0, 0], sizes = [8, 96], strides = [1, 1]} : vector<8x128xf32> to vector<8x96xf32>
    %841 = arith.negf %840 : vector<8x96xf32>
    %842 = math.exp %841 : vector<8x96xf32>
    %cst_266 = arith.constant 1.000000e+00 : f32
    %843 = vector.broadcast %cst_266 : f32 to vector<8x96xf32>
    %844 = arith.addf %843, %842 : vector<8x96xf32>
    %845 = arith.divf %843, %844 : vector<8x96xf32>
    %846 = vector.extract_strided_slice %845 {offsets = [0, 0], sizes = [8, 32], strides = [1, 1]} : vector<8x96xf32> to vector<8x32xf32>
    %847 = vector.extract_strided_slice %845 {offsets = [0, 32], sizes = [8, 32], strides = [1, 1]} : vector<8x96xf32> to vector<8x32xf32>
    %848 = vector.extract_strided_slice %845 {offsets = [0, 64], sizes = [8, 32], strides = [1, 1]} : vector<8x96xf32> to vector<8x32xf32>
    %849 = vector.extract_strided_slice %839 {offsets = [0, 96], sizes = [8, 32], strides = [1, 1]} : vector<8x128xf32> to vector<8x32xf32>
    %850 = math.tanh %849 : vector<8x32xf32>
    %851 = arith.mulf %847, %825 : vector<8x32xf32>
    %852 = arith.mulf %846, %850 : vector<8x32xf32>
    %853 = arith.addf %851, %852 : vector<8x32xf32>
    %854 = math.tanh %853 : vector<8x32xf32>
    %855 = arith.mulf %848, %854 : vector<8x32xf32>
    %856 = arith.index_cast %c6_i32_262 : i32 to index
    %c0_267 = arith.constant 0 : index
    %c0_268 = arith.constant 0 : index
    %857 = vector.load %arg5[%856, %c0_267, %c0_268] : memref<8x32x128xf32, #tpu.memory_space<vmem>>, vector<1x32x128xf32>
    %858 = vector.shape_cast %857 : vector<1x32x128xf32> to vector<32x128xf32>
    %cst_269 = arith.constant dense<0.000000e+00> : vector<8x128xf32>
    %859 = tpu.matmul %855, %858, %cst_269 {dimension_numbers = #tpu.dot_dimension_numbers<[1], [0], [0], [1], [0, 0, 1, 1], [], []>} : vector<8x32xf32>, vector<32x128xf32>, vector<8x128xf32> -> vector<8x128xf32>
    %860 = arith.addf %832, %859 : vector<8x128xf32>
    %c7_i32_270 = arith.constant 7 : i32
    %c8_i32_271 = arith.constant 8 : i32
    %861 = arith.muli %c7_i32_270, %c8_i32_271 : i32
    %862 = tpu.assume_multiple %861, 8 : i32
    %863 = arith.index_cast %862 : i32 to index
    %c0_272 = arith.constant 0 : index
    %864 = vector.load %arg10[%863, %c0_272] : memref<64x128xf32, #tpu.memory_space<vmem>>, vector<8x128xf32>
    %865 = arith.truncf %855 : vector<8x32xf32> to vector<8x32xbf16>
    %cst_273 = arith.constant dense<0.000000e+00> : vector<8x128xf32>
    %866 = tpu.matmul %865, %658, %cst_273 {dimension_numbers = #tpu.dot_dimension_numbers<[1], [0], [0], [1], [0, 0, 1, 1], [], []>} : vector<8x32xbf16>, vector<32x128xbf16>, vector<8x128xf32> -> vector<8x128xf32>
    %867 = arith.addf %864, %866 : vector<8x128xf32>
    %868 = vector.extract_strided_slice %867 {offsets = [0, 0], sizes = [8, 96], strides = [1, 1]} : vector<8x128xf32> to vector<8x96xf32>
    %869 = arith.negf %868 : vector<8x96xf32>
    %870 = math.exp %869 : vector<8x96xf32>
    %cst_274 = arith.constant 1.000000e+00 : f32
    %871 = vector.broadcast %cst_274 : f32 to vector<8x96xf32>
    %872 = arith.addf %871, %870 : vector<8x96xf32>
    %873 = arith.divf %871, %872 : vector<8x96xf32>
    %874 = vector.extract_strided_slice %873 {offsets = [0, 0], sizes = [8, 32], strides = [1, 1]} : vector<8x96xf32> to vector<8x32xf32>
    %875 = vector.extract_strided_slice %873 {offsets = [0, 32], sizes = [8, 32], strides = [1, 1]} : vector<8x96xf32> to vector<8x32xf32>
    %876 = vector.extract_strided_slice %873 {offsets = [0, 64], sizes = [8, 32], strides = [1, 1]} : vector<8x96xf32> to vector<8x32xf32>
    %877 = vector.extract_strided_slice %867 {offsets = [0, 96], sizes = [8, 32], strides = [1, 1]} : vector<8x128xf32> to vector<8x32xf32>
    %878 = math.tanh %877 : vector<8x32xf32>
    %879 = arith.mulf %875, %853 : vector<8x32xf32>
    %880 = arith.mulf %874, %878 : vector<8x32xf32>
    %881 = arith.addf %879, %880 : vector<8x32xf32>
    %882 = math.tanh %881 : vector<8x32xf32>
    %883 = arith.mulf %876, %882 : vector<8x32xf32>
    %884 = arith.index_cast %c7_i32_270 : i32 to index
    %c0_275 = arith.constant 0 : index
    %c0_276 = arith.constant 0 : index
    %885 = vector.load %arg5[%884, %c0_275, %c0_276] : memref<8x32x128xf32, #tpu.memory_space<vmem>>, vector<1x32x128xf32>
    %886 = vector.shape_cast %885 : vector<1x32x128xf32> to vector<32x128xf32>
    %cst_277 = arith.constant dense<0.000000e+00> : vector<8x128xf32>
    %887 = tpu.matmul %883, %886, %cst_277 {dimension_numbers = #tpu.dot_dimension_numbers<[1], [0], [0], [1], [0, 0, 1, 1], [], []>} : vector<8x32xf32>, vector<32x128xf32>, vector<8x128xf32> -> vector<8x128xf32>
    %888 = arith.addf %860, %887 : vector<8x128xf32>
    %c8_i32_278 = arith.constant 8 : i32
    %c0_279 = arith.constant 0 : index
    %c0_280 = arith.constant 0 : index
    %889 = vector.load %arg6[%c0_279, %c0_280] : memref<1x128xf32, #tpu.memory_space<vmem>>, vector<1x128xf32>
    %890 = vector.broadcast %889 : vector<1x128xf32> to vector<8x128xf32>
    %891 = arith.addf %888, %890 : vector<8x128xf32>
    %c0_281 = arith.constant 0 : index
    %c0_282 = arith.constant 0 : index
    %892 = vector.load %arg7[%c0_281, %c0_282] : memref<8x128xf32, #tpu.memory_space<vmem>>, vector<8x128xf32>
    tpu.vector_store %arg7[%c0_281, %c0_282], %891 {strides = array<i32>} : memref<8x128xf32, #tpu.memory_space<vmem>>, vector<8x128xf32>,
    return
  }
}

</mosaic_0001>

<bundles_post_ra>
// kernel: normal_lstm_2layer_forward.1
= control target key start
LH: loop header
LB: loop body
LE: loop exit
PB: predicated region body
PF: predicated region fallthrough
CT: control target
= control target key end

     0   :  { %12 = vsyncpa [#allocation8], 0  ;;  %s5865_s0 = inlined_call_operand.vmem [shape: f32[64,16], index: 0, kind: input, shape index: {}]   ;;  %s5866_s1 = inlined_call_operand.vmem [shape: f32[16,128], index: 1, kind: input, shape index: {}]   ;;  %s5867_s2 = inlined_call_operand.vmem [shape: f32[3,32,128], index: 2, kind: input, shape index: {}]   ;;  %s5868_s3 = inlined_call_operand.hbm [shape: bf16[4,32,128], index: 3, kind: input, shape index: {}]   ;;  %s5869_s4 = inlined_call_operand.vmem [shape: f32[4,1,128], index: 4, kind: input, shape index: {}]   ;;  %s5870_s5 = inlined_call_operand.hbm [shape: f32[8,32,128], index: 5, kind: input, shape index: {}]   ;;  %s5871_s6 = inlined_call_operand.vmem [shape: f32[1,128], index: 6, kind: input, shape index: {}]   ;;  %s5872_s7 = inlined_call_operand.vmem [shape: f32[8,128], index: 7, kind: output, shape index: {}]  }
   0x1   :  { %13 = vsyncpa [#allocation10], 0  ;;  %s4944_s24 = smov [#allocation7]  }
   0x2   :  { %s25_s25 = sshll.u32 %s4944_s24, 4  ;;  %s26_s25 = int_to_ptr.vmem [resolvable:$true] %s25_s25 }
   0x3   :  { %s4908_s26 = scalar_lea.vmem %s26_s25, 1024  ;;  %p4913_p1 = scmp.lt.s32.totalorder %s26_s25, %s26_s25 }
   0x4   :  { %p4909_p0 = scmp.ne.s32.totalorder %s26_s25, %s4908_s26  ;;  %p4914_p2 = scmp.lt.s32.totalorder %s4908_s26, %s4908_s26 }
   0x6   :  { %p4915_p3 = por %p4914_p2, %p4913_p1 }
   0x8   :  { %p4916_p4 = pnand %p4915_p3, %p4909_p0 }
   0xa   :  { %4919 = shalt.err (!%p4916_p4)
}
   0xb   :  { %s4945_s27 = smov 64   ;;  %s4946_s28 = smov 4  }
   0xc   :  { %31 = dma.hbm_to_vmem [thread:$0]  %s5868_s3, 1024, %s26_s25, [#allocation8], %s4945_s27, %s4945_s27, %s4946_s28  }
   0xd   :  { %s4947_s8 = smov [#allocation9]  }
   0xe   :  { %s39_s9 = sshll.u32 %s4947_s8, 4  ;;  %s40_s9 = int_to_ptr.vmem [resolvable:$true] %s39_s9 }
   0xf   :  { %s4928_s10 = scalar_lea.vmem %s40_s9, 4096  ;;  %p4933_p6 = scmp.lt.s32.totalorder %s40_s9, %s40_s9 }
  0x10   :  { %p4929_p5 = scmp.ne.s32.totalorder %s40_s9, %s4928_s10  ;;  %p4934_p7 = scmp.lt.s32.totalorder %s4928_s10, %s4928_s10 }
  0x12   :  { %p4935_p8 = por %p4934_p7, %p4933_p6 }
  0x14   :  { %p4936_p9 = pnand %p4935_p8, %p4929_p5 }
  0x16   :  { %4939 = shalt.err (!%p4936_p9)
}
  0x17   :  { %s4948_s11 = smov 128   ;;  %s4949_s12 = smov 8  }
  0x18   :  { %45 = dma.hbm_to_vmem [thread:$0]  %s5870_s5, 4096, %s40_s9, [#allocation10], %s4948_s11, %s4948_s11, %s4949_s12  }
  0x19   :  { %4940 = dma.done.wait [#allocation8], 1024  }
  0x1a   :  { %4941 = vsyncadd [#allocation8], 4294966272 }
  0x1b   :  { %4942 = dma.done.wait [#allocation10], 4096  }
  0x1c   :  { %4943 = vsyncadd [#allocation10], 4294963200  ;;  %v4950_v0 = vmov 0.0   ;;  %vm4951_vm0 = vmmov 0   ;;  %vm76_vm1 = vcmask 130048   ;;  %v56_v1 = vld [vmem:[%s5866_s1 + $0x8] sm:$0xff] }
  0x1d   :  { %4221 = vmatprep.subr.bf16.mxu1 %v4950_v0  ;;  %4225 = vmatprep.mubr.msk.bf16.mxu1 %vm4951_vm0, %v4950_v0  ;;  %v55_v2 = vld [vmem:[%s5866_s1] sm:$0xff]  ;;  %v5012_v3 = vld [vmem:[#allocation7 + $0x8] sm:$0xff]   ;;  %v4952_v7 = vmov 0   ;;  %s4953_s22 = smov 32   ;;  %vm227_vm2 = vcmask 261120   ;;  %v64_v48 = vld [vmem:[%s5865_s0 + $0x10] sm:$0xff] }
  0x1e   :  { %4205 = vmatprep.subr.mxu0 %v56_v1  ;;  %v62_v4 = vld [vmem:[%s5865_s0] sm:$0xff]  ;;  %v63_v5 = vld [vmem:[%s5865_s0 + $0x8] sm:$0xff]  ;;  %4222 = vmatpush3.bf16.msra.mxu1 %v5012_v3  ;;  %v65_v49 = vld [vmem:[%s5865_s0 + $0x18] sm:$0xff]  ;;  %s4954_s29 = smov 96  }
  0x1f   :  { %4206 = vmatpush3.msra.mxu0 %v56_v1  ;;  %4209 = vmatprep.mubr.msk.f32.mxu0 %vm76_vm1, %v62_v4  ;;  %v5022_v6 = vld [vmem:[#allocation7] sm:$0xff]   ;;  %v67_v51 = vld [vmem:[%s5865_s0 + $0x28] sm:$0xff]  ;;  %v68_v52 = vld [vmem:[%s5865_s0 + $0x30] sm:$0xff] }
  0x20   :  { %4207 = vmatprep.subr.mxu0 %v55_v2  ;;  %4223 = vmatprep.subr.bf16.mxu1 %v4950_v0  ;;  %v5043_v9 = vld [vmem:[%s5869_s4] ss:$0 sm:$0xff]  ;;  %v69_v53 = vld [vmem:[%s5865_s0 + $0x38] sm:$0xff] }
  0x21   :  { %4208 = vmatpush3.msra.mxu0 %v55_v2  ;;  %v66_v50 = vld [vmem:[%s5865_s0 + $0x20] sm:$0xff] }
  0x22   :  { %4210 = vmatmul.mubr.msk.f32.vlgmr.msra.gmra.mxu0 %vm76_vm1, %v63_v5  ;;  %4237 = vmatprep.subr.bf16.mxu0 %v4950_v0 }
  0x23   :  { %4238 = vmatpush3.bf16.msra.mxu0 %v5012_v3  ;;  %4224 = vmatpush3.bf16.msra.mxu1 %v5022_v6 }
  0x24   :  { %4239 = vmatprep.subr.bf16.mxu0 %v4950_v0  ;;  %4229 = vmatprep.subr.bf16.mxu1 %v4950_v0 }
  0x25   :  { %4212 = vmatprep.mubr.msk.f32.mxu0 %vm76_vm1, %v64_v48 }
  0x26   :  { %4226 = vmatmul.mubr.bf16.vlgmr.msra.gmra.mxu1 %v4952_v7  ;;  %4213 = vmatmul.mubr.msk.f32.gmra.mxu0 %vm76_vm1, %v65_v49 }
  0x27   :  { %4240 = vmatpush3.bf16.msra.mxu0 %v5022_v6  ;;  %4230 = vmatpush3.bf16.msra.mxu1 %v5012_v3 }
  0x28   :  { %4233 = vmatprep.mubr.msk.bf16.mxu1 %vm4951_vm0, %v4950_v0  ;;  %4231 = vmatprep.subr.bf16.mxu1 %v4950_v0 }
  0x29   :  { %4253 = vmatprep.subr.bf16.mxu0 %v4950_v0  ;;  %4215 = vmatprep.mubr.msk.f32.mxu0 %vm76_vm1, %v66_v50 }
  0x2a   :  { %4216 = vmatmul.mubr.msk.f32.gmra.mxu0 %vm76_vm1, %v67_v51 }
  0x2b   :  { %4232 = vmatpush3.bf16.msra.mxu1 %v5022_v6  ;;  %4218 = vmatprep.mubr.msk.f32.mxu0 %vm76_vm1, %v68_v52 }
  0x2c   :  { %4245 = vmatprep.subr.bf16.mxu1 %v4950_v0 }
  0x2e   :  { %4219 = vmatmul.mubr.msk.f32.gmra.mxu0 %vm76_vm1, %v69_v53 }
  0x2f   :  { %4241 = vmatprep.mubr.msk.bf16.mxu0 %vm4951_vm0, %v4950_v0 }
  0xe2   :  { %v4211_v8 = vpop.f32.mrf.mxu0 }
  0xe3   :  { %v173_v32 = vadd.f32 %v4211_v8, %v5043_v9 }
  0xe4   :  { %v167_v10 = vpop.f32.mrf.mxu0 }
  0xe5   :  { %v168_v11 = vadd.f32 %v5043_v9, %v167_v10 }
  0xe6   :  { %v265_v12 = vpop.f32.mrf.mxu1  ;;  %v4214_v59 = vpop.f32.mrf.mxu0 }
  0xe7   :  { %v271_v13 = vadd.f32 %v265_v12, %v168_v11 }
  0xe8   :  { %v4227_v14 = vpop.f32.mrf.mxu1  ;;  %v177_v60 = vpop.f32.mrf.mxu0 }
  0xe9   :  { %4644 = vtanh.f32 %v271_v13  ;;  %v3908_v18 = vmul.f32 -1.442695, %v271_v13  ;;  %v178_v2 = vadd.f32 %v5043_v9, %v177_v60 }
  0xea   :  { %v268_v15 = vpop.f32.mrf.mxu1  ;;  %v5103_v61 = vpop.f32.mrf.mxu0 }
  0xeb   :  { %4646 = vpow2.f32 %v3908_v18 }
  0xec   :  { %v4228_v16 = vpop.f32.mrf.mxu1  ;;  %v5105_v62 = vpop.f32.mrf.mxu0 }
  0xed   :  { %v188_v49 = vadd.f32 %v5043_v9, %v5105_v62 }
  0xee   :  { %v5107_v63 = vpop.f32.mrf.mxu0 }
  0xf0   :  { %v5109_v1 = vpop.f32.mrf.mxu0 }
  0xf6   :  { %v4645_v17 = vpop.eup %4644 }
  0xf7   :  { %281 = vrot.lane.b32.xlu0 %v4645_v17, %s4953_s22 }
  0xf8   :  { %v4647_v19 = vpop.eup %4646 }
  0xf9   :  { %v275_v20 = vadd.f32 1.0, %v4647_v19 }
  0xfb   :  { %4648 = vrcp.f32 %v275_v20 }
 0x108   :  { %v4649_v21 = vpop.eup %4648 }
 0x109   :  { %v279_v24 = vmul.f32 0.0, %v4649_v21 }
 0x169   :  { %v282_v22 = vpop.permute.xlu0 %281 }
 0x16a   :  { %v284_v23 = vmul.f32 %v4649_v21, %v282_v22 }
 0x16c   :  { %286 = vrot.lane.b32.xlu0 %v284_v23, %s4953_s22 }
 0x1de   :  { %v287_v25 = vpop.permute.xlu0 %286 }
 0x1df   :  { %v289_v26 = vadd.f32 %v287_v25, %v279_v24 }
 0x1e1   :  { %4650 = vtanh.f32 %v289_v26 }
 0x1ee   :  { %v4651_v27 = vpop.eup %4650 }
 0x1ef   :  { %292 = vrot.lane.b32.xlu1 %v4651_v27, %s4953_s22  ;;  %v183_v27 = vadd.f32 %v4214_v59, %v5043_v9 }
 0x261   :  { %v293_v28 = vpop.permute.xlu1 %292 }
 0x262   :  { %v5049_v29 = vmul.f32 %v4649_v21, %v293_v28 }
 0x264   :  { %v303_v30 = vpack.c.bf16 %v5049_v29, %v5049_v29 }
 0x266   :  { %305 = vrot.lane.b32.xlu1 %v303_v30, %s4945_s27 }
 0x2d8   :  { %v306_v31 = vpop.permute.xlu1 %305 }
 0x2d9   :  { %4234 = vmatmul.mubr.msk.bf16.vlgmr.msra.gmra.mxu1 %vm227_vm2, %v306_v31 }
 0x2da   :  { %4246 = vmatpush3.bf16.msra.mxu1 %v5012_v3  ;;  %4249 = vmatprep.mubr.msk.bf16.mxu1 %vm4951_vm0, %v4950_v0 }
 0x2db   :  { %4247 = vmatprep.subr.bf16.mxu1 %v4950_v0 }
 0x2de   :  { %4248 = vmatpush3.bf16.msra.mxu1 %v5022_v6 }
 0x2df   :  { %4261 = vmatprep.subr.bf16.mxu1 %v4950_v0 }
 0x399   :  { %v344_v33 = vpop.f32.mrf.mxu1 }
 0x39a   :  { %v350_v34 = vadd.f32 %v344_v33, %v173_v32 }
 0x39b   :  { %v4235_v35 = vpop.f32.mrf.mxu1 }
 0x39c   :  { %4652 = vtanh.f32 %v350_v34  ;;  %v3910_v39 = vmul.f32 -1.442695, %v350_v34 }
 0x39d   :  { %v347_v36 = vpop.f32.mrf.mxu1 }
 0x39e   :  { %4654 = vpow2.f32 %v3910_v39 }
 0x39f   :  { %v4236_v37 = vpop.f32.mrf.mxu1 }
 0x3a9   :  { %v4653_v38 = vpop.eup %4652 }
 0x3aa   :  { %360 = vrot.lane.b32.xlu0 %v4653_v38, %s4953_s22 }
 0x3ab   :  { %v4655_v40 = vpop.eup %4654 }
 0x3ac   :  { %v354_v41 = vadd.f32 1.0, %v4655_v40 }
 0x3ae   :  { %4656 = vrcp.f32 %v354_v41 }
 0x3bb   :  { %v4657_v42 = vpop.eup %4656 }
 0x3bc   :  { %v358_v45 = vmul.f32 %v4657_v42, %v289_v26 }
 0x41c   :  { %v361_v43 = vpop.permute.xlu0 %360 }
 0x41d   :  { %v363_v44 = vmul.f32 %v4657_v42, %v361_v43 }
 0x41f   :  { %365 = vrot.lane.b32.xlu1 %v363_v44, %s4953_s22 }
 0x491   :  { %v366_v46 = vpop.permute.xlu1 %365 }
 0x492   :  { %v368_v47 = vadd.f32 %v366_v46, %v358_v45 }
 0x494   :  { %4658 = vtanh.f32 %v368_v47 }
 0x4a1   :  { %v4659_v54 = vpop.eup %4658 }
 0x4a2   :  { %371 = vrot.lane.b32.xlu0 %v4659_v54, %s4953_s22 }
 0x514   :  { %v372_v55 = vpop.permute.xlu0 %371 }
 0x515   :  { %v5091_v56 = vmul.f32 %v4657_v42, %v372_v55 }
 0x517   :  { %v383_v57 = vpack.c.bf16 %v5091_v56, %v5091_v56 }
 0x519   :  { %385 = vrot.lane.b32.xlu1 %v383_v57, %s4945_s27 }
 0x58b   :  { %v386_v58 = vpop.permute.xlu1 %385 }
 0x58c   :  { %4242 = vmatmul.mubr.msk.bf16.vlgmr.msra.gmra.mxu0 %vm227_vm2, %v386_v58 }
 0x58d   :  { %4254 = vmatpush3.bf16.msra.mxu0 %v5012_v3  ;;  %4257 = vmatprep.mubr.msk.bf16.mxu0 %vm4951_vm0, %v4950_v0 }
 0x58e   :  { %4255 = vmatprep.subr.bf16.mxu0 %v4950_v0 }
 0x591   :  { %4256 = vmatpush3.bf16.msra.mxu0 %v5022_v6 }
 0x592   :  { %4269 = vmatprep.subr.bf16.mxu0 %v4950_v0 }
 0x64c   :  { %v424_v4 = vpop.f32.mrf.mxu0 }
 0x64d   :  { %v430_v5 = vadd.f32 %v424_v4, %v178_v2 }
 0x64e   :  { %v4243_v8 = vpop.f32.mrf.mxu0 }
 0x64f   :  { %4660 = vtanh.f32 %v430_v5  ;;  %v3912_v13 = vmul.f32 -1.442695, %v430_v5 }
 0x650   :  { %v427_v10 = vpop.f32.mrf.mxu0 }
 0x651   :  { %4662 = vpow2.f32 %v3912_v13 }
 0x652   :  { %v4244_v11 = vpop.f32.mrf.mxu0 }
 0x65c   :  { %v4661_v12 = vpop.eup %4660 }
 0x65d   :  { %440 = vrot.lane.b32.xlu0 %v4661_v12, %s4953_s22 }
 0x65e   :  { %v4663_v14 = vpop.eup %4662 }
 0x65f   :  { %v434_v15 = vadd.f32 1.0, %v4663_v14 }
 0x661   :  { %4664 = vrcp.f32 %v434_v15  ;;  %v193_v15 = vadd.f32 %v5103_v61, %v5043_v9 }
 0x66e   :  { %v4665_v16 = vpop.eup %4664 }
 0x66f   :  { %v438_v19 = vmul.f32 %v4665_v16, %v368_v47 }
 0x6cf   :  { %v441_v17 = vpop.permute.xlu0 %440 }
 0x6d0   :  { %v443_v18 = vmul.f32 %v4665_v16, %v441_v17 }
 0x6d2   :  { %445 = vrot.lane.b32.xlu1 %v443_v18, %s4953_s22 }
 0x744   :  { %v446_v20 = vpop.permute.xlu1 %445 }
 0x745   :  { %v448_v21 = vadd.f32 %v446_v20, %v438_v19 }
 0x747   :  { %4666 = vtanh.f32 %v448_v21 }
 0x754   :  { %v4667_v22 = vpop.eup %4666 }
 0x755   :  { %451 = vrot.lane.b32.xlu0 %v4667_v22, %s4953_s22 }
 0x7c7   :  { %v452_v23 = vpop.permute.xlu0 %451 }
 0x7c8   :  { %v5115_v24 = vmul.f32 %v4665_v16, %v452_v23 }
 0x7ca   :  { %v463_v25 = vpack.c.bf16 %v5115_v24, %v5115_v24 }
 0x7cc   :  { %465 = vrot.lane.b32.xlu1 %v463_v25, %s4945_s27 }
 0x83e   :  { %v466_v26 = vpop.permute.xlu1 %465 }
 0x83f   :  { %4250 = vmatmul.mubr.msk.bf16.vlgmr.msra.gmra.mxu1 %vm227_vm2, %v466_v26 }
 0x840   :  { %4262 = vmatpush3.bf16.msra.mxu1 %v5012_v3  ;;  %4265 = vmatprep.mubr.msk.bf16.mxu1 %vm4951_vm0, %v4950_v0 }
 0x841   :  { %4263 = vmatprep.subr.bf16.mxu1 %v4950_v0 }
 0x844   :  { %4264 = vmatpush3.bf16.msra.mxu1 %v5022_v6 }
 0x845   :  { %4277 = vmatprep.subr.bf16.mxu1 %v4950_v0 }
 0x8ff   :  { %v504_v28 = vpop.f32.mrf.mxu1 }
 0x900   :  { %v510_v30 = vadd.f32 %v504_v28, %v183_v27 }
 0x901   :  { %v4251_v31 = vpop.f32.mrf.mxu1 }
 0x902   :  { %4668 = vtanh.f32 %v510_v30  ;;  %v3914_v35 = vmul.f32 -1.442695, %v510_v30 }
 0x903   :  { %v507_v32 = vpop.f32.mrf.mxu1 }
 0x904   :  { %4670 = vpow2.f32 %v3914_v35  ;;  %v198_v35 = vadd.f32 %v5043_v9, %v5109_v1 }
 0x905   :  { %v4252_v33 = vpop.f32.mrf.mxu1 }
 0x90f   :  { %v4669_v34 = vpop.eup %4668 }
 0x910   :  { %520 = vrot.lane.b32.xlu0 %v4669_v34, %s4953_s22 }
 0x911   :  { %v4671_v36 = vpop.eup %4670 }
 0x912   :  { %v514_v37 = vadd.f32 1.0, %v4671_v36 }
 0x914   :  { %4672 = vrcp.f32 %v514_v37 }
 0x921   :  { %v4673_v38 = vpop.eup %4672 }
 0x922   :  { %v518_v41 = vmul.f32 %v4673_v38, %v448_v21 }
 0x982   :  { %v521_v39 = vpop.permute.xlu0 %520 }
 0x983   :  { %v523_v40 = vmul.f32 %v4673_v38, %v521_v39 }
 0x985   :  { %525 = vrot.lane.b32.xlu1 %v523_v40, %s4953_s22 }
 0x9f7   :  { %v526_v42 = vpop.permute.xlu1 %525 }
 0x9f8   :  { %v528_v43 = vadd.f32 %v526_v42, %v518_v41 }
 0x9fa   :  { %4674 = vtanh.f32 %v528_v43 }
 0xa07   :  { %v4675_v44 = vpop.eup %4674 }
 0xa08   :  { %531 = vrot.lane.b32.xlu0 %v4675_v44, %s4953_s22 }
 0xa7a   :  { %v532_v45 = vpop.permute.xlu0 %531 }
 0xa7b   :  { %v5131_v46 = vmul.f32 %v4673_v38, %v532_v45 }
 0xa7d   :  { %v543_v47 = vpack.c.bf16 %v5131_v46, %v5131_v46 }
 0xa7f   :  { %545 = vrot.lane.b32.xlu1 %v543_v47, %s4945_s27 }
 0xaf1   :  { %v546_v48 = vpop.permute.xlu1 %545 }
 0xaf2   :  { %4258 = vmatmul.mubr.msk.bf16.vlgmr.msra.gmra.mxu0 %vm227_vm2, %v546_v48 }
 0xaf3   :  { %4270 = vmatpush3.bf16.msra.mxu0 %v5012_v3  ;;  %4273 = vmatprep.mubr.msk.bf16.mxu0 %vm4951_vm0, %v4950_v0 }
 0xaf4   :  { %4271 = vmatprep.subr.bf16.mxu0 %v4950_v0 }
 0xaf7   :  { %4272 = vmatpush3.bf16.msra.mxu0 %v5022_v6 }
 0xbb2   :  { %v584_v50 = vpop.f32.mrf.mxu0 }
 0xbb3   :  { %v590_v51 = vadd.f32 %v584_v50, %v188_v49 }
 0xbb4   :  { %v4259_v52 = vpop.f32.mrf.mxu0 }
 0xbb5   :  { %4676 = vtanh.f32 %v590_v51  ;;  %v3916_v57 = vmul.f32 -1.442695, %v590_v51  ;;  %v870_v52 = vld [vmem:[%s5867_s2 + $0x18] sm:$0xff] }
 0xbb6   :  { %v587_v53 = vpop.f32.mrf.mxu0  ;;  %4285 = vmatprep.subr.mxu0 %v870_v52 }
 0xbb7   :  { %4678 = vpow2.f32 %v3916_v57  ;;  %v869_v53 = vld [vmem:[%s5867_s2 + $0x10] sm:$0xff] }
 0xbb8   :  { %v4260_v54 = vpop.f32.mrf.mxu0 }
 0xbb9   :  { %v867_v54 = vld [vmem:[%s5867_s2] sm:$0xff] }
 0xbc2   :  { %v4677_v55 = vpop.eup %4676 }
 0xbc3   :  { %600 = vrot.lane.b32.xlu0 %v4677_v55, %s4953_s22 }
 0xbc4   :  { %v4679_v58 = vpop.eup %4678 }
 0xbc5   :  { %v594_v59 = vadd.f32 1.0, %v4679_v58 }
 0xbc7   :  { %4680 = vrcp.f32 %v594_v59 }
 0xbd4   :  { %v4681_v60 = vpop.eup %4680 }
 0xbd5   :  { %v598_v62 = vmul.f32 %v4681_v60, %v528_v43 }
 0xc35   :  { %v601_v2 = vpop.permute.xlu0 %600 }
 0xc36   :  { %v603_v4 = vmul.f32 %v4681_v60, %v601_v2 }
 0xc38   :  { %605 = vrot.lane.b32.xlu1 %v603_v4, %s4953_s22 }
 0xcaa   :  { %v606_v5 = vpop.permute.xlu1 %605 }
 0xcab   :  { %v608_v8 = vadd.f32 %v606_v5, %v598_v62  ;;  %v5203_v62 = vld [vmem:[#allocation7 + $0x18] sm:$0xff]  }
 0xcad   :  { %4682 = vtanh.f32 %v608_v8 }
 0xcba   :  { %v4683_v10 = vpop.eup %4682 }
 0xcbb   :  { %611 = vrot.lane.b32.xlu0 %v4683_v10, %s4953_s22 }
 0xd2d   :  { %v612_v11 = vpop.permute.xlu0 %611 }
 0xd2e   :  { %v5147_v12 = vmul.f32 %v4681_v60, %v612_v11 }
 0xd30   :  { %v623_v13 = vpack.c.bf16 %v5147_v12, %v5147_v12 }
 0xd32   :  { %625 = vrot.lane.b32.xlu1 %v623_v13, %s4945_s27 }
 0xda4   :  { %v626_v14 = vpop.permute.xlu1 %625 }
 0xda5   :  { %4266 = vmatmul.mubr.msk.bf16.vlgmr.msra.gmra.mxu1 %vm227_vm2, %v626_v14 }
 0xda6   :  { %4278 = vmatpush3.bf16.msra.mxu1 %v5012_v3  ;;  %4281 = vmatprep.mubr.msk.bf16.mxu1 %vm4951_vm0, %v4950_v0 }
 0xda7   :  { %4279 = vmatprep.subr.bf16.mxu1 %v4950_v0 }
 0xdaa   :  { %4280 = vmatpush3.bf16.msra.mxu1 %v5022_v6 }
 0xdab   :  { %4305 = vmatprep.subr.bf16.mxu1 %v4950_v0 }
 0xe65   :  { %v664_v16 = vpop.f32.mrf.mxu1 }
 0xe66   :  { %v670_v17 = vadd.f32 %v664_v16, %v193_v15  ;;  %v5233_v16 = vld [vmem:[%s5869_s4 + $0x1] ss:$0 sm:$0xff] }
 0xe67   :  { %v4267_v18 = vpop.f32.mrf.mxu1 }
 0xe68   :  { %4684 = vtanh.f32 %v670_v17  ;;  %v3918_v3 = vmul.f32 -1.442695, %v670_v17 }
 0xe69   :  { %v667_v19 = vpop.f32.mrf.mxu1 }
 0xe6a   :  { %4686 = vpow2.f32 %v3918_v3 }
 0xe6b   :  { %v4268_v20 = vpop.f32.mrf.mxu1 }
 0xe75   :  { %v4685_v21 = vpop.eup %4684 }
 0xe76   :  { %680 = vrot.lane.b32.xlu0 %v4685_v21, %s4953_s22 }
 0xe77   :  { %v4687_v22 = vpop.eup %4686 }
 0xe78   :  { %v674_v23 = vadd.f32 1.0, %v4687_v22 }
 0xe7a   :  { %4688 = vrcp.f32 %v674_v23 }
 0xe87   :  { %v4689_v6 = vpop.eup %4688 }
 0xe88   :  { %v678_v61 = vmul.f32 %v4689_v6, %v608_v8  ;;  %v203_v8 = vadd.f32 %v5107_v63, %v5043_v9 }
 0xee8   :  { %v681_v25 = vpop.permute.xlu0 %680 }
 0xee9   :  { %v683_v26 = vmul.f32 %v4689_v6, %v681_v25 }
 0xeeb   :  { %685 = vrot.lane.b32.xlu1 %v683_v26, %s4953_s22 }
 0xf5d   :  { %v686_v27 = vpop.permute.xlu1 %685 }
 0xf5e   :  { %v688_v28 = vadd.f32 %v686_v27, %v678_v61 }
 0xf60   :  { %4690 = vtanh.f32 %v688_v28 }
 0xf6d   :  { %v4691_v30 = vpop.eup %4690 }
 0xf6e   :  { %691 = vrot.lane.b32.xlu0 %v4691_v30, %s4953_s22 }
 0xfe0   :  { %v692_v31 = vpop.permute.xlu0 %691 }
 0xfe1   :  { %v5164_v32 = vmul.f32 %v4689_v6, %v692_v31 }
 0xfe3   :  { %v703_v33 = vpack.c.bf16 %v5164_v32, %v5164_v32 }
 0xfe5   :  { %705 = vrot.lane.b32.xlu1 %v703_v33, %s4945_s27 }
0x1057   :  { %v706_v34 = vpop.permute.xlu1 %705 }
0x1058   :  { %4274 = vmatmul.mubr.msk.bf16.vlgmr.msra.gmra.mxu0 %vm227_vm2, %v706_v34 }
0x1059   :  { %4286 = vmatpush3.msra.mxu0 %v870_v52 }
0x105a   :  { %4287 = vmatprep.subr.mxu0 %v869_v53 }
0x105b   :  { %4288 = vmatpush3.msra.mxu0 %v869_v53 }
0x1118   :  { %v744_v36 = vpop.f32.mrf.mxu0 }
0x1119   :  { %v750_v37 = vadd.f32 %v744_v36, %v198_v35 }
0x111a   :  { %v4275_v38 = vpop.f32.mrf.mxu0 }
0x111b   :  { %4692 = vtanh.f32 %v750_v37  ;;  %v3920_v42 = vmul.f32 -1.442695, %v750_v37 }
0x111c   :  { %v747_v39 = vpop.f32.mrf.mxu0 }
0x111d   :  { %4694 = vpow2.f32 %v3920_v42 }
0x111e   :  { %v4276_v40 = vpop.f32.mrf.mxu0 }
0x1128   :  { %v4693_v41 = vpop.eup %4692 }
0x1129   :  { %760 = vrot.lane.b32.xlu0 %v4693_v41, %s4953_s22 }
0x112a   :  { %v4695_v43 = vpop.eup %4694 }
0x112b   :  { %v754_v44 = vadd.f32 1.0, %v4695_v43 }
0x112d   :  { %4696 = vrcp.f32 %v754_v44 }
0x113a   :  { %v4697_v45 = vpop.eup %4696 }
0x113b   :  { %v758_v1 = vmul.f32 %v4697_v45, %v688_v28 }
0x119b   :  { %v761_v47 = vpop.permute.xlu0 %760 }
0x119c   :  { %v763_v48 = vmul.f32 %v4697_v45, %v761_v47 }
0x119e   :  { %765 = vrot.lane.b32.xlu1 %v763_v48, %s4953_s22 }
0x11a2   :  { %297 = vrot.lane.b32.xlu1 %v5049_v29, %s4945_s27  ;;  %v868_v29 = vld [vmem:[%s5867_s2 + $0x8] sm:$0xff] }
0x11a3   :  { %4289 = vmatprep.subr.mxu0 %v868_v29 }
0x11a4   :  { %4290 = vmatpush3.msra.mxu0 %v868_v29 }
0x11a5   :  { %4291 = vmatprep.subr.mxu0 %v867_v54 }
0x11a6   :  { %4292 = vmatpush3.msra.mxu0 %v867_v54 }
0x11a7   :  { %4321 = vmatprep.subr.bf16.mxu0 %v4950_v0 }
0x1210   :  { %v766_v49 = vpop.permute.xlu1 %765 }
0x1211   :  { %v5176_v50 = vadd.f32 %v766_v49, %v758_v1 }
0x1213   :  { %4698 = vtanh.f32 %v5176_v50 }
0x1214   :  { %v298_v51 = vpop.permute.xlu1 %297 }
0x1215   :  { %300 = vst.msk [vmem:[#allocation2] sm:$0xff] %vm227_vm2, %v298_v51 }
0x121c   :  { %v878_v55 = vld [vmem:[#allocation2] sm:$0xff] }
0x121d   :  { %4293 = vmatprep.mubr.msk.f32.mxu0 %vm227_vm2, %v878_v55 }
0x1220   :  { %v4699_v57 = vpop.eup %4698 }
0x1221   :  { %771 = vrot.lane.b32.xlu0 %v4699_v57, %s4953_s22 }
0x1225   :  { %376 = vrot.lane.b32.xlu0 %v5091_v56, %s4945_s27  ;;  %v5208_v56 = vld [vmem:[#allocation7 + $0x10] sm:$0xff]  }
0x1293   :  { %v772_v58 = vpop.permute.xlu0 %771 }
0x1294   :  { %v5197_v59 = vmul.f32 %v4697_v45, %v772_v58 }
0x1296   :  { %v783_v60 = vpack.c.bf16 %v5197_v59, %v5197_v59 }
0x1297   :  { %v377_v2 = vpop.permute.xlu0 %376 }
0x1298   :  { %380 = vst.msk [vmem:[#allocation2 + $0x8] sm:$0xff] %vm227_vm2, %v377_v2  ;;  %785 = vrot.lane.b32.xlu1 %v783_v60, %s4945_s27 }
0x129f   :  { %v879_v4 = vld [vmem:[#allocation2 + $0x8] sm:$0xff] }
0x12a0   :  { %4294 = vmatmul.mubr.msk.f32.vlgmr.msra.gmra.mxu0 %vm227_vm2, %v879_v4 }
0x12a1   :  { %4322 = vmatpush3.bf16.msra.mxu0 %v5203_v62 }
0x12a2   :  { %4323 = vmatprep.subr.bf16.mxu0 %v4950_v0 }
0x12a5   :  { %4324 = vmatpush3.bf16.msra.mxu0 %v5208_v56 }
0x12a6   :  { %4337 = vmatprep.subr.bf16.mxu0 %v4950_v0 }
0x130a   :  { %v786_v5 = vpop.permute.xlu1 %785 }
0x130b   :  { %4282 = vmatmul.mubr.msk.bf16.vlgmr.msra.gmra.mxu1 %vm227_vm2, %v786_v5 }
0x130c   :  { %4306 = vmatpush3.bf16.msra.mxu1 %v5203_v62  ;;  %4309 = vmatprep.mubr.msk.bf16.mxu1 %vm4951_vm0, %v4950_v0 }
0x130d   :  { %4307 = vmatprep.subr.bf16.mxu1 %v4950_v0 }
0x1310   :  { %4308 = vmatpush3.bf16.msra.mxu1 %v5208_v56 }
0x1311   :  { %4313 = vmatprep.subr.bf16.mxu1 %v4950_v0 }
0x1313   :  { %4310 = vmatmul.mubr.bf16.vlgmr.msra.gmra.mxu1 %v4952_v7 }
0x1314   :  { %4314 = vmatpush3.bf16.msra.mxu1 %v5203_v62  ;;  %4317 = vmatprep.mubr.msk.bf16.mxu1 %vm4951_vm0, %v4950_v0 }
0x1315   :  { %4315 = vmatprep.subr.bf16.mxu1 %v4950_v0 }
0x1318   :  { %4316 = vmatpush3.bf16.msra.mxu1 %v5208_v56 }
0x1319   :  { %4329 = vmatprep.subr.bf16.mxu1 %v4950_v0 }
0x1360   :  { %v5228_v10 = vpop.f32.mrf.mxu0 }
0x1362   :  { %v982_v7 = vpop.f32.mrf.mxu0 }
0x1363   :  { %v983_v18 = vadd.f32 %v5233_v16, %v982_v7 }
0x13cb   :  { %v824_v11 = vpop.f32.mrf.mxu1 }
0x13cc   :  { %v830_v13 = vadd.f32 %v824_v11, %v203_v8 }
0x13cd   :  { %v4283_v14 = vpop.f32.mrf.mxu1 }
0x13ce   :  { %v3922_v34 = vmul.f32 -1.442695, %v830_v13 }
0x13cf   :  { %v827_v15 = vpop.f32.mrf.mxu1 }
0x13d1   :  { %v4284_v17 = vpop.f32.mrf.mxu1 }
0x13d3   :  { %v1076_v19 = vpop.f32.mrf.mxu1 }
0x13d4   :  { %v1082_v20 = vadd.f32 %v1076_v19, %v983_v18 }
0x13d5   :  { %v4311_v21 = vpop.f32.mrf.mxu1 }
0x13d6   :  { %4700 = vtanh.f32 %v1082_v20  ;;  %v3935_v22 = vmul.f32 -1.442695, %v1082_v20 }
0x13d7   :  { %v1079_v9 = vpop.f32.mrf.mxu1 }
0x13d8   :  { %4702 = vpow2.f32 %v3935_v22 }
0x13d9   :  { %v4312_v63 = vpop.f32.mrf.mxu1 }
0x13e3   :  { %v4701_v3 = vpop.eup %4700 }
0x13e4   :  { %1092 = vrot.lane.b32.xlu0 %v4701_v3, %s4953_s22 }
0x13e5   :  { %v4703_v23 = vpop.eup %4702 }
0x13e6   :  { %v1086_v6 = vadd.f32 1.0, %v4703_v23 }
0x13e8   :  { %4704 = vrcp.f32 %v1086_v6 }
0x13f5   :  { %v4705_v25 = vpop.eup %4704 }
0x13f6   :  { %v1090_v27 = vmul.f32 0.0, %v4705_v25 }
0x1456   :  { %v1093_v26 = vpop.permute.xlu0 %1092 }
0x1457   :  { %v1095_v61 = vmul.f32 %v4705_v25, %v1093_v26 }
0x1459   :  { %1097 = vrot.lane.b32.xlu1 %v1095_v61, %s4953_s22 }
0x14cb   :  { %v1098_v28 = vpop.permute.xlu1 %1097 }
0x14cc   :  { %v5238_v30 = vadd.f32 %v1098_v28, %v1090_v27 }
0x14ce   :  { %4706 = vtanh.f32 %v5238_v30 }
0x14cf   :  { %4708 = vtanh.f32 %v830_v13 }
0x14d0   :  { %4710 = vpow2.f32 %v3922_v34 }
0x14db   :  { %v4707_v31 = vpop.eup %4706 }
0x14dc   :  { %1103 = vrot.lane.b32.xlu0 %v4707_v31, %s4953_s22  ;;  %v4709_v33 = vpop.eup %4708 }
0x14dd   :  { %v4711_v35 = vpop.eup %4710 }
0x14de   :  { %v834_v36 = vadd.f32 1.0, %v4711_v35 }
0x14e0   :  { %840 = vrot.lane.b32.xlu0 %v4709_v33, %s4953_s22  ;;  %4712 = vrcp.f32 %v834_v36 }
0x14ed   :  { %v4713_v40 = vpop.eup %4712 }
0x14ee   :  { %v838_v44 = vmul.f32 %v4713_v40, %v5176_v50 }
0x154e   :  { %v1104_v37 = vpop.permute.xlu0 %1103 }
0x154f   :  { %v5243_v38 = vmul.f32 %v4705_v25, %v1104_v37 }
0x1551   :  { %v1113_v39 = vpack.c.bf16 %v5243_v38, %v5243_v38 }
0x1552   :  { %v841_v41 = vpop.permute.xlu0 %840 }
0x1553   :  { %v843_v42 = vmul.f32 %v4713_v40, %v841_v41  ;;  %1115 = vrot.lane.b32.xlu1 %v1113_v39, %s4945_s27 }
0x1555   :  { %845 = vrot.lane.b32.xlu0 %v843_v42, %s4953_s22 }
0x15c5   :  { %v1116_v43 = vpop.permute.xlu1 %1115 }
0x15c6   :  { %4318 = vmatmul.mubr.msk.bf16.vlgmr.msra.gmra.mxu1 %vm227_vm2, %v1116_v43 }
0x15c7   :  { %v846_v45 = vpop.permute.xlu0 %845  ;;  %4330 = vmatpush3.bf16.msra.mxu1 %v5203_v62  ;;  %4333 = vmatprep.mubr.msk.bf16.mxu1 %vm4951_vm0, %v4950_v0 }
0x15c8   :  { %v5254_v47 = vadd.f32 %v846_v45, %v838_v44  ;;  %4331 = vmatprep.subr.bf16.mxu1 %v4950_v0 }
0x15ca   :  { %4714 = vtanh.f32 %v5254_v47 }
0x15cb   :  { %4332 = vmatpush3.bf16.msra.mxu1 %v5208_v56 }
0x15cc   :  { %4345 = vmatprep.subr.bf16.mxu1 %v4950_v0 }
0x15d7   :  { %v4715_v48 = vpop.eup %4714 }
0x15d8   :  { %851 = vrot.lane.b32.xlu0 %v4715_v48, %s4953_s22 }
0x15dc   :  { %456 = vrot.lane.b32.xlu0 %v5115_v24, %s4945_s27  ;;  %v988_v24 = vadd.f32 %v5228_v10, %v5233_v16 }
0x15e0   :  { %616 = vrot.lane.b32.xlu0 %v5147_v12, %s4945_s27 }
0x15e4   :  { %776 = vrot.lane.b32.xlu0 %v5197_v59, %s4945_s27 }
0x164a   :  { %v852_v1 = vpop.permute.xlu0 %851 }
0x164b   :  { %v854_v14 = vmul.f32 %v4713_v40, %v852_v1 }
0x164e   :  { %v457_v49 = vpop.permute.xlu0 %456 }
0x164f   :  { %460 = vst.msk [vmem:[#allocation2 + $0x10] sm:$0xff] %vm227_vm2, %v457_v49 }
0x1652   :  { %v617_v50 = vpop.permute.xlu0 %616 }
0x1653   :  { %620 = vst.msk [vmem:[#allocation2 + $0x20] sm:$0xff] %vm227_vm2, %v617_v50 }
0x1656   :  { %v777_v51 = vpop.permute.xlu0 %776  ;;  %v880_v52 = vld [vmem:[#allocation2 + $0x10] sm:$0xff] }
0x1657   :  { %780 = vst.msk [vmem:[#allocation2 + $0x30] sm:$0xff] %vm227_vm2, %v777_v51  ;;  %4296 = vmatprep.mubr.msk.f32.mxu0 %vm227_vm2, %v880_v52 }
0x165e   :  { %v884_v9 = vld [vmem:[#allocation2 + $0x30] sm:$0xff] }
0x1686   :  { %v1154_v12 = vpop.f32.mrf.mxu1 }
0x1687   :  { %v1160_v53 = vadd.f32 %v1154_v12, %v988_v24 }
0x1688   :  { %v4319_v29 = vpop.f32.mrf.mxu1 }
0x1689   :  { %4716 = vtanh.f32 %v1160_v53  ;;  %v3937_v58 = vmul.f32 -1.442695, %v1160_v53 }
0x168a   :  { %v1157_v54 = vpop.f32.mrf.mxu1 }
0x168b   :  { %4718 = vpow2.f32 %v3937_v58 }
0x168c   :  { %v4320_v55 = vpop.f32.mrf.mxu1 }
0x1696   :  { %v4717_v57 = vpop.eup %4716 }
0x1697   :  { %1170 = vrot.lane.b32.xlu1 %v4717_v57, %s4953_s22 }
0x1698   :  { %v4719_v59 = vpop.eup %4718 }
0x1699   :  { %v1164_v60 = vadd.f32 1.0, %v4719_v59 }
0x169b   :  { %4720 = vrcp.f32 %v1164_v60 }
0x16a8   :  { %v4721_v2 = vpop.eup %4720 }
0x16a9   :  { %v1168_v8 = vmul.f32 %v4721_v2, %v5238_v30 }
0x1709   :  { %v1171_v4 = vpop.permute.xlu1 %1170 }
0x170a   :  { %v1173_v5 = vmul.f32 %v4721_v2, %v1171_v4 }
0x170c   :  { %1175 = vrot.lane.b32.xlu1 %v1173_v5, %s4953_s22 }
0x177e   :  { %v1176_v10 = vpop.permute.xlu1 %1175 }
0x177f   :  { %v1178_v11 = vadd.f32 %v1176_v10, %v1168_v8 }
0x1781   :  { %4722 = vtanh.f32 %v1178_v11 }
0x178e   :  { %v4723_v13 = vpop.eup %4722 }
0x178f   :  { %1181 = vrot.lane.b32.xlu1 %v4723_v13, %s4953_s22 }
0x1793   :  { %536 = vrot.lane.b32.xlu1 %v5131_v46, %s4945_s27 }
0x1797   :  { %696 = vrot.lane.b32.xlu1 %v5164_v32, %s4945_s27  ;;  %v882_v32 = vld [vmem:[#allocation2 + $0x20] sm:$0xff] }
0x179b   :  { %856 = vrot.lane.b32.xlu1 %v854_v14, %s4945_s27 }
0x1801   :  { %v1182_v7 = vpop.permute.xlu1 %1181 }
0x1802   :  { %v5282_v15 = vmul.f32 %v4721_v2, %v1182_v7 }
0x1804   :  { %v1192_v17 = vpack.c.bf16 %v5282_v15, %v5282_v15 }
0x1805   :  { %v537_v18 = vpop.permute.xlu1 %536 }
0x1806   :  { %540 = vst.msk [vmem:[#allocation2 + $0x18] sm:$0xff] %vm227_vm2, %v537_v18  ;;  %1194 = vrot.lane.b32.xlu0 %v1192_v17, %s4945_s27 }
0x1809   :  { %v697_v19 = vpop.permute.xlu1 %696 }
0x180a   :  { %700 = vst.msk [vmem:[#allocation2 + $0x28] sm:$0xff] %vm227_vm2, %v697_v19 }
0x180d   :  { %v857_v46 = vpop.permute.xlu1 %856  ;;  %v881_v20 = vld [vmem:[#allocation2 + $0x18] sm:$0xff] }
0x180e   :  { %860 = vst.msk [vmem:[#allocation2 + $0x38] sm:$0xff] %vm227_vm2, %v857_v46  ;;  %861 = vst.msk [vmem:[#allocation5] sm:$0xff] %vm227_vm2, %v857_v46  ;;  %4297 = vmatmul.mubr.msk.f32.gmra.mxu0 %vm227_vm2, %v881_v20 }
0x180f   :  { %4299 = vmatprep.mubr.msk.f32.mxu0 %vm227_vm2, %v882_v32 }
0x1811   :  { %v883_v21 = vld [vmem:[#allocation2 + $0x28] sm:$0xff] }
0x1812   :  { %4300 = vmatmul.mubr.msk.f32.gmra.mxu0 %vm227_vm2, %v883_v21 }
0x1813   :  { %4302 = vmatprep.mubr.msk.f32.mxu0 %vm227_vm2, %v884_v9 }
0x1815   :  { %v885_v63 = vld [vmem:[#allocation2 + $0x38] sm:$0xff] }
0x1816   :  { %4303 = vmatmul.mubr.msk.f32.gmra.mxu0 %vm227_vm2, %v885_v63 }
0x1817   :  { %4325 = vmatprep.mubr.msk.bf16.mxu0 %vm4951_vm0, %v4950_v0 }
0x1878   :  { %v1195_v3 = vpop.permute.xlu0 %1194 }
0x1879   :  { %4326 = vmatmul.mubr.msk.bf16.vlgmr.msra.gmra.mxu0 %vm227_vm2, %v1195_v3 }
0x187a   :  { %4338 = vmatpush3.bf16.msra.mxu0 %v5203_v62  ;;  %4341 = vmatprep.mubr.msk.bf16.mxu0 %vm4951_vm0, %v4950_v0 }
0x187b   :  { %4339 = vmatprep.subr.bf16.mxu0 %v4950_v0 }
0x187e   :  { %4340 = vmatpush3.bf16.msra.mxu0 %v5208_v56 }
0x187f   :  { %4353 = vmatprep.subr.bf16.mxu0 %v4950_v0 }
0x18ce   :  { %v4298_v22 = vpop.f32.mrf.mxu0 }
0x18cf   :  { %v998_v52 = vadd.f32 %v4298_v22, %v5233_v16 }
0x18d0   :  { %v992_v23 = vpop.f32.mrf.mxu0 }
0x18d1   :  { %v993_v27 = vadd.f32 %v5233_v16, %v992_v23 }
0x18d2   :  { %v5305_v6 = vpop.f32.mrf.mxu0 }
0x18d4   :  { %v5307_v25 = vpop.f32.mrf.mxu0 }
0x18d5   :  { %v1003_v18 = vadd.f32 %v5233_v16, %v5307_v25 }
0x18d6   :  { %v5309_v26 = vpop.f32.mrf.mxu0 }
0x18d8   :  { %v5311_v61 = vpop.f32.mrf.mxu0 }
0x1939   :  { %v1233_v28 = vpop.f32.mrf.mxu0 }
0x193a   :  { %v1239_v30 = vadd.f32 %v1233_v28, %v993_v27 }
0x193b   :  { %v4327_v31 = vpop.f32.mrf.mxu0 }
0x193c   :  { %4724 = vtanh.f32 %v1239_v30  ;;  %v3939_v36 = vmul.f32 -1.442695, %v1239_v30 }
0x193d   :  { %v1236_v33 = vpop.f32.mrf.mxu0 }
0x193e   :  { %4726 = vpow2.f32 %v3939_v36 }
0x193f   :  { %v4328_v34 = vpop.f32.mrf.mxu0 }
0x1949   :  { %v4725_v35 = vpop.eup %4724 }
0x194a   :  { %1249 = vrot.lane.b32.xlu1 %v4725_v35, %s4953_s22 }
0x194b   :  { %v4727_v37 = vpop.eup %4726 }
0x194c   :  { %v1243_v39 = vadd.f32 1.0, %v4727_v37 }
0x194e   :  { %4728 = vrcp.f32 %v1243_v39  ;;  %v1008_v39 = vadd.f32 %v5305_v6, %v5233_v16 }
0x195b   :  { %v4729_v40 = vpop.eup %4728 }
0x195c   :  { %v1247_v43 = vmul.f32 %v4729_v40, %v1178_v11 }
0x19bc   :  { %v1250_v41 = vpop.permute.xlu1 %1249 }
0x19bd   :  { %v1252_v42 = vmul.f32 %v4729_v40, %v1250_v41 }
0x19bf   :  { %1254 = vrot.lane.b32.xlu0 %v1252_v42, %s4953_s22 }
0x1a31   :  { %v1255_v44 = vpop.permute.xlu0 %1254 }
0x1a32   :  { %v1257_v45 = vadd.f32 %v1255_v44, %v1247_v43 }
0x1a34   :  { %4730 = vtanh.f32 %v1257_v45 }
0x1a41   :  { %v4731_v48 = vpop.eup %4730 }
0x1a42   :  { %1260 = vrot.lane.b32.xlu1 %v4731_v48, %s4953_s22 }
0x1ab4   :  { %v1261_v1 = vpop.permute.xlu1 %1260 }
0x1ab5   :  { %v5317_v49 = vmul.f32 %v4729_v40, %v1261_v1 }
0x1ab7   :  { %v1271_v50 = vpack.c.bf16 %v5317_v49, %v5317_v49 }
0x1ab9   :  { %1273 = vrot.lane.b32.xlu0 %v1271_v50, %s4945_s27 }
0x1b2b   :  { %v1274_v51 = vpop.permute.xlu0 %1273 }
0x1b2c   :  { %4334 = vmatmul.mubr.msk.bf16.vlgmr.msra.gmra.mxu1 %vm227_vm2, %v1274_v51 }
0x1b2d   :  { %4346 = vmatpush3.bf16.msra.mxu1 %v5203_v62  ;;  %4349 = vmatprep.mubr.msk.bf16.mxu1 %vm4951_vm0, %v4950_v0 }
0x1b2e   :  { %4347 = vmatprep.subr.bf16.mxu1 %v4950_v0 }
0x1b31   :  { %4348 = vmatpush3.bf16.msra.mxu1 %v5208_v56 }
0x1b32   :  { %4361 = vmatprep.subr.bf16.mxu1 %v4950_v0 }
0x1bec   :  { %v1312_v24 = vpop.f32.mrf.mxu1 }
0x1bed   :  { %v1318_v12 = vadd.f32 %v1312_v24, %v998_v52 }
0x1bee   :  { %v4335_v53 = vpop.f32.mrf.mxu1 }
0x1bef   :  { %4732 = vtanh.f32 %v1318_v12  ;;  %v3941_v57 = vmul.f32 -1.442695, %v1318_v12 }
0x1bf0   :  { %v1315_v29 = vpop.f32.mrf.mxu1 }
0x1bf1   :  { %4734 = vpow2.f32 %v3941_v57  ;;  %v1013_v57 = vadd.f32 %v5233_v16, %v5311_v61 }
0x1bf2   :  { %v4336_v54 = vpop.f32.mrf.mxu1 }
0x1bfc   :  { %v4733_v55 = vpop.eup %4732 }
0x1bfd   :  { %1328 = vrot.lane.b32.xlu1 %v4733_v55, %s4953_s22 }
0x1bfe   :  { %v4735_v58 = vpop.eup %4734 }
0x1bff   :  { %v1322_v59 = vadd.f32 1.0, %v4735_v58 }
0x1c01   :  { %4736 = vrcp.f32 %v1322_v59 }
0x1c0e   :  { %v4737_v60 = vpop.eup %4736 }
0x1c0f   :  { %v1326_v5 = vmul.f32 %v4737_v60, %v1257_v45 }
0x1c6f   :  { %v1329_v2 = vpop.permute.xlu1 %1328 }
0x1c70   :  { %v1331_v4 = vmul.f32 %v4737_v60, %v1329_v2 }
0x1c72   :  { %1333 = vrot.lane.b32.xlu0 %v1331_v4, %s4953_s22 }
0x1ce4   :  { %v1334_v8 = vpop.permute.xlu0 %1333 }
0x1ce5   :  { %v1336_v10 = vadd.f32 %v1334_v8, %v1326_v5 }
0x1ce7   :  { %4738 = vtanh.f32 %v1336_v10 }
0x1cf4   :  { %v4739_v11 = vpop.eup %4738 }
0x1cf5   :  { %1339 = vrot.lane.b32.xlu1 %v4739_v11, %s4953_s22 }
0x1d67   :  { %v1340_v13 = vpop.permute.xlu1 %1339 }
0x1d68   :  { %v5333_v14 = vmul.f32 %v4737_v60, %v1340_v13 }
0x1d6a   :  { %v1350_v7 = vpack.c.bf16 %v5333_v14, %v5333_v14 }
0x1d6c   :  { %1352 = vrot.lane.b32.xlu0 %v1350_v7, %s4945_s27 }
0x1dde   :  { %v1353_v17 = vpop.permute.xlu0 %1352 }
0x1ddf   :  { %4342 = vmatmul.mubr.msk.bf16.vlgmr.msra.gmra.mxu0 %vm227_vm2, %v1353_v17 }
0x1de0   :  { %4354 = vmatpush3.bf16.msra.mxu0 %v5203_v62  ;;  %4357 = vmatprep.mubr.msk.bf16.mxu0 %vm4951_vm0, %v4950_v0 }
0x1de1   :  { %4355 = vmatprep.subr.bf16.mxu0 %v4950_v0 }
0x1de4   :  { %4356 = vmatpush3.bf16.msra.mxu0 %v5208_v56 }
0x1e9f   :  { %v1391_v19 = vpop.f32.mrf.mxu0 }
0x1ea0   :  { %v1397_v46 = vadd.f32 %v1391_v19, %v1003_v18 }
0x1ea1   :  { %v4343_v20 = vpop.f32.mrf.mxu0 }
0x1ea2   :  { %4740 = vtanh.f32 %v1397_v46  ;;  %v3943_v63 = vmul.f32 -1.442695, %v1397_v46  ;;  %v3953_v20 = vld [vmem:[%s5867_s2 + $0x38] sm:$0xff] }
0x1ea3   :  { %v1394_v32 = vpop.f32.mrf.mxu0  ;;  %4369 = vmatprep.subr.mxu0 %v3953_v20 }
0x1ea4   :  { %4742 = vpow2.f32 %v3943_v63  ;;  %v3952_v32 = vld [vmem:[%s5867_s2 + $0x30] sm:$0xff] }
0x1ea5   :  { %v4344_v21 = vpop.f32.mrf.mxu0 }
0x1eaf   :  { %v4741_v9 = vpop.eup %4740 }
0x1eb0   :  { %1407 = vrot.lane.b32.xlu1 %v4741_v9, %s4953_s22  ;;  %v3950_v9 = vld [vmem:[%s5867_s2 + $0x20] sm:$0xff] }
0x1eb1   :  { %v4743_v3 = vpop.eup %4742 }
0x1eb2   :  { %v1401_v22 = vadd.f32 1.0, %v4743_v3 }
0x1eb4   :  { %4744 = vrcp.f32 %v1401_v22 }
0x1ec1   :  { %v4745_v23 = vpop.eup %4744 }
0x1ec2   :  { %v1405_v25 = vmul.f32 %v4745_v23, %v1336_v10 }
0x1f22   :  { %v1408_v27 = vpop.permute.xlu1 %1407 }
0x1f23   :  { %v1410_v28 = vmul.f32 %v4745_v23, %v1408_v27 }
0x1f25   :  { %1412 = vrot.lane.b32.xlu0 %v1410_v28, %s4953_s22 }
0x1f97   :  { %v1413_v30 = vpop.permute.xlu0 %1412 }
0x1f98   :  { %v1415_v31 = vadd.f32 %v1413_v30, %v1405_v25  ;;  %v5413_v30 = vld [vmem:[#allocation7 + $0x20] sm:$0xff]  }
0x1f9a   :  { %4746 = vtanh.f32 %v1415_v31 }
0x1fa7   :  { %v4747_v33 = vpop.eup %4746 }
0x1fa8   :  { %1418 = vrot.lane.b32.xlu1 %v4747_v33, %s4953_s22  ;;  %v1673_v33 = vld [vmem:[#allocation5] sm:$0xff] }
0x201a   :  { %v1419_v34 = vpop.permute.xlu1 %1418 }
0x201b   :  { %v5349_v35 = vmul.f32 %v4745_v23, %v1419_v34  ;;  %v1839_v34 = vpack.c.bf16 %v1673_v33, %v1673_v33 }
0x201d   :  { %v1429_v36 = vpack.c.bf16 %v5349_v35, %v5349_v35 }
0x201f   :  { %1431 = vrot.lane.b32.xlu0 %v1429_v36, %s4945_s27  ;;  %v1018_v36 = vadd.f32 %v5309_v26, %v5233_v16 }
0x2091   :  { %v1432_v37 = vpop.permute.xlu0 %1431 }
0x2092   :  { %4350 = vmatmul.mubr.msk.bf16.vlgmr.msra.gmra.mxu1 %vm227_vm2, %v1432_v37 }
0x2093   :  { %4362 = vmatpush3.bf16.msra.mxu1 %v5203_v62  ;;  %4365 = vmatprep.mubr.msk.bf16.mxu1 %vm4951_vm0, %v4950_v0 }
0x2094   :  { %4363 = vmatprep.subr.bf16.mxu1 %v4950_v0 }
0x2097   :  { %4364 = vmatpush3.bf16.msra.mxu1 %v5208_v56 }
0x2098   :  { %4389 = vmatprep.subr.bf16.mxu1 %v4950_v0 }
0x2152   :  { %v1470_v40 = vpop.f32.mrf.mxu1 }
0x2153   :  { %v1476_v41 = vadd.f32 %v1470_v40, %v1008_v39 }
0x2154   :  { %v4351_v42 = vpop.f32.mrf.mxu1 }
0x2155   :  { %4748 = vtanh.f32 %v1476_v41  ;;  %v3945_v62 = vmul.f32 -1.442695, %v1476_v41 }
0x2156   :  { %v1473_v43 = vpop.f32.mrf.mxu1 }
0x2157   :  { %4750 = vpow2.f32 %v3945_v62 }
0x2158   :  { %v4352_v44 = vpop.f32.mrf.mxu1 }
0x2159   :  { %v5439_v44 = vld [vmem:[%s5869_s4 + $0x2] ss:$0 sm:$0xff] }
0x2162   :  { %v4749_v45 = vpop.eup %4748 }
0x2163   :  { %1486 = vrot.lane.b32.xlu1 %v4749_v45, %s4953_s22 }
0x2164   :  { %v4751_v48 = vpop.eup %4750 }
0x2165   :  { %v1480_v1 = vadd.f32 1.0, %v4751_v48 }
0x2167   :  { %4752 = vrcp.f32 %v1480_v1 }
0x2174   :  { %v4753_v56 = vpop.eup %4752 }
0x2175   :  { %v1484_v6 = vmul.f32 %v4753_v56, %v1415_v31 }
0x21d5   :  { %v1487_v50 = vpop.permute.xlu1 %1486 }
0x21d6   :  { %v1489_v51 = vmul.f32 %v4753_v56, %v1487_v50 }
0x21d8   :  { %1491 = vrot.lane.b32.xlu0 %v1489_v51, %s4953_s22 }
0x224a   :  { %v1492_v52 = vpop.permute.xlu0 %1491 }
0x224b   :  { %v1494_v24 = vadd.f32 %v1492_v52, %v1484_v6 }
0x224d   :  { %4754 = vtanh.f32 %v1494_v24 }
0x225a   :  { %v4755_v12 = vpop.eup %4754 }
0x225b   :  { %1497 = vrot.lane.b32.xlu1 %v4755_v12, %s4953_s22 }
0x22cd   :  { %v1498_v53 = vpop.permute.xlu1 %1497 }
0x22ce   :  { %v5366_v29 = vmul.f32 %v4753_v56, %v1498_v53 }
0x22d0   :  { %v1508_v54 = vpack.c.bf16 %v5366_v29, %v5366_v29 }
0x22d2   :  { %1510 = vrot.lane.b32.xlu0 %v1508_v54, %s4945_s27 }
0x2344   :  { %v1511_v55 = vpop.permute.xlu0 %1510 }
0x2345   :  { %4358 = vmatmul.mubr.msk.bf16.vlgmr.msra.gmra.mxu0 %vm227_vm2, %v1511_v55 }
0x2346   :  { %4370 = vmatpush3.msra.mxu0 %v3953_v20 }
0x2347   :  { %4371 = vmatprep.subr.mxu0 %v3952_v32 }
0x2348   :  { %4372 = vmatpush3.msra.mxu0 %v3952_v32 }
0x2405   :  { %v1549_v58 = vpop.f32.mrf.mxu0 }
0x2406   :  { %v1555_v59 = vadd.f32 %v1549_v58, %v1013_v57 }
0x2407   :  { %v4359_v60 = vpop.f32.mrf.mxu0 }
0x2408   :  { %4756 = vtanh.f32 %v1555_v59  ;;  %v3947_v8 = vmul.f32 -1.442695, %v1555_v59 }
0x2409   :  { %v1552_v2 = vpop.f32.mrf.mxu0 }
0x240a   :  { %4758 = vpow2.f32 %v3947_v8 }
0x240b   :  { %v4360_v4 = vpop.f32.mrf.mxu0 }
0x2415   :  { %v4757_v5 = vpop.eup %4756 }
0x2416   :  { %1565 = vrot.lane.b32.xlu1 %v4757_v5, %s4953_s22 }
0x2417   :  { %v4759_v10 = vpop.eup %4758 }
0x2418   :  { %v1559_v11 = vadd.f32 1.0, %v4759_v10 }
0x241a   :  { %4760 = vrcp.f32 %v1559_v11 }
0x2427   :  { %v4761_v13 = vpop.eup %4760 }
0x2428   :  { %v1563_v61 = vmul.f32 %v4761_v13, %v1494_v24 }
0x2488   :  { %v1566_v7 = vpop.permute.xlu1 %1565 }
0x2489   :  { %v1568_v17 = vmul.f32 %v4761_v13, %v1566_v7 }
0x248b   :  { %1570 = vrot.lane.b32.xlu0 %v1568_v17, %s4953_s22 }
0x248f   :  { %1108 = vrot.lane.b32.xlu0 %v5243_v38, %s4945_s27  ;;  %v3951_v38 = vld [vmem:[%s5867_s2 + $0x28] sm:$0xff] }
0x2490   :  { %4373 = vmatprep.subr.mxu0 %v3951_v38 }
0x2491   :  { %4374 = vmatpush3.msra.mxu0 %v3951_v38 }
0x2492   :  { %4375 = vmatprep.subr.mxu0 %v3950_v9 }
0x2493   :  { %4376 = vmatpush3.msra.mxu0 %v3950_v9 }
0x2494   :  { %4405 = vmatprep.subr.bf16.mxu0 %v4950_v0 }
0x24fd   :  { %v1571_v18 = vpop.permute.xlu0 %1570 }
0x24fe   :  { %v5378_v19 = vadd.f32 %v1571_v18, %v1563_v61 }
0x2500   :  { %4762 = vtanh.f32 %v5378_v19 }
0x2501   :  { %v1109_v46 = vpop.permute.xlu0 %1108 }
0x2502   :  { %1111 = vst.msk [vmem:[#allocation3] sm:$0xff] %vm227_vm2, %v1109_v46 }
0x2509   :  { %v1687_v21 = vld [vmem:[#allocation3] sm:$0xff] }
0x250a   :  { %4377 = vmatprep.mubr.msk.f32.mxu0 %vm227_vm2, %v1687_v21 }
0x250d   :  { %v4763_v63 = vpop.eup %4762 }
0x250e   :  { %1576 = vrot.lane.b32.xlu1 %v4763_v63, %s4953_s22 }
0x2512   :  { %1186 = vrot.lane.b32.xlu1 %v5282_v15, %s4945_s27  ;;  %v5408_v15 = vld [vmem:[#allocation7 + $0x28] sm:$0xff]  }
0x2516   :  { %863 = vrot.lane.b32.xlu1 %v5254_v47, %s4954_s29 }
0x2580   :  { %v1577_v3 = vpop.permute.xlu1 %1576 }
0x2581   :  { %v5401_v22 = vmul.f32 %v4761_v13, %v1577_v3 }
0x2583   :  { %v1587_v23 = vpack.c.bf16 %v5401_v22, %v5401_v22 }
0x2584   :  { %v1187_v27 = vpop.permute.xlu1 %1186 }
0x2585   :  { %1190 = vst.msk [vmem:[#allocation3 + $0x8] sm:$0xff] %vm227_vm2, %v1187_v27  ;;  %1589 = vrot.lane.b32.xlu0 %v1587_v23, %s4945_s27 }
0x2588   :  { %v864_v28 = vpop.permute.xlu1 %863 }
0x2589   :  { %866 = vst.msk [vmem:[#allocation6] sm:$0xff] %vm227_vm2, %v864_v28 }
0x258c   :  { %v1688_v25 = vld [vmem:[#allocation3 + $0x8] sm:$0xff] }
0x258d   :  { %4378 = vmatmul.mubr.msk.f32.vlgmr.msra.gmra.mxu0 %vm227_vm2, %v1688_v25 }
0x258e   :  { %4406 = vmatpush3.bf16.msra.mxu0 %v5408_v15 }
0x258f   :  { %4407 = vmatprep.subr.bf16.mxu0 %v4950_v0 }
0x2590   :  { %v1674_v47 = vld [vmem:[#allocation6] sm:$0xff] }
0x2591   :  { %1904 = vrot.lane.b32.xlu1 %v1674_v47, %s4953_s22 }
0x2592   :  { %4408 = vmatpush3.bf16.msra.mxu0 %v5413_v30 }
0x2593   :  { %4421 = vmatprep.subr.bf16.mxu0 %v4950_v0 }
0x25f7   :  { %v1590_v31 = vpop.permute.xlu0 %1589 }
0x25f8   :  { %4366 = vmatmul.mubr.msk.bf16.vlgmr.msra.gmra.mxu1 %vm227_vm2, %v1590_v31 }
0x25f9   :  { %4390 = vmatpush3.bf16.msra.mxu1 %v5408_v15  ;;  %4393 = vmatprep.mubr.msk.bf16.mxu1 %vm4951_vm0, %v4950_v0 }
0x25fa   :  { %4391 = vmatprep.subr.bf16.mxu1 %v4950_v0 }
0x25fd   :  { %4392 = vmatpush3.bf16.msra.mxu1 %v5413_v30 }
0x25fe   :  { %4397 = vmatprep.subr.bf16.mxu1 %v4950_v0 }
0x2600   :  { %4394 = vmatmul.mubr.msk.bf16.vlgmr.msra.gmra.mxu1 %vm227_vm2, %v1839_v34 }
0x2601   :  { %4398 = vmatpush3.bf16.msra.mxu1 %v5408_v15  ;;  %4401 = vmatprep.mubr.msk.bf16.mxu1 %vm4951_vm0, %v4950_v0 }
0x2602   :  { %4399 = vmatprep.subr.bf16.mxu1 %v4950_v0 }
0x2603   :  { %v1905_v54 = vpop.permute.xlu1 %1904 }
0x2605   :  { %4400 = vmatpush3.bf16.msra.mxu1 %v5413_v30 }
0x2606   :  { %4413 = vmatprep.subr.bf16.mxu1 %v4950_v0 }
0x264d   :  { %v5434_v37 = vpop.f32.mrf.mxu0 }
0x264f   :  { %v1791_v42 = vpop.f32.mrf.mxu0 }
0x2650   :  { %v1792_v62 = vadd.f32 %v5439_v44, %v1791_v42 }
0x26b8   :  { %v1628_v39 = vpop.f32.mrf.mxu1 }
0x26b9   :  { %v1634_v40 = vadd.f32 %v1628_v39, %v1018_v36 }
0x26ba   :  { %v4367_v41 = vpop.f32.mrf.mxu1 }
0x26bb   :  { %v3949_v2 = vmul.f32 -1.442695, %v1634_v40 }
0x26bc   :  { %v1631_v43 = vpop.f32.mrf.mxu1 }
0x26be   :  { %v4368_v45 = vpop.f32.mrf.mxu1 }
0x26c0   :  { %v1889_v48 = vpop.f32.mrf.mxu1 }
0x26c1   :  { %v1895_v1 = vadd.f32 %v1889_v48, %v1792_v62 }
0x26c2   :  { %v4395_v56 = vpop.f32.mrf.mxu1 }
0x26c3   :  { %4764 = vtanh.f32 %v1895_v1  ;;  %v3967_v51 = vmul.f32 -1.442695, %v1895_v1 }
0x26c4   :  { %v1892_v16 = vpop.f32.mrf.mxu1 }
0x26c5   :  { %4766 = vpow2.f32 %v3967_v51 }
0x26c6   :  { %v4396_v26 = vpop.f32.mrf.mxu1 }
0x26d0   :  { %v4765_v50 = vpop.eup %4764 }
0x26d1   :  { %1909 = vrot.lane.b32.xlu0 %v4765_v50, %s4953_s22 }
0x26d2   :  { %v4767_v6 = vpop.eup %4766 }
0x26d3   :  { %v1899_v52 = vadd.f32 1.0, %v4767_v6 }
0x26d5   :  { %4768 = vrcp.f32 %v1899_v52 }
0x26e2   :  { %v4769_v24 = vpop.eup %4768 }
0x26e3   :  { %v1907_v55 = vmul.f32 %v4769_v24, %v1905_v54 }
0x2743   :  { %v1910_v12 = vpop.permute.xlu0 %1909 }
0x2744   :  { %v1912_v53 = vmul.f32 %v4769_v24, %v1910_v12 }
0x2746   :  { %1914 = vrot.lane.b32.xlu0 %v1912_v53, %s4953_s22 }
0x27b8   :  { %v1915_v57 = vpop.permute.xlu0 %1914 }
0x27b9   :  { %v5444_v58 = vadd.f32 %v1915_v57, %v1907_v55 }
0x27bb   :  { %4770 = vtanh.f32 %v5444_v58 }
0x27bc   :  { %4772 = vtanh.f32 %v1634_v40 }
0x27bd   :  { %4774 = vpow2.f32 %v3949_v2 }
0x27c8   :  { %v4771_v59 = vpop.eup %4770 }
0x27c9   :  { %1920 = vrot.lane.b32.xlu1 %v4771_v59, %s4953_s22  ;;  %v4773_v60 = vpop.eup %4772 }
0x27ca   :  { %v4775_v4 = vpop.eup %4774 }
0x27cb   :  { %v1638_v5 = vadd.f32 1.0, %v4775_v4 }
0x27cd   :  { %1644 = vrot.lane.b32.xlu1 %v4773_v60, %s4953_s22  ;;  %4776 = vrcp.f32 %v1638_v5 }
0x27da   :  { %v4777_v13 = vpop.eup %4776 }
0x27db   :  { %v1642_v18 = vmul.f32 %v4777_v13, %v5378_v19 }
0x283b   :  { %v1921_v8 = vpop.permute.xlu1 %1920 }
0x283c   :  { %v5449_v10 = vmul.f32 %v4769_v24, %v1921_v8 }
0x283e   :  { %v1930_v11 = vpack.c.bf16 %v5449_v10, %v5449_v10 }
0x283f   :  { %v1645_v7 = vpop.permute.xlu1 %1644 }
0x2840   :  { %v1647_v17 = vmul.f32 %v4777_v13, %v1645_v7  ;;  %1932 = vrot.lane.b32.xlu0 %v1930_v11, %s4945_s27 }
0x2842   :  { %1649 = vrot.lane.b32.xlu1 %v1647_v17, %s4953_s22 }
0x28b2   :  { %v1933_v61 = vpop.permute.xlu0 %1932 }
0x28b3   :  { %4402 = vmatmul.mubr.msk.bf16.vlgmr.msra.gmra.mxu1 %vm227_vm2, %v1933_v61 }
0x28b4   :  { %v1650_v46 = vpop.permute.xlu1 %1649  ;;  %4414 = vmatpush3.bf16.msra.mxu1 %v5408_v15  ;;  %4417 = vmatprep.mubr.msk.bf16.mxu1 %vm4951_vm0, %v4950_v0 }
0x28b5   :  { %v5460_v20 = vadd.f32 %v1650_v46, %v1642_v18  ;;  %4415 = vmatprep.subr.bf16.mxu1 %v4950_v0 }
0x28b7   :  { %4778 = vtanh.f32 %v5460_v20 }
0x28b8   :  { %4416 = vmatpush3.bf16.msra.mxu1 %v5413_v30 }
0x28b9   :  { %4429 = vmatprep.subr.bf16.mxu1 %v4950_v0 }
0x28c4   :  { %v4779_v32 = vpop.eup %4778 }
0x28c5   :  { %1655 = vrot.lane.b32.xlu1 %v4779_v32, %s4953_s22 }
0x28c9   :  { %1265 = vrot.lane.b32.xlu1 %v5317_v49, %s4945_s27  ;;  %v1797_v49 = vadd.f32 %v5434_v37, %v5439_v44 }
0x28cd   :  { %1423 = vrot.lane.b32.xlu1 %v5349_v35, %s4945_s27 }
0x28d1   :  { %1581 = vrot.lane.b32.xlu1 %v5401_v22, %s4945_s27 }
0x2937   :  { %v1656_v19 = vpop.permute.xlu1 %1655 }
0x2938   :  { %v1658_v42 = vmul.f32 %v4777_v13, %v1656_v19 }
0x293b   :  { %v1266_v38 = vpop.permute.xlu1 %1265 }
0x293c   :  { %1269 = vst.msk [vmem:[#allocation3 + $0x10] sm:$0xff] %vm227_vm2, %v1266_v38 }
0x293f   :  { %v1424_v21 = vpop.permute.xlu1 %1423 }
0x2940   :  { %1427 = vst.msk [vmem:[#allocation3 + $0x20] sm:$0xff] %vm227_vm2, %v1424_v21 }
0x2943   :  { %v1582_v9 = vpop.permute.xlu1 %1581  ;;  %v1689_v63 = vld [vmem:[#allocation3 + $0x10] sm:$0xff] }
0x2944   :  { %1585 = vst.msk [vmem:[#allocation3 + $0x30] sm:$0xff] %vm227_vm2, %v1582_v9  ;;  %4380 = vmatprep.mubr.msk.f32.mxu0 %vm227_vm2, %v1689_v63 }
0x294b   :  { %v1693_v26 = vld [vmem:[#allocation3 + $0x30] sm:$0xff] }
0x2973   :  { %v1971_v35 = vpop.f32.mrf.mxu1 }
0x2974   :  { %v1977_v3 = vadd.f32 %v1971_v35, %v1797_v49 }
0x2975   :  { %v4403_v23 = vpop.f32.mrf.mxu1 }
0x2976   :  { %4780 = vtanh.f32 %v1977_v3  ;;  %v3969_v25 = vmul.f32 -1.442695, %v1977_v3 }
0x2977   :  { %v1974_v22 = vpop.f32.mrf.mxu1 }
0x2978   :  { %4782 = vpow2.f32 %v3969_v25 }
0x2979   :  { %v4404_v27 = vpop.f32.mrf.mxu1 }
0x2983   :  { %v4781_v28 = vpop.eup %4780 }
0x2984   :  { %1987 = vrot.lane.b32.xlu0 %v4781_v28, %s4953_s22 }
0x2985   :  { %v4783_v47 = vpop.eup %4782 }
0x2986   :  { %v1981_v31 = vadd.f32 1.0, %v4783_v47 }
0x2988   :  { %4784 = vrcp.f32 %v1981_v31 }
0x2995   :  { %v4785_v33 = vpop.eup %4784 }
0x2996   :  { %v1985_v37 = vmul.f32 %v4785_v33, %v5444_v58 }
0x29f6   :  { %v1988_v34 = vpop.permute.xlu0 %1987 }
0x29f7   :  { %v1990_v36 = vmul.f32 %v4785_v33, %v1988_v34 }
0x29f9   :  { %1992 = vrot.lane.b32.xlu0 %v1990_v36, %s4953_s22 }
0x2a6b   :  { %v1993_v39 = vpop.permute.xlu0 %1992 }
0x2a6c   :  { %v1995_v40 = vadd.f32 %v1993_v39, %v1985_v37 }
0x2a6e   :  { %4786 = vtanh.f32 %v1995_v40 }
0x2a7b   :  { %v4787_v41 = vpop.eup %4786 }
0x2a7c   :  { %1998 = vrot.lane.b32.xlu0 %v4787_v41, %s4953_s22 }
0x2a80   :  { %1344 = vrot.lane.b32.xlu0 %v5333_v14, %s4945_s27 }
0x2a84   :  { %1502 = vrot.lane.b32.xlu0 %v5366_v29, %s4945_s27  ;;  %v1691_v29 = vld [vmem:[#allocation3 + $0x20] sm:$0xff] }
0x2a88   :  { %1660 = vrot.lane.b32.xlu0 %v1658_v42, %s4945_s27 }
0x2aee   :  { %v1999_v43 = vpop.permute.xlu0 %1998 }
0x2aef   :  { %v5488_v45 = vmul.f32 %v4785_v33, %v1999_v43 }
0x2af1   :  { %v2008_v62 = vpack.c.bf16 %v5488_v45, %v5488_v45 }
0x2af2   :  { %v1345_v48 = vpop.permute.xlu0 %1344 }
0x2af3   :  { %1348 = vst.msk [vmem:[#allocation3 + $0x18] sm:$0xff] %vm227_vm2, %v1345_v48  ;;  %2010 = vrot.lane.b32.xlu1 %v2008_v62, %s4945_s27 }
0x2af6   :  { %v1503_v1 = vpop.permute.xlu0 %1502 }
0x2af7   :  { %1506 = vst.msk [vmem:[#allocation3 + $0x28] sm:$0xff] %vm227_vm2, %v1503_v1 }
0x2afa   :  { %v1661_v14 = vpop.permute.xlu0 %1660  ;;  %v1690_v56 = vld [vmem:[#allocation3 + $0x18] sm:$0xff] }
0x2afb   :  { %1664 = vst.msk [vmem:[#allocation3 + $0x38] sm:$0xff] %vm227_vm2, %v1661_v14  ;;  %1666 = vst.msk [vmem:[#allocation5 + $0x8] sm:$0xff] %vm227_vm2, %v1661_v14  ;;  %4381 = vmatmul.mubr.msk.f32.gmra.mxu0 %vm227_vm2, %v1690_v56 }
0x2afc   :  { %4383 = vmatprep.mubr.msk.f32.mxu0 %vm227_vm2, %v1691_v29 }
0x2afe   :  { %v1692_v16 = vld [vmem:[#allocation3 + $0x28] sm:$0xff] }
0x2aff   :  { %4384 = vmatmul.mubr.msk.f32.gmra.mxu0 %vm227_vm2, %v1692_v16 }
0x2b00   :  { %4386 = vmatprep.mubr.msk.f32.mxu0 %vm227_vm2, %v1693_v26 }
0x2b02   :  { %v1694_v50 = vld [vmem:[#allocation3 + $0x38] sm:$0xff] }
0x2b03   :  { %4387 = vmatmul.mubr.msk.f32.gmra.mxu0 %vm227_vm2, %v1694_v50 }
0x2b04   :  { %4409 = vmatprep.mubr.msk.bf16.mxu0 %vm4951_vm0, %v4950_v0 }
0x2b65   :  { %v2011_v51 = vpop.permute.xlu1 %2010 }
0x2b66   :  { %4410 = vmatmul.mubr.msk.bf16.vlgmr.msra.gmra.mxu0 %vm227_vm2, %v2011_v51 }
0x2b67   :  { %4422 = vmatpush3.bf16.msra.mxu0 %v5408_v15  ;;  %4425 = vmatprep.mubr.msk.bf16.mxu0 %vm4951_vm0, %v4950_v0 }
0x2b68   :  { %4423 = vmatprep.subr.bf16.mxu0 %v4950_v0 }
0x2b6b   :  { %4424 = vmatpush3.bf16.msra.mxu0 %v5413_v30 }
0x2b6c   :  { %4437 = vmatprep.subr.bf16.mxu0 %v4950_v0 }
0x2bbb   :  { %v4382_v6 = vpop.f32.mrf.mxu0 }
0x2bbc   :  { %v1807_v63 = vadd.f32 %v4382_v6, %v5439_v44 }
0x2bbd   :  { %v1801_v52 = vpop.f32.mrf.mxu0 }
0x2bbe   :  { %v1802_v55 = vadd.f32 %v5439_v44, %v1801_v52 }
0x2bbf   :  { %v5511_v24 = vpop.f32.mrf.mxu0 }
0x2bc1   :  { %v5513_v12 = vpop.f32.mrf.mxu0 }
0x2bc2   :  { %v1812_v48 = vadd.f32 %v5439_v44, %v5513_v12 }
0x2bc3   :  { %v5515_v53 = vpop.f32.mrf.mxu0 }
0x2bc5   :  { %v5517_v54 = vpop.f32.mrf.mxu0 }
0x2c26   :  { %v2049_v57 = vpop.f32.mrf.mxu0 }
0x2c27   :  { %v2055_v58 = vadd.f32 %v2049_v57, %v1802_v55 }
0x2c28   :  { %v4411_v59 = vpop.f32.mrf.mxu0 }
0x2c29   :  { %4788 = vtanh.f32 %v2055_v58  ;;  %v3971_v5 = vmul.f32 -1.442695, %v2055_v58 }
0x2c2a   :  { %v2052_v60 = vpop.f32.mrf.mxu0 }
0x2c2b   :  { %4790 = vpow2.f32 %v3971_v5 }
0x2c2c   :  { %v4412_v2 = vpop.f32.mrf.mxu0 }
0x2c36   :  { %v4789_v4 = vpop.eup %4788 }
0x2c37   :  { %2065 = vrot.lane.b32.xlu0 %v4789_v4, %s4953_s22 }
0x2c38   :  { %v4791_v8 = vpop.eup %4790 }
0x2c39   :  { %v2059_v11 = vadd.f32 1.0, %v4791_v8 }
0x2c3b   :  { %4792 = vrcp.f32 %v2059_v11  ;;  %v1817_v11 = vadd.f32 %v5511_v24, %v5439_v44 }
0x2c48   :  { %v4793_v13 = vpop.eup %4792 }
0x2c49   :  { %v2063_v61 = vmul.f32 %v4793_v13, %v1995_v40 }
0x2ca9   :  { %v2066_v7 = vpop.permute.xlu0 %2065 }
0x2caa   :  { %v2068_v17 = vmul.f32 %v4793_v13, %v2066_v7 }
0x2cac   :  { %2070 = vrot.lane.b32.xlu1 %v2068_v17, %s4953_s22 }
0x2d1e   :  { %v2071_v18 = vpop.permute.xlu1 %2070 }
0x2d1f   :  { %v2073_v46 = vadd.f32 %v2071_v18, %v2063_v61 }
0x2d21   :  { %4794 = vtanh.f32 %v2073_v46 }
0x2d2e   :  { %v4795_v32 = vpop.eup %4794 }
0x2d2f   :  { %2076 = vrot.lane.b32.xlu0 %v4795_v32, %s4953_s22 }
0x2da1   :  { %v2077_v19 = vpop.permute.xlu0 %2076 }
0x2da2   :  { %v5523_v38 = vmul.f32 %v4793_v13, %v2077_v19 }
0x2da4   :  { %v2086_v21 = vpack.c.bf16 %v5523_v38, %v5523_v38 }
0x2da6   :  { %2088 = vrot.lane.b32.xlu1 %v2086_v21, %s4945_s27 }
0x2e18   :  { %v2089_v9 = vpop.permute.xlu1 %2088 }
0x2e19   :  { %4418 = vmatmul.mubr.msk.bf16.vlgmr.msra.gmra.mxu1 %vm227_vm2, %v2089_v9 }
0x2e1a   :  { %4430 = vmatpush3.bf16.msra.mxu1 %v5408_v15  ;;  %4433 = vmatprep.mubr.msk.bf16.mxu1 %vm4951_vm0, %v4950_v0 }
0x2e1b   :  { %4431 = vmatprep.subr.bf16.mxu1 %v4950_v0 }
0x2e1e   :  { %4432 = vmatpush3.bf16.msra.mxu1 %v5413_v30 }
0x2e1f   :  { %4445 = vmatprep.subr.bf16.mxu1 %v4950_v0 }
0x2ed9   :  { %v2127_v49 = vpop.f32.mrf.mxu1 }
0x2eda   :  { %v2133_v35 = vadd.f32 %v2127_v49, %v1807_v63 }
0x2edb   :  { %v4419_v3 = vpop.f32.mrf.mxu1 }
0x2edc   :  { %4796 = vtanh.f32 %v2133_v35  ;;  %v3973_v28 = vmul.f32 -1.442695, %v2133_v35 }
0x2edd   :  { %v2130_v23 = vpop.f32.mrf.mxu1 }
0x2ede   :  { %4798 = vpow2.f32 %v3973_v28  ;;  %v1822_v28 = vadd.f32 %v5439_v44, %v5517_v54 }
0x2edf   :  { %v4420_v22 = vpop.f32.mrf.mxu1 }
0x2ee9   :  { %v4797_v27 = vpop.eup %4796 }
0x2eea   :  { %2143 = vrot.lane.b32.xlu0 %v4797_v27, %s4953_s22 }
0x2eeb   :  { %v4799_v25 = vpop.eup %4798 }
0x2eec   :  { %v2137_v47 = vadd.f32 1.0, %v4799_v25 }
0x2eee   :  { %4800 = vrcp.f32 %v2137_v47 }
0x2efb   :  { %v4801_v31 = vpop.eup %4800 }
0x2efc   :  { %v2141_v36 = vmul.f32 %v4801_v31, %v2073_v46 }
0x2f5c   :  { %v2144_v33 = vpop.permute.xlu0 %2143 }
0x2f5d   :  { %v2146_v34 = vmul.f32 %v4801_v31, %v2144_v33 }
0x2f5f   :  { %2148 = vrot.lane.b32.xlu1 %v2146_v34, %s4953_s22 }
0x2fd1   :  { %v2149_v37 = vpop.permute.xlu1 %2148 }
0x2fd2   :  { %v2151_v39 = vadd.f32 %v2149_v37, %v2141_v36 }
0x2fd4   :  { %4802 = vtanh.f32 %v2151_v39 }
0x2fe1   :  { %v4803_v40 = vpop.eup %4802 }
0x2fe2   :  { %2154 = vrot.lane.b32.xlu0 %v4803_v40, %s4953_s22 }
0x3054   :  { %v2155_v41 = vpop.permute.xlu0 %2154 }
0x3055   :  { %v5539_v42 = vmul.f32 %v4801_v31, %v2155_v41 }
0x3057   :  { %v2164_v43 = vpack.c.bf16 %v5539_v42, %v5539_v42 }
0x3059   :  { %2166 = vrot.lane.b32.xlu1 %v2164_v43, %s4945_s27 }
0x30cb   :  { %v2167_v62 = vpop.permute.xlu1 %2166 }
0x30cc   :  { %4426 = vmatmul.mubr.msk.bf16.vlgmr.msra.gmra.mxu0 %vm227_vm2, %v2167_v62 }
0x30cd   :  { %4438 = vmatpush3.bf16.msra.mxu0 %v5408_v15  ;;  %4441 = vmatprep.mubr.msk.bf16.mxu0 %vm4951_vm0, %v4950_v0 }
0x30ce   :  { %4439 = vmatprep.subr.bf16.mxu0 %v4950_v0 }
0x30d1   :  { %4440 = vmatpush3.bf16.msra.mxu0 %v5413_v30 }
0x318c   :  { %v2205_v1 = vpop.f32.mrf.mxu0 }
0x318d   :  { %v2211_v14 = vadd.f32 %v2205_v1, %v1812_v48 }
0x318e   :  { %v4427_v56 = vpop.f32.mrf.mxu0 }
0x318f   :  { %4804 = vtanh.f32 %v2211_v14  ;;  %v3975_v50 = vmul.f32 -1.442695, %v2211_v14  ;;  %v3985_v56 = vld [vmem:[%s5867_s2 + $0x58] sm:$0xff] }
0x3190   :  { %v2208_v29 = vpop.f32.mrf.mxu0  ;;  %4453 = vmatprep.subr.mxu0 %v3985_v56 }
0x3191   :  { %4806 = vpow2.f32 %v3975_v50  ;;  %v3984_v29 = vld [vmem:[%s5867_s2 + $0x50] sm:$0xff] }
0x3192   :  { %v4428_v16 = vpop.f32.mrf.mxu0 }
0x319c   :  { %v4805_v26 = vpop.eup %4804 }
0x319d   :  { %2221 = vrot.lane.b32.xlu0 %v4805_v26, %s4953_s22  ;;  %v3982_v26 = vld [vmem:[%s5867_s2 + $0x40] sm:$0xff] }
0x319e   :  { %v4807_v51 = vpop.eup %4806 }
0x319f   :  { %v2215_v6 = vadd.f32 1.0, %v4807_v51 }
0x31a1   :  { %4808 = vrcp.f32 %v2215_v6 }
0x31ae   :  { %v4809_v52 = vpop.eup %4808 }
0x31af   :  { %v2219_v12 = vmul.f32 %v4809_v52, %v2151_v39 }
0x320f   :  { %v2222_v55 = vpop.permute.xlu0 %2221 }
0x3210   :  { %v2224_v57 = vmul.f32 %v4809_v52, %v2222_v55 }
0x3212   :  { %2226 = vrot.lane.b32.xlu1 %v2224_v57, %s4953_s22 }
0x3284   :  { %v2227_v58 = vpop.permute.xlu1 %2226 }
0x3285   :  { %v2229_v59 = vadd.f32 %v2227_v58, %v2219_v12 }
0x3287   :  { %4810 = vtanh.f32 %v2229_v59 }
0x3294   :  { %v4811_v60 = vpop.eup %4810 }
0x3295   :  { %2232 = vrot.lane.b32.xlu0 %v4811_v60, %s4953_s22  ;;  %v2475_v60 = vld [vmem:[#allocation5 + $0x8] sm:$0xff] }
0x3307   :  { %v2233_v2 = vpop.permute.xlu0 %2232 }
0x3308   :  { %v5555_v4 = vmul.f32 %v4809_v52, %v2233_v2  ;;  %v2641_v2 = vpack.c.bf16 %v2475_v60, %v2475_v60 }
0x330a   :  { %v2242_v5 = vpack.c.bf16 %v5555_v4, %v5555_v4 }
0x330c   :  { %2244 = vrot.lane.b32.xlu1 %v2242_v5, %s4945_s27  ;;  %v1827_v5 = vadd.f32 %v5515_v53, %v5439_v44 }
0x337e   :  { %v2245_v8 = vpop.permute.xlu1 %2244 }
0x337f   :  { %4434 = vmatmul.mubr.msk.bf16.vlgmr.msra.gmra.mxu1 %vm227_vm2, %v2245_v8 }
0x3380   :  { %4446 = vmatpush3.bf16.msra.mxu1 %v5408_v15  ;;  %4449 = vmatprep.mubr.msk.bf16.mxu1 %vm4951_vm0, %v4950_v0 }
0x3381   :  { %4447 = vmatprep.subr.bf16.mxu1 %v4950_v0 }
0x3384   :  { %4448 = vmatpush3.bf16.msra.mxu1 %v5413_v30 }
0x3385   :  { %4473 = vmatprep.subr.bf16.mxu1 %v4950_v0 }
0x343f   :  { %v2283_v13 = vpop.f32.mrf.mxu1 }
0x3440   :  { %v2289_v7 = vadd.f32 %v2283_v13, %v1817_v11 }
0x3441   :  { %v4435_v17 = vpop.f32.mrf.mxu1 }
0x3442   :  { %4812 = vtanh.f32 %v2289_v7  ;;  %v3977_v15 = vmul.f32 -1.442695, %v2289_v7 }
0x3443   :  { %v2286_v61 = vpop.f32.mrf.mxu1 }
0x3444   :  { %4814 = vpow2.f32 %v3977_v15 }
0x3445   :  { %v4436_v18 = vpop.f32.mrf.mxu1 }
0x3446   :  { %v5641_v18 = vld [vmem:[%s5869_s4 + $0x3] ss:$0 sm:$0xff] }
0x344f   :  { %v4813_v46 = vpop.eup %4812 }
0x3450   :  { %2299 = vrot.lane.b32.xlu0 %v4813_v46, %s4953_s22 }
0x3451   :  { %v4815_v32 = vpop.eup %4814 }
0x3452   :  { %v2293_v19 = vadd.f32 1.0, %v4815_v32 }
0x3454   :  { %4816 = vrcp.f32 %v2293_v19 }
0x3461   :  { %v4817_v30 = vpop.eup %4816 }
0x3462   :  { %v2297_v24 = vmul.f32 %v4817_v30, %v2229_v59  ;;  %v5620_v59 = vld [vmem:[#allocation7 + $0x30] sm:$0xff]  }
0x34c2   :  { %v2300_v21 = vpop.permute.xlu0 %2299 }
0x34c3   :  { %v2302_v9 = vmul.f32 %v4817_v30, %v2300_v21 }
0x34c5   :  { %2304 = vrot.lane.b32.xlu1 %v2302_v9, %s4953_s22 }
0x3537   :  { %v2305_v63 = vpop.permute.xlu1 %2304 }
0x3538   :  { %v2307_v49 = vadd.f32 %v2305_v63, %v2297_v24 }
0x353a   :  { %4818 = vtanh.f32 %v2307_v49 }
0x3547   :  { %v4819_v35 = vpop.eup %4818 }
0x3548   :  { %2310 = vrot.lane.b32.xlu0 %v4819_v35, %s4953_s22 }
0x35ba   :  { %v2311_v3 = vpop.permute.xlu0 %2310 }
0x35bb   :  { %v5572_v23 = vmul.f32 %v4817_v30, %v2311_v3 }
0x35bd   :  { %v2320_v22 = vpack.c.bf16 %v5572_v23, %v5572_v23 }
0x35bf   :  { %2322 = vrot.lane.b32.xlu1 %v2320_v22, %s4945_s27 }
0x3631   :  { %v2323_v27 = vpop.permute.xlu1 %2322 }
0x3632   :  { %4442 = vmatmul.mubr.msk.bf16.vlgmr.msra.gmra.mxu0 %vm227_vm2, %v2323_v27 }
0x3633   :  { %4454 = vmatpush3.msra.mxu0 %v3985_v56 }
0x3634   :  { %4455 = vmatprep.subr.mxu0 %v3984_v29 }
0x3635   :  { %4456 = vmatpush3.msra.mxu0 %v3984_v29 }
0x36f2   :  { %v2361_v25 = vpop.f32.mrf.mxu0 }
0x36f3   :  { %v2367_v47 = vadd.f32 %v2361_v25, %v1822_v28 }
0x36f4   :  { %v4443_v31 = vpop.f32.mrf.mxu0 }
0x36f5   :  { %4820 = vtanh.f32 %v2367_v47  ;;  %v3979_v37 = vmul.f32 -1.442695, %v2367_v47 }
0x36f6   :  { %v2364_v33 = vpop.f32.mrf.mxu0 }
0x36f7   :  { %4822 = vpow2.f32 %v3979_v37 }
0x36f8   :  { %v4444_v34 = vpop.f32.mrf.mxu0 }
0x3702   :  { %v4821_v36 = vpop.eup %4820 }
0x3703   :  { %2377 = vrot.lane.b32.xlu0 %v4821_v36, %s4953_s22 }
0x3704   :  { %v4823_v39 = vpop.eup %4822 }
0x3705   :  { %v2371_v40 = vadd.f32 1.0, %v4823_v39 }
0x3707   :  { %4824 = vrcp.f32 %v2371_v40 }
0x3714   :  { %v4825_v41 = vpop.eup %4824 }
0x3715   :  { %v2375_v54 = vmul.f32 %v4825_v41, %v2307_v49 }
0x3775   :  { %v2378_v43 = vpop.permute.xlu0 %2377 }
0x3776   :  { %v2380_v62 = vmul.f32 %v4825_v41, %v2378_v43 }
0x3778   :  { %2382 = vrot.lane.b32.xlu1 %v2380_v62, %s4953_s22 }
0x377c   :  { %1925 = vrot.lane.b32.xlu1 %v5449_v10, %s4945_s27  ;;  %v3983_v10 = vld [vmem:[%s5867_s2 + $0x48] sm:$0xff] }
0x377d   :  { %4457 = vmatprep.subr.mxu0 %v3983_v10 }
0x377e   :  { %4458 = vmatpush3.msra.mxu0 %v3983_v10 }
0x377f   :  { %4459 = vmatprep.subr.mxu0 %v3982_v26 }
0x3780   :  { %4460 = vmatpush3.msra.mxu0 %v3982_v26 }
0x3781   :  { %4489 = vmatprep.subr.mxu0 %v4950_v0 }
0x37ea   :  { %v2383_v48 = vpop.permute.xlu1 %2382 }
0x37eb   :  { %v5584_v1 = vadd.f32 %v2383_v48, %v2375_v54 }
0x37ed   :  { %4826 = vtanh.f32 %v5584_v1 }
0x37ee   :  { %v1926_v14 = vpop.permute.xlu1 %1925 }
0x37ef   :  { %1928 = vst.msk [vmem:[#allocation2] sm:$0xff] %vm227_vm2, %v1926_v14 }
0x37f6   :  { %v2489_v16 = vld [vmem:[#allocation2] sm:$0xff] }
0x37f7   :  { %4461 = vmatprep.mubr.msk.f32.mxu0 %vm227_vm2, %v2489_v16 }
0x37fa   :  { %v4827_v50 = vpop.eup %4826 }
0x37fb   :  { %2388 = vrot.lane.b32.xlu0 %v4827_v50, %s4953_s22 }
0x37ff   :  { %2003 = vrot.lane.b32.xlu0 %v5488_v45, %s4945_s27 }
0x3803   :  { %1668 = vrot.lane.b32.xlu0 %v5460_v20, %s4954_s29  ;;  %v5616_v20 = vld [vmem:[#allocation7 + $0x38] sm:$0xff]  }
0x386d   :  { %v2389_v51 = vpop.permute.xlu0 %2388 }
0x386e   :  { %v5607_v6 = vmul.f32 %v4825_v41, %v2389_v51 }
0x3870   :  { %v2398_v52 = vpack.c.bf16 %v5607_v6, %v5607_v6 }
0x3871   :  { %v2004_v55 = vpop.permute.xlu0 %2003 }
0x3872   :  { %2006 = vst.msk [vmem:[#allocation2 + $0x8] sm:$0xff] %vm227_vm2, %v2004_v55  ;;  %2400 = vrot.lane.b32.xlu1 %v2398_v52, %s4945_s27 }
0x3875   :  { %v1669_v57 = vpop.permute.xlu0 %1668 }
0x3876   :  { %1672 = vst.msk [vmem:[#allocation6 + $0x8] sm:$0xff] %vm227_vm2, %v1669_v57 }
0x3879   :  { %v2490_v12 = vld [vmem:[#allocation2 + $0x8] sm:$0xff] }
0x387a   :  { %4462 = vmatmul.mubr.msk.f32.vlgmr.msra.gmra.mxu0 %vm227_vm2, %v2490_v12 }
0x387d   :  { %v2476_v45 = vld [vmem:[#allocation6 + $0x8] sm:$0xff] }
0x387e   :  { %2706 = vrot.lane.b32.xlu0 %v2476_v45, %s4953_s22 }
0x38e4   :  { %v2401_v58 = vpop.permute.xlu1 %2400 }
0x38e5   :  { %4450 = vmatmul.mubr.msk.bf16.vlgmr.msra.gmra.mxu1 %vm227_vm2, %v2401_v58 }
0x38e6   :  { %4474 = vmatpush3.bf16.msra.mxu1 %v5616_v20  ;;  %4477 = vmatprep.mubr.msk.bf16.mxu1 %vm4951_vm0, %v4950_v0 }
0x38e7   :  { %4475 = vmatprep.subr.bf16.mxu1 %v4950_v0 }
0x38ea   :  { %4476 = vmatpush3.bf16.msra.mxu1 %v5620_v59 }
0x38eb   :  { %4481 = vmatprep.subr.bf16.mxu1 %v4950_v0 }
0x38ed   :  { %4478 = vmatmul.mubr.msk.bf16.vlgmr.msra.gmra.mxu1 %vm227_vm2, %v2641_v2 }
0x38ee   :  { %4482 = vmatpush3.bf16.msra.mxu1 %v5616_v20  ;;  %4485 = vmatprep.mubr.msk.bf16.mxu1 %vm4951_vm0, %v4950_v0 }
0x38ef   :  { %4483 = vmatprep.subr.bf16.mxu1 %v4950_v0 }
0x38f0   :  { %v2707_v22 = vpop.permute.xlu0 %2706 }
0x38f2   :  { %4484 = vmatpush3.bf16.msra.mxu1 %v5620_v59 }
0x38f3   :  { %4500 = vmatprep.subr.mxu1 %v4950_v0 }
0x393a   :  { %v5636_v8 = vpop.f32.mrf.mxu0 }
0x393c   :  { %v2593_v17 = vpop.f32.mrf.mxu0 }
0x393d   :  { %v2594_v15 = vadd.f32 %v5641_v18, %v2593_v17  ;;  %v2807_v17 = vld [vmem:[#allocation9 + $0x38] sm:$0xff] }
0x393e   :  { %4490 = vmatpush3.msra.mxu0 %v2807_v17 }
0x393f   :  { %4491 = vmatprep.subr.mxu0 %v4950_v0 }
0x39a5   :  { %v2439_v11 = vpop.f32.mrf.mxu1 }
0x39a6   :  { %v2445_v13 = vadd.f32 %v2439_v11, %v1827_v5 }
0x39a7   :  { %v4451_v7 = vpop.f32.mrf.mxu1 }
0x39a8   :  { %v3981_v33 = vmul.f32 -1.442695, %v2445_v13 }
0x39a9   :  { %v2442_v61 = vpop.f32.mrf.mxu1 }
0x39aa   :  { %v2806_v61 = vld [vmem:[#allocation9 + $0x30] sm:$0xff] }
0x39ab   :  { %v4452_v46 = vpop.f32.mrf.mxu1  ;;  %4492 = vmatpush3.msra.mxu0 %v2806_v61 }
0x39ac   :  { %v2805_v46 = vld [vmem:[#allocation9 + $0x28] sm:$0xff]  ;;  %4493 = vmatprep.subr.mxu0 %v4950_v0 }
0x39ad   :  { %v2691_v32 = vpop.f32.mrf.mxu1  ;;  %4494 = vmatpush3.msra.mxu0 %v2805_v46 }
0x39ae   :  { %v2697_v19 = vadd.f32 %v2691_v32, %v2594_v15  ;;  %v2804_v32 = vld [vmem:[#allocation9 + $0x20] sm:$0xff]  ;;  %4495 = vmatprep.subr.mxu0 %v4950_v0 }
0x39af   :  { %v4479_v30 = vpop.f32.mrf.mxu1  ;;  %4496 = vmatpush3.msra.mxu0 %v2804_v32 }
0x39b0   :  { %4828 = vtanh.f32 %v2697_v19  ;;  %v3999_v9 = vmul.f32 -1.442695, %v2697_v19  ;;  %4511 = vmatprep.subr.bf16.mxu0 %v4950_v0 }
0x39b1   :  { %v2694_v44 = vpop.f32.mrf.mxu1 }
0x39b2   :  { %4830 = vpow2.f32 %v3999_v9 }
0x39b3   :  { %v4480_v53 = vpop.f32.mrf.mxu1 }
0x39bd   :  { %v4829_v21 = vpop.eup %4828 }
0x39be   :  { %2711 = vrot.lane.b32.xlu1 %v4829_v21, %s4953_s22 }
0x39bf   :  { %v4831_v24 = vpop.eup %4830 }
0x39c0   :  { %v2701_v63 = vadd.f32 1.0, %v4831_v24 }
0x39c2   :  { %4832 = vrcp.f32 %v2701_v63 }
0x39cf   :  { %v4833_v49 = vpop.eup %4832 }
0x39d0   :  { %v2709_v27 = vmul.f32 %v4833_v49, %v2707_v22 }
0x3a30   :  { %v2712_v35 = vpop.permute.xlu1 %2711 }
0x3a31   :  { %v2714_v3 = vmul.f32 %v4833_v49, %v2712_v35 }
0x3a33   :  { %2716 = vrot.lane.b32.xlu1 %v2714_v3, %s4953_s22 }
0x3aa5   :  { %v2717_v28 = vpop.permute.xlu1 %2716 }
0x3aa6   :  { %v2719_v25 = vadd.f32 %v2717_v28, %v2709_v27 }
0x3aa8   :  { %4834 = vtanh.f32 %v2719_v25 }
0x3aa9   :  { %4836 = vtanh.f32 %v2445_v13 }
0x3aaa   :  { %4838 = vpow2.f32 %v3981_v33 }
0x3ab5   :  { %v4835_v47 = vpop.eup %4834 }
0x3ab6   :  { %2722 = vrot.lane.b32.xlu0 %v4835_v47, %s4953_s22  ;;  %v4837_v31 = vpop.eup %4836 }
0x3ab7   :  { %v4839_v34 = vpop.eup %4838 }
0x3ab8   :  { %v2449_v36 = vadd.f32 1.0, %v4839_v34 }
0x3aba   :  { %2455 = vrot.lane.b32.xlu0 %v4837_v31, %s4953_s22  ;;  %4840 = vrcp.f32 %v2449_v36 }
0x3ac7   :  { %v4841_v41 = vpop.eup %4840 }
0x3ac8   :  { %v2453_v48 = vmul.f32 %v4841_v41, %v5584_v1 }
0x3b28   :  { %v2723_v37 = vpop.permute.xlu0 %2722 }
0x3b29   :  { %v5648_v39 = vmul.f32 %v4833_v49, %v2723_v37 }
0x3b2b   :  { %v2731_v40 = vpack.c.bf16 %v5648_v39, %v5648_v39 }
0x3b2c   :  { %v2456_v43 = vpop.permute.xlu0 %2455 }
0x3b2d   :  { %v2458_v62 = vmul.f32 %v4841_v41, %v2456_v43  ;;  %2733 = vrot.lane.b32.xlu1 %v2731_v40, %s4945_s27 }
0x3b2f   :  { %2460 = vrot.lane.b32.xlu0 %v2458_v62, %s4953_s22 }
0x3b9f   :  { %v2734_v54 = vpop.permute.xlu1 %2733 }
0x3ba0   :  { %4486 = vmatmul.mubr.msk.bf16.vlgmr.msra.gmra.mxu1 %vm227_vm2, %v2734_v54 }
0x3ba1   :  { %v2461_v14 = vpop.permute.xlu0 %2460  ;;  %4508 = vmatprep.mubr.msk.f32.mxu1 %vm4951_vm0, %v4950_v0 }
0x3ba2   :  { %v2463_v56 = vadd.f32 %v2461_v14, %v2453_v48 }
0x3ba4   :  { %4842 = vtanh.f32 %v2463_v56 }
0x3bb1   :  { %v4843_v29 = vpop.eup %4842 }
0x3bb2   :  { %2466 = vrot.lane.b32.xlu0 %v4843_v29, %s4953_s22 }
0x3bb6   :  { %2081 = vrot.lane.b32.xlu0 %v5523_v38, %s4945_s27  ;;  %v2599_v38 = vadd.f32 %v5636_v8, %v5641_v18 }
0x3bba   :  { %2237 = vrot.lane.b32.xlu0 %v5555_v4, %s4945_s27 }
0x3bbe   :  { %2393 = vrot.lane.b32.xlu0 %v5607_v6, %s4945_s27 }
0x3c24   :  { %v2467_v10 = vpop.permute.xlu0 %2466 }
0x3c25   :  { %v2469_v15 = vmul.f32 %v4841_v41, %v2467_v10 }
0x3c28   :  { %v2082_v1 = vpop.permute.xlu0 %2081 }
0x3c29   :  { %2084 = vst.msk [vmem:[#allocation2 + $0x10] sm:$0xff] %vm227_vm2, %v2082_v1 }
0x3c2c   :  { %v2238_v16 = vpop.permute.xlu0 %2237 }
0x3c2d   :  { %2240 = vst.msk [vmem:[#allocation2 + $0x20] sm:$0xff] %vm227_vm2, %v2238_v16 }
0x3c30   :  { %v2394_v26 = vpop.permute.xlu0 %2393  ;;  %v2491_v50 = vld [vmem:[#allocation2 + $0x10] sm:$0xff] }
0x3c31   :  { %2396 = vst.msk [vmem:[#allocation2 + $0x30] sm:$0xff] %vm227_vm2, %v2394_v26  ;;  %4464 = vmatprep.mubr.msk.f32.mxu0 %vm227_vm2, %v2491_v50 }
0x3c34   :  { %v2493_v9 = vld [vmem:[#allocation2 + $0x20] sm:$0xff] }
0x3c38   :  { %v2495_v63 = vld [vmem:[#allocation2 + $0x30] sm:$0xff] }
0x3c60   :  { %v2772_v4 = vpop.f32.mrf.mxu1 }
0x3c61   :  { %v2778_v51 = vadd.f32 %v2772_v4, %v2599_v38 }
0x3c62   :  { %v4487_v52 = vpop.f32.mrf.mxu1 }
0x3c63   :  { %4844 = vtanh.f32 %v2778_v51  ;;  %v4001_v12 = vmul.f32 -1.442695, %v2778_v51 }
0x3c64   :  { %v2775_v6 = vpop.f32.mrf.mxu1 }
0x3c65   :  { %4846 = vpow2.f32 %v4001_v12 }
0x3c66   :  { %v4488_v55 = vpop.f32.mrf.mxu1 }
0x3c70   :  { %v4845_v57 = vpop.eup %4844 }
0x3c71   :  { %2788 = vrot.lane.b32.xlu1 %v4845_v57, %s4953_s22 }
0x3c72   :  { %v4847_v45 = vpop.eup %4846 }
0x3c73   :  { %v2782_v58 = vadd.f32 1.0, %v4847_v45 }
0x3c75   :  { %4848 = vrcp.f32 %v2782_v58 }
0x3c82   :  { %v4849_v60 = vpop.eup %4848 }
0x3c83   :  { %v2786_v8 = vmul.f32 %v4849_v60, %v2719_v25 }
0x3ce3   :  { %v2789_v2 = vpop.permute.xlu1 %2788 }
0x3ce4   :  { %v2791_v5 = vmul.f32 %v4849_v60, %v2789_v2 }
0x3ce6   :  { %2793 = vrot.lane.b32.xlu1 %v2791_v5, %s4953_s22 }
0x3d58   :  { %v2794_v11 = vpop.permute.xlu1 %2793 }
0x3d59   :  { %v5673_v13 = vadd.f32 %v2794_v11, %v2786_v8 }
0x3d5b   :  { %4850 = vtanh.f32 %v5673_v13 }
0x3d68   :  { %v4851_v7 = vpop.eup %4850 }
0x3d69   :  { %2799 = vrot.lane.b32.xlu1 %v4851_v7, %s4953_s22 }
0x3d6d   :  { %2159 = vrot.lane.b32.xlu1 %v5539_v42, %s4945_s27 }
0x3d71   :  { %2315 = vrot.lane.b32.xlu1 %v5572_v23, %s4945_s27 }
0x3d75   :  { %2471 = vrot.lane.b32.xlu1 %v2469_v15, %s4945_s27 }
0x3ddb   :  { %v2800_v42 = vpop.permute.xlu1 %2799 }
0x3ddc   :  { %v2802_v19 = vmul.f32 %v4849_v60, %v2800_v42 }
0x3dde   :  { %v2959_v23 = vpack.c.bf16 %v2802_v19, %v2802_v19  ;;  %2809 = vrot.lane.b32.xlu0 %v2802_v19, %s4945_s27 }
0x3ddf   :  { %v2160_v30 = vpop.permute.xlu1 %2159 }
0x3de0   :  { %2162 = vst.msk [vmem:[#allocation2 + $0x18] sm:$0xff] %vm227_vm2, %v2160_v30  ;;  %2961 = vrot.lane.b32.xlu1 %v2959_v23, %s4945_s27 }
0x3de3   :  { %v2316_v44 = vpop.permute.xlu1 %2315 }
0x3de4   :  { %2318 = vst.msk [vmem:[#allocation2 + $0x28] sm:$0xff] %vm227_vm2, %v2316_v44 }
0x3de7   :  { %v2472_v53 = vpop.permute.xlu1 %2471  ;;  %v2492_v21 = vld [vmem:[#allocation2 + $0x18] sm:$0xff] }
0x3de8   :  { %2474 = vst.msk [vmem:[#allocation2 + $0x38] sm:$0xff] %vm227_vm2, %v2472_v53  ;;  %4465 = vmatmul.mubr.msk.f32.gmra.mxu0 %vm227_vm2, %v2492_v21 }
0x3de9   :  { %4467 = vmatprep.mubr.msk.f32.mxu0 %vm227_vm2, %v2493_v9 }
0x3deb   :  { %v2494_v24 = vld [vmem:[#allocation2 + $0x28] sm:$0xff] }
0x3dec   :  { %4468 = vmatmul.mubr.msk.f32.gmra.mxu0 %vm227_vm2, %v2494_v24 }
0x3ded   :  { %4470 = vmatprep.mubr.msk.f32.mxu0 %vm227_vm2, %v2495_v63 }
0x3def   :  { %v2496_v49 = vld [vmem:[#allocation2 + $0x38] sm:$0xff] }
0x3df0   :  { %4471 = vmatmul.mubr.msk.f32.gmra.mxu0 %vm227_vm2, %v2496_v49 }
0x3df1   :  { %4497 = vmatprep.mubr.msk.f32.mxu0 %vm4951_vm0, %v4950_v0 }
0x3e50   :  { %v2810_v35 = vpop.permute.xlu0 %2809 }
0x3e51   :  { %4498 = vmatmul.mubr.msk.f32.vlgmr.msra.gmra.mxu0 %vm227_vm2, %v2810_v35 }
0x3e52   :  { %4512 = vmatpush3.bf16.msra.mxu0 %v5616_v20  ;;  %4515 = vmatprep.mubr.msk.bf16.mxu0 %vm4951_vm0, %v4950_v0  ;;  %v2962_v3 = vpop.permute.xlu1 %2961 }
0x3e53   :  { %4513 = vmatprep.subr.bf16.mxu0 %v4950_v0 }
0x3e56   :  { %4514 = vmatpush3.bf16.msra.mxu0 %v5620_v59 }
0x3e57   :  { %4530 = vmatprep.subr.bf16.mxu0 %v4950_v0 }
0x3e59   :  { %4516 = vmatmul.mubr.msk.bf16.vlgmr.msra.gmra.mxu0 %vm227_vm2, %v2962_v3 }
0x3e5a   :  { %4531 = vmatpush3.bf16.msra.mxu0 %v5616_v20  ;;  %4534 = vmatprep.mubr.msk.bf16.mxu0 %vm4951_vm0, %v4950_v0 }
0x3e5b   :  { %4532 = vmatprep.subr.bf16.mxu0 %v4950_v0 }
0x3e5e   :  { %4533 = vmatpush3.bf16.msra.mxu0 %v5620_v59 }
0x3e5f   :  { %4549 = vmatprep.subr.bf16.mxu0 %v4950_v0 }
0x3ea8   :  { %v4466_v22 = vpop.f32.mrf.mxu0 }
0x3ea9   :  { %v2609_v55 = vadd.f32 %v4466_v22, %v5641_v18 }
0x3eaa   :  { %v2603_v27 = vpop.f32.mrf.mxu0 }
0x3eab   :  { %v2604_v36 = vadd.f32 %v5641_v18, %v2603_v27 }
0x3eac   :  { %v5712_v28 = vpop.f32.mrf.mxu0 }
0x3eae   :  { %v5714_v25 = vpop.f32.mrf.mxu0 }
0x3eaf   :  { %v2614_v44 = vadd.f32 %v5641_v18, %v5714_v25 }
0x3eb0   :  { %v5716_v47 = vpop.f32.mrf.mxu0 }
0x3eb2   :  { %v5718_v31 = vpop.f32.mrf.mxu0 }
0x3f11   :  { %v5720_v33 = vpop.f32.mrf.mxu0 }
0x3f13   :  { %v4499_v34 = vpop.f32.mrf.mxu0 }
0x3f19   :  { %v3000_v37 = vpop.f32.mrf.mxu0 }
0x3f1a   :  { %v3006_v40 = vadd.f32 %v3000_v37, %v2604_v36 }
0x3f1b   :  { %v4517_v41 = vpop.f32.mrf.mxu0 }
0x3f1c   :  { %4852 = vtanh.f32 %v3006_v40  ;;  %v4005_v48 = vmul.f32 -1.442695, %v3006_v40 }
0x3f1d   :  { %v3003_v43 = vpop.f32.mrf.mxu0 }
0x3f1e   :  { %4854 = vpow2.f32 %v4005_v48 }
0x3f1f   :  { %v4518_v62 = vpop.f32.mrf.mxu0 }
0x3f29   :  { %v4853_v54 = vpop.eup %4852 }
0x3f2a   :  { %3016 = vrot.lane.b32.xlu0 %v4853_v54, %s4953_s22 }
0x3f2b   :  { %v4855_v14 = vpop.eup %4854 }
0x3f2c   :  { %v3010_v56 = vadd.f32 1.0, %v4855_v14  ;;  %v2619_v14 = vadd.f32 %v5712_v28, %v5641_v18 }
0x3f2e   :  { %4856 = vrcp.f32 %v3010_v56 }
0x3f3b   :  { %v4857_v29 = vpop.eup %4856 }
0x3f3c   :  { %v3014_v16 = vmul.f32 %v4857_v29, %v5673_v13 }
0x3f9c   :  { %v3017_v10 = vpop.permute.xlu0 %3016 }
0x3f9d   :  { %v3019_v1 = vmul.f32 %v4857_v29, %v3017_v10 }
0x3f9f   :  { %3021 = vrot.lane.b32.xlu1 %v3019_v1, %s4953_s22 }
0x4011   :  { %v3022_v26 = vpop.permute.xlu1 %3021 }
0x4012   :  { %v3024_v50 = vadd.f32 %v3022_v26, %v3014_v16 }
0x4014   :  { %4858 = vtanh.f32 %v3024_v50 }
0x4021   :  { %v4859_v38 = vpop.eup %4858 }
0x4022   :  { %3027 = vrot.lane.b32.xlu0 %v4859_v38, %s4953_s22 }
0x4094   :  { %v3028_v4 = vpop.permute.xlu0 %3027 }
0x4095   :  { %v5727_v51 = vmul.f32 %v4857_v29, %v3028_v4 }
0x4097   :  { %v3113_v52 = vpack.c.bf16 %v5727_v51, %v5727_v51 }
0x4099   :  { %3115 = vrot.lane.b32.xlu1 %v3113_v52, %s4945_s27 }
0x410b   :  { %v3116_v6 = vpop.permute.xlu1 %3115 }
0x410c   :  { %4535 = vmatmul.mubr.msk.bf16.vlgmr.msra.gmra.mxu0 %vm227_vm2, %v3116_v6 }
0x410d   :  { %4550 = vmatpush3.bf16.msra.mxu0 %v5616_v20  ;;  %4553 = vmatprep.mubr.msk.bf16.mxu0 %vm4951_vm0, %v4950_v0 }
0x410e   :  { %4551 = vmatprep.subr.bf16.mxu0 %v4950_v0 }
0x4111   :  { %4552 = vmatpush3.bf16.msra.mxu0 %v5620_v59 }
0x4112   :  { %4568 = vmatprep.subr.bf16.mxu0 %v4950_v0 }
0x41cc   :  { %v3154_v57 = vpop.f32.mrf.mxu0 }
0x41cd   :  { %v3160_v12 = vadd.f32 %v3154_v57, %v2609_v55 }
0x41ce   :  { %v4536_v45 = vpop.f32.mrf.mxu0 }
0x41cf   :  { %4860 = vtanh.f32 %v3160_v12  ;;  %v4008_v5 = vmul.f32 -1.442695, %v3160_v12 }
0x41d0   :  { %v3157_v58 = vpop.f32.mrf.mxu0 }
0x41d1   :  { %4862 = vpow2.f32 %v4008_v5 }
0x41d2   :  { %v4537_v60 = vpop.f32.mrf.mxu0 }
0x41dc   :  { %v4861_v2 = vpop.eup %4860 }
0x41dd   :  { %3170 = vrot.lane.b32.xlu0 %v4861_v2, %s4953_s22 }
0x41de   :  { %v4863_v8 = vpop.eup %4862 }
0x41df   :  { %v3164_v11 = vadd.f32 1.0, %v4863_v8  ;;  %v2624_v8 = vadd.f32 %v5641_v18, %v5718_v31 }
0x41e1   :  { %4864 = vrcp.f32 %v3164_v11 }
0x41ee   :  { %v4865_v13 = vpop.eup %4864 }
0x41ef   :  { %v3168_v61 = vmul.f32 %v4865_v13, %v3024_v50 }
0x424f   :  { %v3171_v7 = vpop.permute.xlu0 %3170 }
0x4250   :  { %v3173_v17 = vmul.f32 %v4865_v13, %v3171_v7 }
0x4252   :  { %3175 = vrot.lane.b32.xlu1 %v3173_v17, %s4953_s22 }
0x42c4   :  { %v3176_v46 = vpop.permute.xlu1 %3175 }
0x42c5   :  { %v3178_v15 = vadd.f32 %v3176_v46, %v3168_v61 }
0x42c7   :  { %4866 = vtanh.f32 %v3178_v15 }
0x42d4   :  { %v4867_v32 = vpop.eup %4866 }
0x42d5   :  { %3181 = vrot.lane.b32.xlu0 %v4867_v32, %s4953_s22 }
0x4347   :  { %v3182_v42 = vpop.permute.xlu0 %3181 }
0x4348   :  { %v5743_v19 = vmul.f32 %v4865_v13, %v3182_v42 }
0x434a   :  { %v3267_v23 = vpack.c.bf16 %v5743_v19, %v5743_v19 }
0x434c   :  { %3269 = vrot.lane.b32.xlu1 %v3267_v23, %s4945_s27 }
0x43be   :  { %v3270_v30 = vpop.permute.xlu1 %3269 }
0x43bf   :  { %4554 = vmatmul.mubr.msk.bf16.vlgmr.msra.gmra.mxu0 %vm227_vm2, %v3270_v30 }
0x43c0   :  { %4569 = vmatpush3.bf16.msra.mxu0 %v5616_v20  ;;  %4572 = vmatprep.mubr.msk.bf16.mxu0 %vm4951_vm0, %v4950_v0 }
0x43c1   :  { %4570 = vmatprep.subr.bf16.mxu0 %v4950_v0 }
0x43c4   :  { %4571 = vmatpush3.bf16.msra.mxu0 %v5620_v59 }
0x43c5   :  { %4587 = vmatprep.subr.bf16.mxu0 %v4950_v0 }
0x447f   :  { %v3308_v53 = vpop.f32.mrf.mxu0 }
0x4480   :  { %v3314_v21 = vadd.f32 %v3308_v53, %v2614_v44 }
0x4481   :  { %v4555_v9 = vpop.f32.mrf.mxu0 }
0x4482   :  { %4868 = vtanh.f32 %v3314_v21  ;;  %v4011_v35 = vmul.f32 -1.442695, %v3314_v21 }
0x4483   :  { %v3311_v24 = vpop.f32.mrf.mxu0 }
0x4484   :  { %4870 = vpow2.f32 %v4011_v35 }
0x4485   :  { %v4556_v63 = vpop.f32.mrf.mxu0 }
0x448f   :  { %v4869_v49 = vpop.eup %4868 }
0x4490   :  { %3324 = vrot.lane.b32.xlu0 %v4869_v49, %s4953_s22  ;;  %v2629_v49 = vadd.f32 %v5716_v47, %v5641_v18 }
0x4491   :  { %v4871_v3 = vpop.eup %4870 }
0x4492   :  { %v3318_v22 = vadd.f32 1.0, %v4871_v3 }
0x4494   :  { %4872 = vrcp.f32 %v3318_v22 }
0x44a1   :  { %v4873_v27 = vpop.eup %4872 }
0x44a2   :  { %v3322_v25 = vmul.f32 %v4873_v27, %v3178_v15 }
0x4502   :  { %v3325_v34 = vpop.permute.xlu0 %3324 }
0x4503   :  { %v3327_v36 = vmul.f32 %v4873_v27, %v3325_v34 }
0x4505   :  { %3329 = vrot.lane.b32.xlu1 %v3327_v36, %s4953_s22 }
0x4577   :  { %v3330_v37 = vpop.permute.xlu1 %3329 }
0x4578   :  { %v3332_v40 = vadd.f32 %v3330_v37, %v3322_v25  ;;  %v2729_v25 = vld [vmem:[#allocation9 + $0x18] sm:$0xff]  ;;  %v2728_v37 = vld [vmem:[#allocation9 + $0x10] sm:$0xff] }
0x4579   :  { %4501 = vmatpush3.msra.mxu1 %v2729_v25 }
0x457a   :  { %4874 = vtanh.f32 %v3332_v40  ;;  %4502 = vmatprep.subr.mxu1 %v4950_v0 }
0x457b   :  { %4503 = vmatpush3.msra.mxu1 %v2728_v37 }
0x457c   :  { %4504 = vmatprep.subr.mxu1 %v4950_v0 }
0x4587   :  { %v4875_v41 = vpop.eup %4874 }
0x4588   :  { %3335 = vrot.lane.b32.xlu0 %v4875_v41, %s4953_s22  ;;  %v2727_v41 = vld [vmem:[#allocation9 + $0x8] sm:$0xff] }
0x4589   :  { %4505 = vmatpush3.msra.mxu1 %v2727_v41 }
0x458a   :  { %4506 = vmatprep.subr.mxu1 %v4950_v0 }
0x45fa   :  { %v3336_v43 = vpop.permute.xlu0 %3335 }
0x45fb   :  { %v5760_v62 = vmul.f32 %v4873_v27, %v3336_v43  ;;  %v2726_v43 = vld [vmem:[#allocation9] sm:$0xff] }
0x45fc   :  { %4507 = vmatpush3.msra.mxu1 %v2726_v43 }
0x45fd   :  { %v3421_v54 = vpack.c.bf16 %v5760_v62, %v5760_v62  ;;  %4519 = vmatprep.subr.mxu1 %v4950_v0 }
0x45ff   :  { %3423 = vrot.lane.b32.xlu1 %v3421_v54, %s4945_s27 }
0x4671   :  { %v3424_v48 = vpop.permute.xlu1 %3423 }
0x4672   :  { %4573 = vmatmul.mubr.msk.bf16.vlgmr.msra.gmra.mxu0 %vm227_vm2, %v3424_v48 }
0x4673   :  { %4588 = vmatpush3.bf16.msra.mxu0 %v5616_v20  ;;  %4591 = vmatprep.mubr.msk.bf16.mxu0 %vm4951_vm0, %v4950_v0 }
0x4674   :  { %4589 = vmatprep.subr.bf16.mxu0 %v4950_v0 }
0x4677   :  { %4590 = vmatpush3.bf16.msra.mxu0 %v5620_v59 }
0x4678   :  { %4606 = vmatprep.subr.bf16.mxu0 %v4950_v0 }
0x4732   :  { %v3462_v56 = vpop.f32.mrf.mxu0 }
0x4733   :  { %v3468_v29 = vadd.f32 %v3462_v56, %v2619_v14 }
0x4734   :  { %v4574_v10 = vpop.f32.mrf.mxu0 }
0x4735   :  { %4876 = vtanh.f32 %v3468_v29  ;;  %v4014_v50 = vmul.f32 -1.442695, %v3468_v29 }
0x4736   :  { %v3465_v1 = vpop.f32.mrf.mxu0 }
0x4737   :  { %4878 = vpow2.f32 %v4014_v50  ;;  %v3035_v1 = vld [vmem:[#allocation9 + $0x58] sm:$0xff] }
0x4738   :  { %v4575_v16 = vpop.f32.mrf.mxu0 }
0x4742   :  { %v4877_v26 = vpop.eup %4876 }
0x4743   :  { %3478 = vrot.lane.b32.xlu0 %v4877_v26, %s4953_s22  ;;  %v3034_v26 = vld [vmem:[#allocation9 + $0x50] sm:$0xff] }
0x4744   :  { %v4879_v38 = vpop.eup %4878 }
0x4745   :  { %v3472_v4 = vadd.f32 1.0, %v4879_v38 }
0x4747   :  { %4880 = vrcp.f32 %v3472_v4 }
0x4754   :  { %v4881_v52 = vpop.eup %4880 }
0x4755   :  { %v3476_v28 = vmul.f32 %v4881_v52, %v3332_v40 }
0x47b5   :  { %v3479_v6 = vpop.permute.xlu0 %3478 }
0x47b6   :  { %v3481_v55 = vmul.f32 %v4881_v52, %v3479_v6 }
0x47b8   :  { %3483 = vrot.lane.b32.xlu1 %v3481_v55, %s4953_s22  ;;  %v3188_v55 = vld [vmem:[#allocation9 + $0x70] sm:$0xff] }
0x482a   :  { %v3484_v57 = vpop.permute.xlu1 %3483 }
0x482b   :  { %v3486_v12 = vadd.f32 %v3484_v57, %v3476_v28  ;;  %v3343_v28 = vld [vmem:[#allocation9 + $0x98] sm:$0xff] }
0x482d   :  { %4882 = vtanh.f32 %v3486_v12 }
0x483a   :  { %v4883_v45 = vpop.eup %4882 }
0x483b   :  { %3489 = vrot.lane.b32.xlu0 %v4883_v45, %s4953_s22  ;;  %v3341_v45 = vld [vmem:[#allocation9 + $0x88] sm:$0xff] }
0x48ad   :  { %v3490_v58 = vpop.permute.xlu0 %3489 }
0x48ae   :  { %v5777_v60 = vmul.f32 %v4881_v52, %v3490_v58  ;;  %v3189_v52 = vld [vmem:[#allocation9 + $0x78] sm:$0xff]  ;;  %v3340_v58 = vld [vmem:[#allocation9 + $0x80] sm:$0xff] }
0x48b0   :  { %v3575_v2 = vpack.c.bf16 %v5777_v60, %v5777_v60 }
0x48b2   :  { %3577 = vrot.lane.b32.xlu1 %v3575_v2, %s4945_s27 }
0x4924   :  { %v3578_v5 = vpop.permute.xlu1 %3577 }
0x4925   :  { %4592 = vmatmul.mubr.msk.bf16.vlgmr.msra.gmra.mxu0 %vm227_vm2, %v3578_v5  ;;  %v3496_v5 = vld [vmem:[#allocation9 + $0xb0] sm:$0xff] }
0x4926   :  { %4607 = vmatpush3.bf16.msra.mxu0 %v5616_v20  ;;  %4610 = vmatprep.mubr.msk.bf16.mxu0 %vm4951_vm0, %v4950_v0 }
0x4927   :  { %4608 = vmatprep.subr.bf16.mxu0 %v4950_v0 }
0x492a   :  { %4609 = vmatpush3.bf16.msra.mxu0 %v5620_v59 }
0x49e5   :  { %v3616_v11 = vpop.f32.mrf.mxu0 }
0x49e6   :  { %v3622_v13 = vadd.f32 %v3616_v11, %v2624_v8  ;;  %v3495_v8 = vld [vmem:[#allocation9 + $0xa8] sm:$0xff]  ;;  %v3494_v11 = vld [vmem:[#allocation9 + $0xa0] sm:$0xff] }
0x49e7   :  { %v4593_v7 = vpop.f32.mrf.mxu0 }
0x49e8   :  { %4884 = vtanh.f32 %v3622_v13  ;;  %v4017_v20 = vmul.f32 -1.442695, %v3622_v13  ;;  %v3651_v13 = vld [vmem:[#allocation9 + $0xd8] sm:$0xff] }
0x49e9   :  { %v3619_v17 = vpop.f32.mrf.mxu0 }
0x49ea   :  { %4886 = vpow2.f32 %v4017_v20  ;;  %v3650_v17 = vld [vmem:[#allocation9 + $0xd0] sm:$0xff]  ;;  %v3805_v20 = vld [vmem:[#allocation9 + $0xf8] sm:$0xff] }
0x49eb   :  { %v4594_v61 = vpop.f32.mrf.mxu0 }
0x49ec   :  { %v3649_v61 = vld [vmem:[#allocation9 + $0xc8] sm:$0xff] }
0x49f5   :  { %v4885_v46 = vpop.eup %4884 }
0x49f6   :  { %3632 = vrot.lane.b32.xlu0 %v4885_v46, %s4953_s22  ;;  %v3648_v46 = vld [vmem:[#allocation9 + $0xc0] sm:$0xff] }
0x49f7   :  { %v4887_v15 = vpop.eup %4886 }
0x49f8   :  { %v3626_v32 = vadd.f32 1.0, %v4887_v15 }
0x49fa   :  { %4888 = vrcp.f32 %v3626_v32  ;;  %v3804_v32 = vld [vmem:[#allocation9 + $0xf0] sm:$0xff] }
0x4a07   :  { %v4889_v42 = vpop.eup %4888 }
0x4a08   :  { %v3630_v31 = vmul.f32 %v4889_v42, %v3486_v12  ;;  %v3342_v12 = vld [vmem:[#allocation9 + $0x90] sm:$0xff] }
0x4a68   :  { %v3633_v23 = vpop.permute.xlu0 %3632 }
0x4a69   :  { %v3635_v59 = vmul.f32 %v4889_v42, %v3633_v23  ;;  %v3802_v23 = vld [vmem:[#allocation9 + $0xe0] sm:$0xff] }
0x4a6b   :  { %3637 = vrot.lane.b32.xlu1 %v3635_v59, %s4953_s22 }
0x4add   :  { %v3638_v30 = vpop.permute.xlu1 %3637 }
0x4ade   :  { %v3640_v44 = vadd.f32 %v3638_v30, %v3630_v31 }
0x4ae0   :  { %4890 = vtanh.f32 %v3640_v44 }
0x4aed   :  { %v4891_v53 = vpop.eup %4890 }
0x4aee   :  { %3643 = vrot.lane.b32.xlu0 %v4891_v53, %s4953_s22 }
0x4b60   :  { %v3644_v21 = vpop.permute.xlu0 %3643 }
0x4b61   :  { %v3646_v9 = vmul.f32 %v4889_v42, %v3644_v21  ;;  %v3803_v42 = vld [vmem:[#allocation9 + $0xe8] sm:$0xff] }
0x4b63   :  { %v3729_v24 = vpack.c.bf16 %v3646_v9, %v3646_v9 }
0x4b65   :  { %3731 = vrot.lane.b32.xlu1 %v3729_v24, %s4945_s27 }
0x4bd7   :  { %v3732_v63 = vpop.permute.xlu1 %3731 }
0x4bd8   :  { %4611 = vmatmul.mubr.msk.bf16.vlgmr.msra.gmra.mxu0 %vm227_vm2, %v3732_v63 }
0x4c98   :  { %v3770_v35 = vpop.f32.mrf.mxu0 }
0x4c99   :  { %v3776_v3 = vadd.f32 %v3770_v35, %v2629_v49 }
0x4c9a   :  { %v4612_v22 = vpop.f32.mrf.mxu0 }
0x4c9b   :  { %4892 = vtanh.f32 %v3776_v3  ;;  %v4020_v40 = vmul.f32 -1.442695, %v3776_v3 }
0x4c9c   :  { %v3773_v27 = vpop.f32.mrf.mxu0 }
0x4c9d   :  { %4894 = vpow2.f32 %v4020_v40 }
0x4c9e   :  { %v4613_v34 = vpop.f32.mrf.mxu0 }
0x4ca8   :  { %v4893_v36 = vpop.eup %4892 }
0x4ca9   :  { %3786 = vrot.lane.b32.xlu0 %v4893_v36, %s4953_s22 }
0x4caa   :  { %v4895_v18 = vpop.eup %4894 }
0x4cab   :  { %v3780_v47 = vadd.f32 1.0, %v4895_v18 }
0x4cad   :  { %4896 = vrcp.f32 %v3780_v47 }
0x4cba   :  { %v4897_v54 = vpop.eup %4896 }
0x4cbb   :  { %v3784_v56 = vmul.f32 %v4897_v54, %v3640_v44 }
0x4d1b   :  { %v3787_v48 = vpop.permute.xlu0 %3786 }
0x4d1c   :  { %v3789_v14 = vmul.f32 %v4897_v54, %v3787_v48 }
0x4d1e   :  { %3791 = vrot.lane.b32.xlu1 %v3789_v14, %s4953_s22 }
0x4d22   :  { %2884 = vrot.lane.b32.xlu1 %v5648_v39, %s4945_s27  ;;  %v3033_v39 = vld [vmem:[#allocation9 + $0x48] sm:$0xff] }
0x4d26   :  { %3191 = vrot.lane.b32.xlu1 %v5743_v19, %s4945_s27  ;;  %v3032_v19 = vld [vmem:[#allocation9 + $0x40] sm:$0xff] }
0x4d2a   :  { %3499 = vrot.lane.b32.xlu1 %v5777_v60, %s4945_s27  ;;  %v3497_v60 = vld [vmem:[#allocation9 + $0xb8] sm:$0xff] }
0x4d90   :  { %v3792_v29 = vpop.permute.xlu1 %3791 }
0x4d91   :  { %v3794_v10 = vadd.f32 %v3792_v29, %v3784_v56 }
0x4d93   :  { %4898 = vtanh.f32 %v3794_v10 }
0x4d94   :  { %v2885_v16 = vpop.permute.xlu1 %2884 }
0x4d95   :  { %4509 = vmatmul.mubr.msk.f32.vlgmr.msra.gmra.mxu1 %vm227_vm2, %v2885_v16 }
0x4d96   :  { %4520 = vmatpush3.msra.mxu1 %v3035_v1  ;;  %4527 = vmatprep.mubr.msk.f32.mxu1 %vm4951_vm0, %v4950_v0 }
0x4d97   :  { %4521 = vmatprep.subr.mxu1 %v4950_v0 }
0x4d98   :  { %4522 = vmatpush3.msra.mxu1 %v3034_v26  ;;  %v3192_v57 = vpop.permute.xlu1 %3191 }
0x4d99   :  { %4523 = vmatprep.subr.mxu1 %v4950_v0 }
0x4d9a   :  { %4524 = vmatpush3.msra.mxu1 %v3033_v39 }
0x4d9b   :  { %4525 = vmatprep.subr.mxu1 %v4950_v0 }
0x4d9c   :  { %4526 = vmatpush3.msra.mxu1 %v3032_v19  ;;  %v3500_v7 = vpop.permute.xlu1 %3499 }
0x4d9d   :  { %4538 = vmatprep.subr.mxu1 %v4950_v0 }
0x4da0   :  { %v4899_v50 = vpop.eup %4898 }
0x4da1   :  { %3797 = vrot.lane.b32.xlu0 %v4899_v50, %s4953_s22 }
0x4da5   :  { %3037 = vrot.lane.b32.xlu0 %v5727_v51, %s4945_s27  ;;  %v3187_v51 = vld [vmem:[#allocation9 + $0x68] sm:$0xff] }
0x4da9   :  { %3345 = vrot.lane.b32.xlu0 %v5760_v62, %s4945_s27  ;;  %v3186_v62 = vld [vmem:[#allocation9 + $0x60] sm:$0xff] }
0x4dad   :  { %3653 = vrot.lane.b32.xlu0 %v3646_v9, %s4945_s27 }
0x4e13   :  { %v3798_v38 = vpop.permute.xlu0 %3797 }
0x4e14   :  { %v3800_v4 = vmul.f32 %v4897_v54, %v3798_v38 }
0x4e16   :  { %3807 = vrot.lane.b32.xlu1 %v3800_v4, %s4945_s27 }
0x4e17   :  { %v3038_v6 = vpop.permute.xlu0 %3037 }
0x4e18   :  { %4528 = vmatmul.mubr.msk.f32.vlgmr.msra.gmra.mxu1 %vm227_vm2, %v3038_v6 }
0x4e19   :  { %4539 = vmatpush3.msra.mxu1 %v3189_v52  ;;  %4546 = vmatprep.mubr.msk.f32.mxu1 %vm4951_vm0, %v4950_v0 }
0x4e1a   :  { %4540 = vmatprep.subr.mxu1 %v4950_v0 }
0x4e1b   :  { %4541 = vmatpush3.msra.mxu1 %v3188_v55  ;;  %v3346_v2 = vpop.permute.xlu0 %3345 }
0x4e1c   :  { %4542 = vmatprep.subr.mxu1 %v4950_v0 }
0x4e1d   :  { %4543 = vmatpush3.msra.mxu1 %v3187_v51 }
0x4e1e   :  { %4544 = vmatprep.subr.mxu1 %v4950_v0 }
0x4e1f   :  { %4545 = vmatpush3.msra.mxu1 %v3186_v62  ;;  %v3654_v15 = vpop.permute.xlu0 %3653 }
0x4e20   :  { %4547 = vmatmul.mubr.msk.f32.vlgmr.msra.gmra.mxu1 %vm227_vm2, %v3192_v57  ;;  %4557 = vmatprep.subr.mxu1 %v4950_v0 }
0x4e21   :  { %4558 = vmatpush3.msra.mxu1 %v3343_v28  ;;  %4565 = vmatprep.mubr.msk.f32.mxu1 %vm4951_vm0, %v4950_v0 }
0x4e22   :  { %4559 = vmatprep.subr.mxu1 %v4950_v0 }
0x4e23   :  { %4560 = vmatpush3.msra.mxu1 %v3342_v12 }
0x4e24   :  { %4561 = vmatprep.subr.mxu1 %v4950_v0 }
0x4e25   :  { %4562 = vmatpush3.msra.mxu1 %v3341_v45 }
0x4e26   :  { %4563 = vmatprep.subr.mxu1 %v4950_v0 }
0x4e27   :  { %4564 = vmatpush3.msra.mxu1 %v3340_v58 }
0x4e28   :  { %4566 = vmatmul.mubr.msk.f32.vlgmr.msra.gmra.mxu1 %vm227_vm2, %v3346_v2  ;;  %4576 = vmatprep.subr.mxu1 %v4950_v0 }
0x4e29   :  { %4577 = vmatpush3.msra.mxu1 %v3497_v60  ;;  %4584 = vmatprep.mubr.msk.f32.mxu1 %vm4951_vm0, %v4950_v0 }
0x4e2a   :  { %4578 = vmatprep.subr.mxu1 %v4950_v0 }
0x4e2b   :  { %4579 = vmatpush3.msra.mxu1 %v3496_v5 }
0x4e2c   :  { %4580 = vmatprep.subr.mxu1 %v4950_v0 }
0x4e2d   :  { %4581 = vmatpush3.msra.mxu1 %v3495_v8 }
0x4e2e   :  { %4582 = vmatprep.subr.mxu1 %v4950_v0 }
0x4e2f   :  { %4583 = vmatpush3.msra.mxu1 %v3494_v11 }
0x4e30   :  { %4585 = vmatmul.mubr.msk.f32.vlgmr.msra.gmra.mxu1 %vm227_vm2, %v3500_v7  ;;  %4595 = vmatprep.subr.mxu1 %v4950_v0 }
0x4e31   :  { %4596 = vmatpush3.msra.mxu1 %v3651_v13  ;;  %4603 = vmatprep.mubr.msk.f32.mxu1 %vm4951_vm0, %v4950_v0 }
0x4e32   :  { %4597 = vmatprep.subr.mxu1 %v4950_v0 }
0x4e33   :  { %4598 = vmatpush3.msra.mxu1 %v3650_v17 }
0x4e34   :  { %4599 = vmatprep.subr.mxu1 %v4950_v0 }
0x4e35   :  { %4600 = vmatpush3.msra.mxu1 %v3649_v61 }
0x4e36   :  { %4601 = vmatprep.subr.mxu1 %v4950_v0 }
0x4e37   :  { %4602 = vmatpush3.msra.mxu1 %v3648_v46 }
0x4e38   :  { %4604 = vmatmul.mubr.msk.f32.vlgmr.msra.gmra.mxu1 %vm227_vm2, %v3654_v15  ;;  %4614 = vmatprep.subr.mxu1 %v4950_v0 }
0x4e39   :  { %4615 = vmatpush3.msra.mxu1 %v3805_v20  ;;  %4622 = vmatprep.mubr.msk.f32.mxu1 %vm4951_vm0, %v4950_v0 }
0x4e3a   :  { %4616 = vmatprep.subr.mxu1 %v4950_v0 }
0x4e3b   :  { %4617 = vmatpush3.msra.mxu1 %v3804_v32 }
0x4e3c   :  { %4618 = vmatprep.subr.mxu1 %v4950_v0 }
0x4e3d   :  { %4619 = vmatpush3.msra.mxu1 %v3803_v42 }
0x4e3e   :  { %4620 = vmatprep.subr.mxu1 %v4950_v0 }
0x4e3f   :  { %4621 = vmatpush3.msra.mxu1 %v3802_v23 }
0x4e55   :  { %v2954_v59 = vpop.f32.mrf.mxu1 }
0x4e56   :  { %v2955_v44 = vadd.f32 %v2954_v59, %v5720_v33  ;;  %v4022_v33 = vld [vmem:[%s5871_s6] ss:$0 sm:$0xff] }
0x4e57   :  { %v4510_v31 = vpop.f32.mrf.mxu1 }
0x4e88   :  { %v3808_v30 = vpop.permute.xlu1 %3807 }
0x4e89   :  { %4623 = vmatmul.mubr.msk.f32.vlgmr.msra.gmra.mxu1 %vm227_vm2, %v3808_v30 }
0x4ed8   :  { %v3107_v53 = vpop.f32.mrf.mxu1 }
0x4ed9   :  { %v3111_v21 = vadd.f32 %v3107_v53, %v2955_v44 }
0x4eda   :  { %v4529_v9 = vpop.f32.mrf.mxu1 }
0x4ee0   :  { %v3261_v24 = vpop.f32.mrf.mxu1 }
0x4ee1   :  { %v3265_v63 = vadd.f32 %v3261_v24, %v3111_v21 }
0x4ee2   :  { %v4548_v49 = vpop.f32.mrf.mxu1 }
0x4ee8   :  { %v3415_v35 = vpop.f32.mrf.mxu1 }
0x4ee9   :  { %v3419_v3 = vadd.f32 %v3415_v35, %v3265_v63 }
0x4eea   :  { %v4567_v22 = vpop.f32.mrf.mxu1 }
0x4ef0   :  { %v3569_v27 = vpop.f32.mrf.mxu1 }
0x4ef1   :  { %v3573_v34 = vadd.f32 %v3569_v27, %v3419_v3 }
0x4ef2   :  { %v4586_v0 = vpop.f32.mrf.mxu1 }
0x4ef8   :  { %v3723_v36 = vpop.f32.mrf.mxu1 }
0x4ef9   :  { %v3727_v25 = vadd.f32 %v3723_v36, %v3573_v34 }
0x4efa   :  { %v4605_v37 = vpop.f32.mrf.mxu1 }
0x4f49   :  { %v3877_v40 = vpop.f32.mrf.mxu1 }
0x4f4a   :  { %v3881_v18 = vadd.f32 %v3877_v40, %v3727_v25 }
0x4f4b   :  { %v4624_v47 = vpop.f32.mrf.mxu1 }
0x4f4c   :  { %v3889_v41 = vadd.f32 %v4022_v33, %v3881_v18 }
0x4f4e   :  { %3890 = vst [vmem:[%s5872_s7] sm:$0xff] %v3889_v41 }
0x4f4f   :  { %3895 = vsyncpa [#allocation8], 1 }
0x4f50   :  { %3896 = vsyncpa [#allocation10], 1 }

</bundles_post_ra>
